<compile_context>
chip_gen: v7x
topology: tpu7x:2x2x1
jax: 0.10.0
libtpu: 0.0.40
codegen_flags: <defaults>
</compile_context>

<pallas_src>
import functools
import math

import jax
import jax.numpy as jnp
from jax.experimental import pallas as pl
from jax.experimental.pallas import tpu as pltpu

# ----------------------------- synthetic config ------------------------------
IMAGE_SIZE = 8       # H of the line image (module asserts H == IMAGE_SIZE)
WINDOW_WIDTH = 8     # WW
WINDOW_STRIDE = 8    # WS
CONV_DIM = 8         # conv_dim of the inner CNN
FC_DIM = 16          # fc_dim of the inner CNN
NUM_CLASSES = 10     # len(data_config["mapping"])
BATCH = 2
LINE_WIDTH = 32      # W of the (long) line image
OUTPUT_LENGTH = 4    # data_config["output_dims"][0]

NC_PADDED = 128      # lane-dense logits width inside the kernel


# --------------------------------- kernel ------------------------------------
def line_cnn_kernel(im1_ref, w1_ref, b1_ref, w2_ref, b2_ref, mask_ref,
                    fc1w_ref, fc1b_ref, fc2w_ref, fc2b_ref, out_ref,
                    *, N, H, WW, C1, C2):
    """Processes all B*S windows in one invocation.

    Row index of every activation matrix is r = (y*WW + x)*N + n.

    im1_ref : (R, 9*Cin)   im2col of the per-window zero-padded input
    w1_ref  : (9*Cin, C1)  conv1 weight as a matmul
    w2_ref  : (9*C1, C2)   conv2 weight as a matmul (tap-major rows)
    mask_ref: (9, R, C1)   per-tap validity masks (zero at window borders)
    fc1w_ref: (P*C2, FC)   fc1 weight, rows ordered (pool block p, channel c)
    fc2w_ref: (FC, 128)    fc2 weight zero-padded to 128 output lanes
    out_ref : (N, 128)     lane-dense logits
    """
    R = N * H * WW

    def shift_rows(v, s):
        # out[r] = v[r + s] for in-range rows, zero-filled otherwise.
        # Every |s| used here is a multiple of N (= 8) -> sublane-aligned.
        if s == 0:
            return v
        zeros = jnp.zeros((abs(s), v.shape[1]), v.dtype)
        if s > 0:
            return jnp.concatenate([v[s:, :], zeros], axis=0)
        return jnp.concatenate([zeros, v[:R + s, :]], axis=0)

    # ---- conv1: one MXU matmul over the pre-built im2col matrix + ReLU -----
    h1 = jnp.dot(im1_ref[...], w1_ref[...],
                 preferred_element_type=jnp.float32)              # (R, C1)
    h1 = jnp.maximum(h1 + b1_ref[...], 0.0)

    # ---- conv2: in-kernel im2col of h1 (9 aligned row shifts + masks), -----
    # ---- then ONE MXU matmul with K = 9*C1, + bias, ReLU --------------------
    taps = []
    for k in range(9):
        dy, dx = k // 3, k % 3
        s = ((dy - 1) * WW + (dx - 1)) * N
        taps.append(shift_rows(h1, s) * mask_ref[k])              # (R, C1)
    im2 = jnp.concatenate(taps, axis=1)                           # (R, 9*C1)
    h2 = jnp.dot(im2, w2_ref[...], preferred_element_type=jnp.float32)
    h2 = jnp.maximum(h2 + b2_ref[...], 0.0)                       # (R, C2)
    # Dropout(0.25) / Dropout(0.5) are identity at inference time.

    # ---- 2x2 max-pool via two aligned row-shift maxes -----------------------
    mx = jnp.maximum(h2, shift_rows(h2, N))           # x-pair max (valid @ even x)
    mxy = jnp.maximum(mx, shift_rows(mx, WW * N))     # y-pair max (valid @ even y)

    # ---- gather pooled blocks (contiguous aligned N-row slices) and ---------
    # ---- lane-concat -> fc1 is ONE MXU matmul with K = P*C2 = 128 -----------
    blocks = []
    for i in range(H // 2):
        for j in range(WW // 2):
            r0 = (2 * i * WW + 2 * j) * N
            blocks.append(mxy[r0:r0 + N, :])                      # (N, C2)
    pooled = jnp.concatenate(blocks, axis=1)                      # (N, P*C2)

    h3 = jnp.dot(pooled, fc1w_ref[...], preferred_element_type=jnp.float32)
    h3 = jnp.maximum(h3 + fc1b_ref[...], 0.0)                     # (N, FC)

    # ---- fc2: lane-dense output (num_classes zero-padded to 128 lanes) ------
    out_ref[...] = jnp.dot(h3, fc2w_ref[...],
                           preferred_element_type=jnp.float32) + fc2b_ref[...]


# --------------------------------- wrapper -----------------------------------
def line_cnn_simple_forward(x_nchw, params, *, ww=WINDOW_WIDTH, ws=WINDOW_STRIDE,
                            limit_output_length=False, output_length=OUTPUT_LENGTH):
    B, Cin, H, W = x_nchw.shape
    assert H == IMAGE_SIZE
    S = math.floor((W - ww) / ws + 1)
    N = B * S
    R = H * ww * N

    x = jnp.transpose(x_nchw, (0, 2, 3, 1)).astype(jnp.float32)   # NCHW -> NHWC

    # Fold the S sliding windows into one axis (works for any stride); each
    # window is padded independently, matching the torch CNN's zero padding.
    windows = jnp.stack([x[:, :, s * ws:s * ws + ww, :] for s in range(S)],
                        axis=1)                                   # (B, S, H, WW, Cin)
    xw = windows.reshape(N, H, ww, Cin)

    # conv1 im2col (input-only data movement, done once in XLA), rows (y,x,n).
    xpad = jnp.pad(xw, ((0, 0), (1, 1), (1, 1), (0, 0)))
    im_taps = [xpad[:, dy:dy + H, dx:dx + ww, :]
               for dy in range(3) for dx in range(3)]             # 9 x (N,H,WW,Cin)
    im1 = jnp.concatenate(im_taps, axis=-1)                       # (N, H, WW, 9*Cin)
    im1 = jnp.transpose(im1, (1, 2, 0, 3)).reshape(R, 9 * Cin)

    C1 = params["conv1_w"].shape[0]
    C2 = params["conv2_w"].shape[0]
    FC = params["fc1_w"].shape[0]
    NC = params["fc2_w"].shape[0]
    Hh, Wh = H // 2, ww // 2
    P = Hh * Wh

    # conv2 per-tap validity masks (zero outside the per-window 3x3 halo).
    yy = jnp.arange(H)[:, None]
    xx = jnp.arange(ww)[None, :]
    mask_list = []
    for dy in range(3):
        for dx in range(3):
            valid = ((yy + dy - 1 >= 0) & (yy + dy - 1 < H) &
                     (xx + dx - 1 >= 0) & (xx + dx - 1 < ww))     # (H, WW)
            m = jnp.broadcast_to(valid[:, :, None, None], (H, ww, N, C1))
            mask_list.append(m.reshape(R, C1))
    masks = jnp.stack(mask_list, axis=0).astype(jnp.float32)      # (9, R, C1)

    # PyTorch conv weight (O, I, kh, kw) -> matmul-friendly layouts.
    w1 = jnp.transpose(params["conv1_w"], (2, 3, 1, 0)).reshape(9 * Cin, C1)
    b1 = params["conv1_b"][None, :]
    w2 = jnp.transpose(params["conv2_w"], (2, 3, 1, 0)).reshape(9 * C1, C2)
    b2 = params["conv2_b"][None, :]

    # fc1 weight: torch flattens pooled NCHW in (c, i, j) order; kernel's
    # pooled lanes are ordered (p = i*Wh + j, c).
    fc1w = params["fc1_w"].reshape(FC, C2, Hh, Wh)                # [f, c, i, j]
    fc1w = jnp.transpose(fc1w, (2, 3, 1, 0)).reshape(P * C2, FC)  # [(p, c), f]
    fc1b = params["fc1_b"][None, :]

    # fc2 weight/bias zero-padded to 128 output lanes (lane-dense store).
    fc2w = jnp.pad(jnp.transpose(params["fc2_w"], (1, 0)),
                   ((0, 0), (0, NC_PADDED - NC)))                 # (FC, 128)
    fc2b = jnp.pad(params["fc2_b"], (0, NC_PADDED - NC))[None, :] # (1, 128)

    kernel = functools.partial(line_cnn_kernel, N=N, H=H, WW=ww, C1=C1, C2=C2)
    vmem_spec = lambda: pl.BlockSpec(memory_space=pltpu.MemorySpace.VMEM)

    out = pl.pallas_call(
        kernel,
        out_shape=jax.ShapeDtypeStruct((N, NC_PADDED), jnp.float32),
        in_specs=[vmem_spec() for _ in range(10)],
        out_specs=vmem_spec(),
    )(im1, w1, b1, w2, b2, masks, fc1w, fc1b, fc2w, fc2b)

    logits = out[:, :NC].reshape(B, S, NC)
    activations = jnp.transpose(logits, (0, 2, 1))                # (B, NC, S)
    if limit_output_length:
        activations = activations[:, :, :output_length]
    return activations


# ----------------------------- pure-JAX reference ----------------------------
def _cnn_ref(x_nchw, params):
    dn = ("NCHW", "OIHW", "NCHW")
    h = jax.lax.conv_general_dilated(x_nchw, params["conv1_w"], (1, 1), "SAME",
                                     dimension_numbers=dn)
    h = jnp.maximum(h + params["conv1_b"][None, :, None, None], 0.0)
    h = jax.lax.conv_general_dilated(h, params["conv2_w"], (1, 1), "SAME",
                                     dimension_numbers=dn)
    h = jnp.maximum(h + params["conv2_b"][None, :, None, None], 0.0)
    h = jax.lax.reduce_window(h, -jnp.inf, jax.lax.max,
                              (1, 1, 2, 2), (1, 1, 2, 2), "VALID")
    h = h.reshape(h.shape[0], -1)
    h = jnp.maximum(h @ params["fc1_w"].T + params["fc1_b"], 0.0)
    return h @ params["fc2_w"].T + params["fc2_b"]


def _reference_forward(x_nchw, params, *, ww=WINDOW_WIDTH, ws=WINDOW_STRIDE):
    B, _, H, W = x_nchw.shape
    S = math.floor((W - ww) / ws + 1)
    cols = []
    for s in range(S):
        cols.append(_cnn_ref(x_nchw[:, :, :, s * ws:s * ws + ww], params))
    return jnp.stack(cols, axis=-1)


# ----------------------------------- main -------------------------------------
if __name__ == "__main__":
    key = jax.random.PRNGKey(0)
    ks = jax.random.split(key, 10)

    params = {
        "conv1_w": 0.2 * jax.random.normal(ks[0], (CONV_DIM, 1, 3, 3), jnp.float32),
        "conv1_b": 0.1 * jax.random.normal(ks[1], (CONV_DIM,), jnp.float32),
        "conv2_w": 0.2 * jax.random.normal(ks[2], (CONV_DIM, CONV_DIM, 3, 3), jnp.float32),
        "conv2_b": 0.1 * jax.random.normal(ks[3], (CONV_DIM,), jnp.float32),
        "fc1_w": 0.1 * jax.random.normal(
            ks[4], (FC_DIM, CONV_DIM * (IMAGE_SIZE // 2) * (WINDOW_WIDTH // 2)),
            jnp.float32),
        "fc1_b": 0.1 * jax.random.normal(ks[5], (FC_DIM,), jnp.float32),
        "fc2_w": 0.1 * jax.random.normal(ks[6], (NUM_CLASSES, FC_DIM), jnp.float32),
        "fc2_b": 0.1 * jax.random.normal(ks[7], (NUM_CLASSES,), jnp.float32),
    }

    x = jax.random.normal(ks[8], (BATCH, 1, IMAGE_SIZE, LINE_WIDTH), jnp.float32)

    fwd = jax.jit(line_cnn_simple_forward)
    out = jax.block_until_ready(fwd(x, params))
    ref = jax.block_until_ready(_reference_forward(x, params))

    S = math.floor((LINE_WIDTH - WINDOW_WIDTH) / WINDOW_STRIDE + 1)
    assert out.shape == (BATCH, NUM_CLASSES, S), out.shape
    max_err = float(jnp.max(jnp.abs(out - ref)))
    assert jnp.allclose(out, ref, atol=5e-4, rtol=5e-4), max_err

    print("KERNEL_OK")
</pallas_src>

<mosaic_0001>
module attributes {stable_mosaic.version = 11 : i64} {
  func.func @line_cnn_kernel(%arg0: memref<512x9xf32, #tpu.memory_space<vmem>>, %arg1: memref<9x8xf32, #tpu.memory_space<vmem>>, %arg2: memref<1x8xf32, #tpu.memory_space<vmem>>, %arg3: memref<72x8xf32, #tpu.memory_space<vmem>>, %arg4: memref<1x8xf32, #tpu.memory_space<vmem>>, %arg5: memref<9x512x8xf32, #tpu.memory_space<vmem>>, %arg6: memref<128x16xf32, #tpu.memory_space<vmem>>, %arg7: memref<1x16xf32, #tpu.memory_space<vmem>>, %arg8: memref<16x128xf32, #tpu.memory_space<vmem>>, %arg9: memref<1x128xf32, #tpu.memory_space<vmem>>, %arg10: memref<8x128xf32, #tpu.memory_space<vmem>>) attributes {dimension_semantics = [], scalar_prefetch = 0 : i64, scratch_operands = 0 : i64, tpu.core_type = #tpu.core_type<tc>} {
    %c0 = arith.constant 0 : index
    %c0_0 = arith.constant 0 : index
    %0 = vector.load %arg0[%c0, %c0_0] : memref<512x9xf32, #tpu.memory_space<vmem>>, vector<512x9xf32>
    %c0_1 = arith.constant 0 : index
    %c0_2 = arith.constant 0 : index
    %1 = vector.load %arg1[%c0_1, %c0_2] : memref<9x8xf32, #tpu.memory_space<vmem>>, vector<9x8xf32>
    %cst = arith.constant dense<0.000000e+00> : vector<512x8xf32>
    %2 = tpu.matmul %0, %1, %cst {dimension_numbers = #tpu.dot_dimension_numbers<[1], [0], [0], [1], [0, 0, 1, 1], [], []>} : vector<512x9xf32>, vector<9x8xf32>, vector<512x8xf32> -> vector<512x8xf32>
    %c0_3 = arith.constant 0 : index
    %c0_4 = arith.constant 0 : index
    %3 = vector.load %arg2[%c0_3, %c0_4] : memref<1x8xf32, #tpu.memory_space<vmem>>, vector<1x8xf32>
    %4 = vector.broadcast %3 : vector<1x8xf32> to vector<512x8xf32>
    %5 = arith.addf %2, %4 : vector<512x8xf32>
    %cst_5 = arith.constant 0.000000e+00 : f32
    %6 = vector.broadcast %cst_5 : f32 to vector<512x8xf32>
    %7 = arith.maximumf %5, %6 : vector<512x8xf32>
    %cst_6 = arith.constant 0.000000e+00 : f32
    %8 = vector.broadcast %cst_6 : f32 to vector<72x8xf32>
    %9 = vector.extract_strided_slice %7 {offsets = [0, 0], sizes = [440, 8], strides = [1, 1]} : vector<512x8xf32> to vector<440x8xf32>
    %10 = tpu.concatenate %8, %9 in 0 : vector<72x8xf32>, vector<440x8xf32> -> vector<512x8xf32>
    %c0_7 = arith.constant 0 : index
    %c0_8 = arith.constant 0 : index
    %c0_9 = arith.constant 0 : index
    %11 = vector.load %arg5[%c0_7, %c0_8, %c0_9] : memref<9x512x8xf32, #tpu.memory_space<vmem>>, vector<1x512x8xf32>
    %12 = vector.shape_cast %11 : vector<1x512x8xf32> to vector<512x8xf32>
    %13 = arith.mulf %10, %12 : vector<512x8xf32>
    %cst_10 = arith.constant 0.000000e+00 : f32
    %14 = vector.broadcast %cst_10 : f32 to vector<64x8xf32>
    %15 = vector.extract_strided_slice %7 {offsets = [0, 0], sizes = [448, 8], strides = [1, 1]} : vector<512x8xf32> to vector<448x8xf32>
    %16 = tpu.concatenate %14, %15 in 0 : vector<64x8xf32>, vector<448x8xf32> -> vector<512x8xf32>
    %c1 = arith.constant 1 : index
    %c0_11 = arith.constant 0 : index
    %c0_12 = arith.constant 0 : index
    %17 = vector.load %arg5[%c1, %c0_11, %c0_12] : memref<9x512x8xf32, #tpu.memory_space<vmem>>, vector<1x512x8xf32>
    %18 = vector.shape_cast %17 : vector<1x512x8xf32> to vector<512x8xf32>
    %19 = arith.mulf %16, %18 : vector<512x8xf32>
    %cst_13 = arith.constant 0.000000e+00 : f32
    %20 = vector.broadcast %cst_13 : f32 to vector<56x8xf32>
    %21 = vector.extract_strided_slice %7 {offsets = [0, 0], sizes = [456, 8], strides = [1, 1]} : vector<512x8xf32> to vector<456x8xf32>
    %22 = tpu.concatenate %20, %21 in 0 : vector<56x8xf32>, vector<456x8xf32> -> vector<512x8xf32>
    %c2 = arith.constant 2 : index
    %c0_14 = arith.constant 0 : index
    %c0_15 = arith.constant 0 : index
    %23 = vector.load %arg5[%c2, %c0_14, %c0_15] : memref<9x512x8xf32, #tpu.memory_space<vmem>>, vector<1x512x8xf32>
    %24 = vector.shape_cast %23 : vector<1x512x8xf32> to vector<512x8xf32>
    %25 = arith.mulf %22, %24 : vector<512x8xf32>
    %cst_16 = arith.constant 0.000000e+00 : f32
    %26 = vector.broadcast %cst_16 : f32 to vector<8x8xf32>
    %27 = vector.extract_strided_slice %7 {offsets = [0, 0], sizes = [504, 8], strides = [1, 1]} : vector<512x8xf32> to vector<504x8xf32>
    %28 = tpu.concatenate %26, %27 in 0 : vector<8x8xf32>, vector<504x8xf32> -> vector<512x8xf32>
    %c3 = arith.constant 3 : index
    %c0_17 = arith.constant 0 : index
    %c0_18 = arith.constant 0 : index
    %29 = vector.load %arg5[%c3, %c0_17, %c0_18] : memref<9x512x8xf32, #tpu.memory_space<vmem>>, vector<1x512x8xf32>
    %30 = vector.shape_cast %29 : vector<1x512x8xf32> to vector<512x8xf32>
    %31 = arith.mulf %28, %30 : vector<512x8xf32>
    %c4 = arith.constant 4 : index
    %c0_19 = arith.constant 0 : index
    %c0_20 = arith.constant 0 : index
    %32 = vector.load %arg5[%c4, %c0_19, %c0_20] : memref<9x512x8xf32, #tpu.memory_space<vmem>>, vector<1x512x8xf32>
    %33 = vector.shape_cast %32 : vector<1x512x8xf32> to vector<512x8xf32>
    %34 = arith.mulf %7, %33 : vector<512x8xf32>
    %cst_21 = arith.constant 0.000000e+00 : f32
    %35 = vector.broadcast %cst_21 : f32 to vector<8x8xf32>
    %36 = vector.extract_strided_slice %7 {offsets = [8, 0], sizes = [504, 8], strides = [1, 1]} : vector<512x8xf32> to vector<504x8xf32>
    %37 = tpu.concatenate %36, %35 in 0 : vector<504x8xf32>, vector<8x8xf32> -> vector<512x8xf32>
    %c5 = arith.constant 5 : index
    %c0_22 = arith.constant 0 : index
    %c0_23 = arith.constant 0 : index
    %38 = vector.load %arg5[%c5, %c0_22, %c0_23] : memref<9x512x8xf32, #tpu.memory_space<vmem>>, vector<1x512x8xf32>
    %39 = vector.shape_cast %38 : vector<1x512x8xf32> to vector<512x8xf32>
    %40 = arith.mulf %37, %39 : vector<512x8xf32>
    %cst_24 = arith.constant 0.000000e+00 : f32
    %41 = vector.broadcast %cst_24 : f32 to vector<56x8xf32>
    %42 = vector.extract_strided_slice %7 {offsets = [56, 0], sizes = [456, 8], strides = [1, 1]} : vector<512x8xf32> to vector<456x8xf32>
    %43 = tpu.concatenate %42, %41 in 0 : vector<456x8xf32>, vector<56x8xf32> -> vector<512x8xf32>
    %c6 = arith.constant 6 : index
    %c0_25 = arith.constant 0 : index
    %c0_26 = arith.constant 0 : index
    %44 = vector.load %arg5[%c6, %c0_25, %c0_26] : memref<9x512x8xf32, #tpu.memory_space<vmem>>, vector<1x512x8xf32>
    %45 = vector.shape_cast %44 : vector<1x512x8xf32> to vector<512x8xf32>
    %46 = arith.mulf %43, %45 : vector<512x8xf32>
    %cst_27 = arith.constant 0.000000e+00 : f32
    %47 = vector.broadcast %cst_27 : f32 to vector<64x8xf32>
    %48 = vector.extract_strided_slice %7 {offsets = [64, 0], sizes = [448, 8], strides = [1, 1]} : vector<512x8xf32> to vector<448x8xf32>
    %49 = tpu.concatenate %48, %47 in 0 : vector<448x8xf32>, vector<64x8xf32> -> vector<512x8xf32>
    %c7 = arith.constant 7 : index
    %c0_28 = arith.constant 0 : index
    %c0_29 = arith.constant 0 : index
    %50 = vector.load %arg5[%c7, %c0_28, %c0_29] : memref<9x512x8xf32, #tpu.memory_space<vmem>>, vector<1x512x8xf32>
    %51 = vector.shape_cast %50 : vector<1x512x8xf32> to vector<512x8xf32>
    %52 = arith.mulf %49, %51 : vector<512x8xf32>
    %cst_30 = arith.constant 0.000000e+00 : f32
    %53 = vector.broadcast %cst_30 : f32 to vector<72x8xf32>
    %54 = vector.extract_strided_slice %7 {offsets = [72, 0], sizes = [440, 8], strides = [1, 1]} : vector<512x8xf32> to vector<440x8xf32>
    %55 = tpu.concatenate %54, %53 in 0 : vector<440x8xf32>, vector<72x8xf32> -> vector<512x8xf32>
    %c8 = arith.constant 8 : index
    %c0_31 = arith.constant 0 : index
    %c0_32 = arith.constant 0 : index
    %56 = vector.load %arg5[%c8, %c0_31, %c0_32] : memref<9x512x8xf32, #tpu.memory_space<vmem>>, vector<1x512x8xf32>
    %57 = vector.shape_cast %56 : vector<1x512x8xf32> to vector<512x8xf32>
    %58 = arith.mulf %55, %57 : vector<512x8xf32>
    %59 = tpu.concatenate %13, %19, %25, %31, %34, %40, %46, %52, %58 in 1 : vector<512x8xf32>, vector<512x8xf32>, vector<512x8xf32>, vector<512x8xf32>, vector<512x8xf32>, vector<512x8xf32>, vector<512x8xf32>, vector<512x8xf32>, vector<512x8xf32> -> vector<512x72xf32>
    %c0_33 = arith.constant 0 : index
    %c0_34 = arith.constant 0 : index
    %60 = vector.load %arg3[%c0_33, %c0_34] : memref<72x8xf32, #tpu.memory_space<vmem>>, vector<72x8xf32>
    %cst_35 = arith.constant dense<0.000000e+00> : vector<512x8xf32>
    %61 = tpu.matmul %59, %60, %cst_35 {dimension_numbers = #tpu.dot_dimension_numbers<[1], [0], [0], [1], [0, 0, 1, 1], [], []>} : vector<512x72xf32>, vector<72x8xf32>, vector<512x8xf32> -> vector<512x8xf32>
    %c0_36 = arith.constant 0 : index
    %c0_37 = arith.constant 0 : index
    %62 = vector.load %arg4[%c0_36, %c0_37] : memref<1x8xf32, #tpu.memory_space<vmem>>, vector<1x8xf32>
    %63 = vector.broadcast %62 : vector<1x8xf32> to vector<512x8xf32>
    %64 = arith.addf %61, %63 : vector<512x8xf32>
    %cst_38 = arith.constant 0.000000e+00 : f32
    %65 = vector.broadcast %cst_38 : f32 to vector<512x8xf32>
    %66 = arith.maximumf %64, %65 : vector<512x8xf32>
    %cst_39 = arith.constant 0.000000e+00 : f32
    %67 = vector.broadcast %cst_39 : f32 to vector<8x8xf32>
    %68 = vector.extract_strided_slice %66 {offsets = [8, 0], sizes = [504, 8], strides = [1, 1]} : vector<512x8xf32> to vector<504x8xf32>
    %69 = tpu.concatenate %68, %67 in 0 : vector<504x8xf32>, vector<8x8xf32> -> vector<512x8xf32>
    %70 = arith.maximumf %66, %69 : vector<512x8xf32>
    %cst_40 = arith.constant 0.000000e+00 : f32
    %71 = vector.broadcast %cst_40 : f32 to vector<64x8xf32>
    %72 = vector.extract_strided_slice %70 {offsets = [64, 0], sizes = [448, 8], strides = [1, 1]} : vector<512x8xf32> to vector<448x8xf32>
    %73 = tpu.concatenate %72, %71 in 0 : vector<448x8xf32>, vector<64x8xf32> -> vector<512x8xf32>
    %74 = arith.maximumf %70, %73 : vector<512x8xf32>
    %75 = vector.extract_strided_slice %74 {offsets = [0, 0], sizes = [8, 8], strides = [1, 1]} : vector<512x8xf32> to vector<8x8xf32>
    %76 = vector.extract_strided_slice %74 {offsets = [16, 0], sizes = [8, 8], strides = [1, 1]} : vector<512x8xf32> to vector<8x8xf32>
    %77 = vector.extract_strided_slice %74 {offsets = [32, 0], sizes = [8, 8], strides = [1, 1]} : vector<512x8xf32> to vector<8x8xf32>
    %78 = vector.extract_strided_slice %74 {offsets = [48, 0], sizes = [8, 8], strides = [1, 1]} : vector<512x8xf32> to vector<8x8xf32>
    %79 = vector.extract_strided_slice %74 {offsets = [128, 0], sizes = [8, 8], strides = [1, 1]} : vector<512x8xf32> to vector<8x8xf32>
    %80 = vector.extract_strided_slice %74 {offsets = [144, 0], sizes = [8, 8], strides = [1, 1]} : vector<512x8xf32> to vector<8x8xf32>
    %81 = vector.extract_strided_slice %74 {offsets = [160, 0], sizes = [8, 8], strides = [1, 1]} : vector<512x8xf32> to vector<8x8xf32>
    %82 = vector.extract_strided_slice %74 {offsets = [176, 0], sizes = [8, 8], strides = [1, 1]} : vector<512x8xf32> to vector<8x8xf32>
    %83 = vector.extract_strided_slice %74 {offsets = [256, 0], sizes = [8, 8], strides = [1, 1]} : vector<512x8xf32> to vector<8x8xf32>
    %84 = vector.extract_strided_slice %74 {offsets = [272, 0], sizes = [8, 8], strides = [1, 1]} : vector<512x8xf32> to vector<8x8xf32>
    %85 = vector.extract_strided_slice %74 {offsets = [288, 0], sizes = [8, 8], strides = [1, 1]} : vector<512x8xf32> to vector<8x8xf32>
    %86 = vector.extract_strided_slice %74 {offsets = [304, 0], sizes = [8, 8], strides = [1, 1]} : vector<512x8xf32> to vector<8x8xf32>
    %87 = vector.extract_strided_slice %74 {offsets = [384, 0], sizes = [8, 8], strides = [1, 1]} : vector<512x8xf32> to vector<8x8xf32>
    %88 = vector.extract_strided_slice %74 {offsets = [400, 0], sizes = [8, 8], strides = [1, 1]} : vector<512x8xf32> to vector<8x8xf32>
    %89 = vector.extract_strided_slice %74 {offsets = [416, 0], sizes = [8, 8], strides = [1, 1]} : vector<512x8xf32> to vector<8x8xf32>
    %90 = vector.extract_strided_slice %74 {offsets = [432, 0], sizes = [8, 8], strides = [1, 1]} : vector<512x8xf32> to vector<8x8xf32>
    %91 = tpu.concatenate %75, %76, %77, %78, %79, %80, %81, %82, %83, %84, %85, %86, %87, %88, %89, %90 in 1 : vector<8x8xf32>, vector<8x8xf32>, vector<8x8xf32>, vector<8x8xf32>, vector<8x8xf32>, vector<8x8xf32>, vector<8x8xf32>, vector<8x8xf32>, vector<8x8xf32>, vector<8x8xf32>, vector<8x8xf32>, vector<8x8xf32>, vector<8x8xf32>, vector<8x8xf32>, vector<8x8xf32>, vector<8x8xf32> -> vector<8x128xf32>
    %c0_41 = arith.constant 0 : index
    %c0_42 = arith.constant 0 : index
    %92 = vector.load %arg6[%c0_41, %c0_42] : memref<128x16xf32, #tpu.memory_space<vmem>>, vector<128x16xf32>
    %cst_43 = arith.constant dense<0.000000e+00> : vector<8x16xf32>
    %93 = tpu.matmul %91, %92, %cst_43 {dimension_numbers = #tpu.dot_dimension_numbers<[1], [0], [0], [1], [0, 0, 1, 1], [], []>} : vector<8x128xf32>, vector<128x16xf32>, vector<8x16xf32> -> vector<8x16xf32>
    %c0_44 = arith.constant 0 : index
    %c0_45 = arith.constant 0 : index
    %94 = vector.load %arg7[%c0_44, %c0_45] : memref<1x16xf32, #tpu.memory_space<vmem>>, vector<1x16xf32>
    %95 = vector.broadcast %94 : vector<1x16xf32> to vector<8x16xf32>
    %96 = arith.addf %93, %95 : vector<8x16xf32>
    %cst_46 = arith.constant 0.000000e+00 : f32
    %97 = vector.broadcast %cst_46 : f32 to vector<8x16xf32>
    %98 = arith.maximumf %96, %97 : vector<8x16xf32>
    %c0_47 = arith.constant 0 : index
    %c0_48 = arith.constant 0 : index
    %99 = vector.load %arg8[%c0_47, %c0_48] : memref<16x128xf32, #tpu.memory_space<vmem>>, vector<16x128xf32>
    %cst_49 = arith.constant dense<0.000000e+00> : vector<8x128xf32>
    %100 = tpu.matmul %98, %99, %cst_49 {dimension_numbers = #tpu.dot_dimension_numbers<[1], [0], [0], [1], [0, 0, 1, 1], [], []>} : vector<8x16xf32>, vector<16x128xf32>, vector<8x128xf32> -> vector<8x128xf32>
    %c0_50 = arith.constant 0 : index
    %c0_51 = arith.constant 0 : index
    %101 = vector.load %arg9[%c0_50, %c0_51] : memref<1x128xf32, #tpu.memory_space<vmem>>, vector<1x128xf32>
    %102 = vector.broadcast %101 : vector<1x128xf32> to vector<8x128xf32>
    %103 = arith.addf %100, %102 : vector<8x128xf32>
    %c0_52 = arith.constant 0 : index
    %c0_53 = arith.constant 0 : index
    %104 = vector.load %arg10[%c0_52, %c0_53] : memref<8x128xf32, #tpu.memory_space<vmem>>, vector<8x128xf32>
    tpu.vector_store %arg10[%c0_52, %c0_53], %103 {strides = array<i32>} : memref<8x128xf32, #tpu.memory_space<vmem>>, vector<8x128xf32>,
    return
  }
}

</mosaic_0001>

<bundles_post_ra>
// kernel: line_cnn_simple_forward.1
= control target key start
LH: loop header
LB: loop body
LE: loop exit
PB: predicated region body
PF: predicated region fallthrough
CT: control target
= control target key end

     0   :  { %vm302_vm0 = vcmask 1040384   ;;  %vm6620_vm1 = vmmov 1   ;;  %vm109_vm3 = vcmask 72704   ;;  %s6621_s14 = smov 8   ;;  %s11894_s0 = inlined_call_operand.vmem [shape: f32[512,9], index: 0, kind: input, shape index: {}]   ;;  %s11895_s1 = inlined_call_operand.vmem [shape: f32[9,8], index: 1, kind: input, shape index: {}]   ;;  %s11896_s2 = inlined_call_operand.vmem [shape: f32[1,8], index: 2, kind: input, shape index: {}]   ;;  %s11897_s3 = inlined_call_operand.vmem [shape: f32[72,8], index: 3, kind: input, shape index: {}]   ;;  %s11898_s4 = inlined_call_operand.vmem [shape: f32[1,8], index: 4, kind: input, shape index: {}]   ;;  %s11899_s5 = inlined_call_operand.vmem [shape: f32[9,512,8], index: 5, kind: input, shape index: {}]   ;;  %s11900_s6 = inlined_call_operand.vmem [shape: f32[128,16], index: 6, kind: input, shape index: {}]   ;;  %s11901_s7 = inlined_call_operand.vmem [shape: f32[1,16], index: 7, kind: input, shape index: {}]   ;;  %s11902_s8 = inlined_call_operand.vmem [shape: f32[16,128], index: 8, kind: input, shape index: {}]   ;;  %s11903_s9 = inlined_call_operand.vmem [shape: f32[1,128], index: 9, kind: input, shape index: {}]   ;;  %s11904_s10 = inlined_call_operand.hbm [shape: f32[8,128], index: 10, kind: output, shape index: {}]  }
   0x1   :  { %v100_v0 = vld [vmem:[%s11895_s1] sm:$0xff]  ;;  %v101_v1 = vld [vmem:[%s11895_s1 + $0x8] sm:$0x1]  ;;  %vm6523_vm2 = vmpackc.low %vm302_vm0, %vm6620_vm1 }
   0x2   :  { %v36_v2 = vld [vmem:[%s11894_s0] sm:$0xff]  ;;  %v6522_v3 = vpack.c.bf16 %v101_v1, %v100_v0  ;;  %v37_v4 = vld [vmem:[%s11894_s0 + $0x8] sm:$0xff]  ;;  %v38_v5 = vld [vmem:[%s11894_s0 + $0x10] sm:$0xff] }
   0x3   :  { %6270 = vmatprep.mubr.msk.f32.mxu0 %vm109_vm3, %v36_v2  ;;  %v5529_v6 = vld [vmem:[%s11899_s5 + $0x210] sm:$0xff]  ;;  %v5530_v7 = vld [vmem:[%s11899_s5 + $0x218] sm:$0xff]  ;;  %v5527_v9 = vld [vmem:[%s11899_s5 + $0x200] sm:$0xff] }
   0x4   :  { %6524 = vmatprep.subr.msk.bf16.mxu0 %vm6523_vm2, %v6522_v3  ;;  %v950_v8 = vmul.f32 0.0, %v5529_v6  ;;  %v39_v10 = vld [vmem:[%s11894_s0 + $0x18] sm:$0xff]  ;;  %v948_v11 = vmul.f32 0.0, %v5527_v9  ;;  %v5528_v12 = vld [vmem:[%s11899_s5 + $0x208] sm:$0xff]  ;;  %v40_v13 = vld [vmem:[%s11894_s0 + $0x20] sm:$0xff]  ;;  %v951_v14 = vmul.f32 0.0, %v5530_v7 }
   0x5   :  { %6527 = vmatpush3.bf16.msk.msra.mxu0 %vm6523_vm2, %v6522_v3  ;;  %v5532_v15 = vld [vmem:[%s11899_s5 + $0x228] sm:$0xff]  ;;  %v949_v16 = vmul.f32 0.0, %v5528_v12  ;;  %v5531_v17 = vld [vmem:[%s11899_s5 + $0x220] sm:$0xff]  ;;  %v42_v19 = vld [vmem:[%s11894_s0 + $0x30] sm:$0xff] }
   0x6   :  { %1983 = vrot.lane.b32.xlu1 %v950_v8, %s6621_s14  ;;  %1979 = vrot.lane.b32.xlu0 %v948_v11, %s6621_s14  ;;  %v41_v18 = vld [vmem:[%s11894_s0 + $0x28] sm:$0xff]  ;;  %v953_v20 = vmul.f32 0.0, %v5532_v15 }
   0x8   :  { %6271 = vmatmul.mubr.msk.f32.vlgmr.msra.gmra.mrb[0].mxu0 %vm109_vm3, %v37_v4 }
   0x9   :  { %6273 = vmatprep.mubr.msk.f32.mxu0 %vm109_vm3, %v38_v5 }
   0xa   :  { %1985 = vrot.lane.b32.xlu1 %v951_v14, %s6621_s14 }
   0xc   :  { %6274 = vmatmul.mubr.msk.f32.gmra.mrb[2].mxu0 %vm109_vm3, %v39_v10 }
   0xd   :  { %6276 = vmatprep.mubr.msk.f32.mxu0 %vm109_vm3, %v40_v13 }
   0xe   :  { %15 = vsyncpa [#allocation3], 0  ;;  %v5534_v21 = vld [vmem:[%s11899_s5 + $0x238] sm:$0xff]  ;;  %1981 = vrot.lane.b32.xlu0 %v949_v16, %s6621_s14  ;;  %v952_v22 = vmul.f32 0.0, %v5531_v17  ;;  %v5533_v23 = vld [vmem:[%s11899_s5 + $0x230] sm:$0xff]  ;;  %1989 = vrot.lane.b32.xlu1 %v953_v20, %s6621_s14  ;;  %s6622_s26 = smov 16  }
   0xf   :  { %v43_v24 = vld [vmem:[%s11894_s0 + $0x38] sm:$0xff]  ;;  %v44_v25 = vld [vmem:[%s11894_s0 + $0x40] sm:$0xff]  ;;  %v955_v26 = vmul.f32 0.0, %v5534_v21  ;;  %v5592_v27 = vld [vmem:[%s11899_s5 + $0x408] sm:$0xff]  ;;  %v954_v28 = vmul.f32 0.0, %v5533_v23  ;;  %s6623_s25 = smov 24  }
  0x10   :  { %6277 = vmatmul.mubr.msk.f32.gmra.mrb[4].mxu0 %vm109_vm3, %v41_v18  ;;  %v5591_v29 = vld [vmem:[%s11899_s5 + $0x400] sm:$0xff]  ;;  %v45_v30 = vld [vmem:[%s11894_s0 + $0x48] sm:$0xff]  ;;  %v46_v31 = vld [vmem:[%s11894_s0 + $0x50] sm:$0xff]  ;;  %v1078_v32 = vmul.f32 0.0, %v5592_v27  ;;  %s6624_s27 = smov 32   ;;  %s6625_s28 = smov 40  }
  0x11   :  { %6279 = vmatprep.mubr.msk.f32.mxu0 %vm109_vm3, %v42_v19  ;;  %v5594_v33 = vld [vmem:[%s11899_s5 + $0x418] sm:$0xff]  ;;  %v1077_v34 = vmul.f32 0.0, %v5591_v29  ;;  %v5593_v35 = vld [vmem:[%s11899_s5 + $0x410] sm:$0xff]  ;;  %v48_v37 = vld [vmem:[%s11894_s0 + $0x60] sm:$0xff]  ;;  %s6626_s29 = smov 48   ;;  %s6627_s16 = smov 56  }
  0x12   :  { %1987 = vrot.lane.b32.xlu0 %v952_v22, %s6621_s14  ;;  %1993 = vrot.lane.b32.xlu1 %v955_v26, %s6621_s14  ;;  %v47_v36 = vld [vmem:[%s11894_s0 + $0x58] sm:$0xff]  ;;  %v1080_v38 = vmul.f32 0.0, %v5594_v33  ;;  %v5596_v39 = vld [vmem:[%s11899_s5 + $0x428] sm:$0xff]  ;;  %v1079_v40 = vmul.f32 0.0, %v5593_v35  ;;  %s6628_s21 = smov 64   ;;  %vm3963_vm4 = vcmask 64512  }
  0x13   :  { %v5595_v41 = vld [vmem:[%s11899_s5 + $0x420] sm:$0xff]  ;;  %v49_v42 = vld [vmem:[%s11894_s0 + $0x68] sm:$0xff]  ;;  %v50_v43 = vld [vmem:[%s11894_s0 + $0x70] sm:$0xff]  ;;  %v1082_v44 = vmul.f32 0.0, %v5596_v39  ;;  %vm4028_vm5 = vcmask 130048   ;;  %vm4093_vm6 = vcmask 195584  }
  0x14   :  { %6280 = vmatmul.mubr.msk.f32.gmra.mrb[6].mxu0 %vm109_vm3, %v43_v24  ;;  %v5655_v45 = vld [vmem:[%s11899_s5 + $0x600] sm:$0xff]  ;;  %v1081_v46 = vmul.f32 0.0, %v5595_v41  ;;  %v5597_v47 = vld [vmem:[%s11899_s5 + $0x430] sm:$0xff]  ;;  %v51_v48 = vld [vmem:[%s11894_s0 + $0x78] sm:$0xff]  ;;  %vm4158_vm7 = vcmask 261120   ;;  %vm4223_vm8 = vcmask 326656  }
  0x15   :  { %6282 = vmatprep.mubr.msk.f32.mxu0 %vm109_vm3, %v44_v25  ;;  %v52_v49 = vld [vmem:[%s11894_s0 + $0x80] sm:$0xff]  ;;  %v1206_v50 = vmul.f32 0.0, %v5655_v45  ;;  %v1083_v51 = vmul.f32 0.0, %v5597_v47  ;;  %v53_v52 = vld [vmem:[%s11894_s0 + $0x88] sm:$0xff]  ;;  %v54_v53 = vld [vmem:[%s11894_s0 + $0x90] sm:$0xff]  ;;  %vm4288_vm9 = vcmask 392192  }
  0x16   :  { %1991 = vrot.lane.b32.xlu0 %v954_v28, %s6621_s14  ;;  %2237 = vrot.lane.b32.xlu1 %v1078_v32, %s6622_s26  ;;  %v55_v54 = vld [vmem:[%s11894_s0 + $0x98] sm:$0xff]  ;;  %v56_v55 = vld [vmem:[%s11894_s0 + $0xa0] sm:$0xff]  ;;  %vm4353_vm10 = vcmask 457728   ;;  %vm4418_vm11 = vcmask 523264   ;;  %vm4499_vm12 = vcmask 588800   ;;  %s6629_s11 = smov 72  }
  0x17   :  { %v57_v56 = vld [vmem:[%s11894_s0 + $0xa8] sm:$0xff]  ;;  %v58_v57 = vld [vmem:[%s11894_s0 + $0xb0] sm:$0xff]  ;;  %v59_v58 = vld [vmem:[%s11894_s0 + $0xb8] sm:$0xff]  ;;  %s6630_s17 = smov 80   ;;  %s6633_s20 = smov 96   ;;  %vm6636_vm13 = vmmov 0  }
  0x18   :  { %6283 = vmatmul.mubr.msk.f32.gmra.mrb[8].mxu0 %vm109_vm3, %v45_v30  ;;  %v60_v59 = vld [vmem:[%s11894_s0 + $0xc0] sm:$0xff]  ;;  %v61_v60 = vld [vmem:[%s11894_s0 + $0xc8] sm:$0xff]  ;;  %v62_v61 = vld [vmem:[%s11894_s0 + $0xd0] sm:$0xff]  ;;  %vm5258_vm14 = vcmask 654336   ;;  %vm5260_vm15 = vcmask 719872   ;;  %vm5262_vm0 = vcmask 785408  }
  0x19   :  { %6285 = vmatprep.mubr.msk.f32.mxu0 %vm109_vm3, %v46_v31  ;;  %v63_v62 = vld [vmem:[%s11894_s0 + $0xd8] sm:$0xff]  ;;  %v64_v63 = vld [vmem:[%s11894_s0 + $0xe0] sm:$0xff]  ;;  %v65_v0 = vld [vmem:[%s11894_s0 + $0xe8] sm:$0xff]  ;;  %vm5264_vm1 = vcmask 850944   ;;  %vm5266_vm2 = vcmask 916480   ;;  %s6639_s12 = smov [#allocation2]  }
  0x1a   :  { %2235 = vrot.lane.b32.xlu0 %v1077_v34, %s6622_s26  ;;  %2241 = vrot.lane.b32.xlu1 %v1080_v38, %s6622_s26  ;;  %v66_v1 = vld [vmem:[%s11894_s0 + $0xf0] sm:$0xff]  ;;  %v67_v2 = vld [vmem:[%s11894_s0 + $0xf8] sm:$0xff]  ;;  %s5453_s13 = sshll.u32 %s6639_s12, 4  ;;  %s5454_s13 = int_to_ptr.vmem [resolvable:$true] %s5453_s13 }
  0x1b   :  { %v68_v3 = vld [vmem:[%s11894_s0 + $0x100] sm:$0xff]  ;;  %v69_v4 = vld [vmem:[%s11894_s0 + $0x108] sm:$0xff]  ;;  %v70_v5 = vld [vmem:[%s11894_s0 + $0x110] sm:$0xff]  ;;  %p6601_p1 = scmp.lt.s32.totalorder %s5454_s13, %s5454_s13 }
  0x1c   :  { %6286 = vmatmul.mubr.msk.f32.gmra.mrb[10].mxu0 %vm109_vm3, %v47_v36  ;;  %v71_v6 = vld [vmem:[%s11894_s0 + $0x118] sm:$0xff]  ;;  %v72_v7 = vld [vmem:[%s11894_s0 + $0x120] sm:$0xff]  ;;  %v73_v8 = vld [vmem:[%s11894_s0 + $0x128] sm:$0xff] }
  0x1d   :  { %6288 = vmatprep.mubr.msk.f32.mxu0 %vm109_vm3, %v48_v37  ;;  %v74_v9 = vld [vmem:[%s11894_s0 + $0x130] sm:$0xff]  ;;  %v75_v10 = vld [vmem:[%s11894_s0 + $0x138] sm:$0xff]  ;;  %v76_v11 = vld [vmem:[%s11894_s0 + $0x140] sm:$0xff] }
  0x1e   :  { %2239 = vrot.lane.b32.xlu0 %v1079_v40, %s6622_s26  ;;  %2245 = vrot.lane.b32.xlu1 %v1082_v44, %s6622_s26  ;;  %v77_v12 = vld [vmem:[%s11894_s0 + $0x148] sm:$0xff]  ;;  %v78_v13 = vld [vmem:[%s11894_s0 + $0x150] sm:$0xff] }
  0x1f   :  { %v79_v14 = vld [vmem:[%s11894_s0 + $0x158] sm:$0xff]  ;;  %v80_v15 = vld [vmem:[%s11894_s0 + $0x160] sm:$0xff]  ;;  %v81_v16 = vld [vmem:[%s11894_s0 + $0x168] sm:$0xff] }
  0x20   :  { %6289 = vmatmul.mubr.msk.f32.gmra.mrb[12].mxu0 %vm109_vm3, %v49_v42  ;;  %v82_v17 = vld [vmem:[%s11894_s0 + $0x170] sm:$0xff]  ;;  %v83_v18 = vld [vmem:[%s11894_s0 + $0x178] sm:$0xff]  ;;  %v84_v19 = vld [vmem:[%s11894_s0 + $0x180] sm:$0xff] }
  0x21   :  { %6291 = vmatprep.mubr.msk.f32.mxu0 %vm109_vm3, %v50_v43  ;;  %v85_v20 = vld [vmem:[%s11894_s0 + $0x188] sm:$0xff]  ;;  %v86_v21 = vld [vmem:[%s11894_s0 + $0x190] sm:$0xff]  ;;  %v87_v22 = vld [vmem:[%s11894_s0 + $0x198] sm:$0xff] }
  0x22   :  { %2243 = vrot.lane.b32.xlu0 %v1081_v46, %s6622_s26  ;;  %2491 = vrot.lane.b32.xlu1 %v1206_v50, %s6623_s25  ;;  %v88_v23 = vld [vmem:[%s11894_s0 + $0x1a0] sm:$0xff]  ;;  %v89_v24 = vld [vmem:[%s11894_s0 + $0x1a8] sm:$0xff] }
  0x23   :  { %v90_v25 = vld [vmem:[%s11894_s0 + $0x1b0] sm:$0xff]  ;;  %v91_v26 = vld [vmem:[%s11894_s0 + $0x1b8] sm:$0xff]  ;;  %v6992_v27 = vld [vmem:[%s11896_s2] ss:$0 sm:$0xff] }
  0x24   :  { %6292 = vmatmul.mubr.msk.f32.gmra.mrb[14].mxu0 %vm109_vm3, %v51_v48  ;;  %v5599_v31 = vld [vmem:[%s11899_s5 + $0x440] sm:$0xff]  ;;  %v5536_v32 = vld [vmem:[%s11899_s5 + $0x248] sm:$0xff]  ;;  %v5657_v46 = vld [vmem:[%s11899_s5 + $0x610] sm:$0xff] }
  0x25   :  { %6294 = vmatprep.mubr.msk.f32.mxu0 %vm109_vm3, %v52_v49  ;;  %v5720_v39 = vld [vmem:[%s11899_s5 + $0x808] sm:$0xff]  ;;  %v5783_v40 = vld [vmem:[%s11899_s5 + $0xa00] sm:$0xff]  ;;  %v5598_v47 = vld [vmem:[%s11899_s5 + $0x438] sm:$0xff] }
  0x26   :  { %2247 = vrot.lane.b32.xlu0 %v1083_v51, %s6622_s26 }
  0x28   :  { %6295 = vmatmul.mubr.msk.f32.gmra.mrb[16].mxu0 %vm109_vm3, %v53_v52 }
  0x29   :  { %6297 = vmatprep.mubr.msk.f32.mxu0 %vm109_vm3, %v54_v53  ;;  %v5719_v53 = vld [vmem:[%s11899_s5 + $0x800] sm:$0xff] }
  0x2c   :  { %6298 = vmatmul.mubr.msk.f32.gmra.mrb[18].mxu0 %vm109_vm3, %v55_v54  ;;  %v5535_v54 = vld [vmem:[%s11899_s5 + $0x240] sm:$0xff] }
  0x2d   :  { %6300 = vmatprep.mubr.msk.f32.mxu0 %vm109_vm3, %v56_v55 }
  0x30   :  { %6301 = vmatmul.mubr.msk.f32.gmra.mrb[20].mxu0 %vm109_vm3, %v57_v56  ;;  %v5538_v56 = vld [vmem:[%s11899_s5 + $0x258] sm:$0xff] }
  0x31   :  { %6303 = vmatprep.mubr.msk.f32.mxu0 %vm109_vm3, %v58_v57 }
  0x34   :  { %6304 = vmatmul.mubr.msk.f32.gmra.mrb[22].mxu0 %vm109_vm3, %v59_v58 }
  0x35   :  { %6306 = vmatprep.mubr.msk.f32.mxu0 %vm109_vm3, %v60_v59 }
  0x38   :  { %6307 = vmatmul.mubr.msk.f32.gmra.mrb[24].mxu0 %vm109_vm3, %v61_v60 }
  0x39   :  { %6309 = vmatprep.mubr.msk.f32.mxu0 %vm109_vm3, %v62_v61  ;;  %v5656_v61 = vld [vmem:[%s11899_s5 + $0x608] sm:$0xff] }
  0x3c   :  { %6310 = vmatmul.mubr.msk.f32.gmra.mrb[26].mxu0 %vm109_vm3, %v63_v62 }
  0x3d   :  { %6312 = vmatprep.mubr.msk.f32.mxu0 %vm109_vm3, %v64_v63 }
  0x40   :  { %6313 = vmatmul.mubr.msk.f32.gmra.mrb[28].mxu0 %vm109_vm3, %v65_v0 }
  0x41   :  { %6315 = vmatprep.mubr.msk.f32.mxu0 %vm109_vm3, %v66_v1 }
  0x44   :  { %6316 = vmatmul.mubr.msk.f32.gmra.mrb[30].mxu0 %vm109_vm3, %v67_v2 }
  0x45   :  { %6318 = vmatprep.mubr.msk.f32.mxu0 %vm109_vm3, %v68_v3  ;;  %v5722_v3 = vld [vmem:[%s11899_s5 + $0x818] sm:$0xff] }
  0x48   :  { %6319 = vmatmul.mubr.msk.f32.gmra.mrb[32].mxu0 %vm109_vm3, %v69_v4  ;;  %v5601_v4 = vld [vmem:[%s11899_s5 + $0x450] sm:$0xff] }
  0x49   :  { %6321 = vmatprep.mubr.msk.f32.mxu0 %vm109_vm3, %v70_v5 }
  0x4c   :  { %6322 = vmatmul.mubr.msk.f32.gmra.mrb[34].mxu0 %vm109_vm3, %v71_v6 }
  0x4d   :  { %6324 = vmatprep.mubr.msk.f32.mxu0 %vm109_vm3, %v72_v7 }
  0x50   :  { %6325 = vmatmul.mubr.msk.f32.gmra.mrb[36].mxu0 %vm109_vm3, %v73_v8 }
  0x51   :  { %6327 = vmatprep.mubr.msk.f32.mxu0 %vm109_vm3, %v74_v9 }
  0x54   :  { %6328 = vmatmul.mubr.msk.f32.gmra.mrb[38].mxu0 %vm109_vm3, %v75_v10  ;;  %v5600_v10 = vld [vmem:[%s11899_s5 + $0x448] sm:$0xff] }
  0x55   :  { %6330 = vmatprep.mubr.msk.f32.mxu0 %vm109_vm3, %v76_v11  ;;  %v5785_v11 = vld [vmem:[%s11899_s5 + $0xa10] sm:$0xff] }
  0x58   :  { %6331 = vmatmul.mubr.msk.f32.gmra.mrb[40].mxu0 %vm109_vm3, %v77_v12 }
  0x59   :  { %6333 = vmatprep.mubr.msk.f32.mxu0 %vm109_vm3, %v78_v13 }
  0x5c   :  { %6334 = vmatmul.mubr.msk.f32.gmra.mrb[42].mxu0 %vm109_vm3, %v79_v14 }
  0x5d   :  { %6336 = vmatprep.mubr.msk.f32.mxu0 %vm109_vm3, %v80_v15 }
  0x60   :  { %6337 = vmatmul.mubr.msk.f32.gmra.mrb[44].mxu0 %vm109_vm3, %v81_v16 }
  0x61   :  { %6339 = vmatprep.mubr.msk.f32.mxu0 %vm109_vm3, %v82_v17  ;;  %v5658_v17 = vld [vmem:[%s11899_s5 + $0x618] sm:$0xff] }
  0x64   :  { %6340 = vmatmul.mubr.msk.f32.gmra.mrb[46].mxu0 %vm109_vm3, %v83_v18  ;;  %v5659_v18 = vld [vmem:[%s11899_s5 + $0x620] sm:$0xff] }
  0x65   :  { %6342 = vmatprep.mubr.msk.f32.mxu0 %vm109_vm3, %v84_v19 }
  0x68   :  { %6343 = vmatmul.mubr.msk.f32.gmra.mrb[48].mxu0 %vm109_vm3, %v85_v20  ;;  %v5540_v20 = vld [vmem:[%s11899_s5 + $0x268] sm:$0xff] }
  0x69   :  { %6345 = vmatprep.mubr.msk.f32.mxu0 %vm109_vm3, %v86_v21 }
  0x6c   :  { %6346 = vmatmul.mubr.msk.f32.gmra.mrb[50].mxu0 %vm109_vm3, %v87_v22 }
  0x6d   :  { %6348 = vmatprep.mubr.msk.f32.mxu0 %vm109_vm3, %v88_v23  ;;  %v5537_v23 = vld [vmem:[%s11899_s5 + $0x250] sm:$0xff] }
  0x70   :  { %6349 = vmatmul.mubr.msk.f32.gmra.mrb[52].mxu0 %vm109_vm3, %v89_v24 }
  0x71   :  { %6351 = vmatprep.mubr.msk.f32.mxu0 %vm109_vm3, %v90_v25 }
  0x74   :  { %6352 = vmatmul.mubr.msk.f32.gmra.mrb[54].mxu0 %vm109_vm3, %v91_v26 }
  0xdb   :  { %v6272_v28 = vpop.f32.mrb[0].mxu0 }
  0xdc   :  { %v378_v29 = vadd.f32 %v6272_v28, %v6992_v27  ;;  %v372_v30 = vpop.f32.mrb[1].mxu0  ;;  %v5724_v28 = vld [vmem:[%s11899_s5 + $0x828] sm:$0xff] }
  0xdd   :  { %v373_v35 = vadd.f32 %v6992_v27, %v372_v30 }
  0xde   :  { %v7001_v33 = vmax.f32 %v378_v29, 0.0  ;;  %v5784_v29 = vld [vmem:[%s11899_s5 + $0xa08] sm:$0xff] }
  0xdf   :  { %v6275_v34 = vpop.f32.mrb[2].mxu0  ;;  %v7014_v42 = vmax.f32 %v373_v35, 0.0  ;;  %v5721_v35 = vld [vmem:[%s11899_s5 + $0x810] sm:$0xff] }
  0xe0   :  { %11989 = vst [vmem:[#allocation5_spill] sm:$0xff] %v7001_v33  ;;  %v1085_v36 = vmul.f32 %v5599_v31, %v7001_v33  ;;  %v957_v37 = vmul.f32 %v5536_v32, %v7001_v33  ;;  %v382_v38 = vpop.f32.mrb[3].mxu0  ;;  %v1336_v43 = vmul.f32 %v5720_v39, %v7001_v33  ;;  %v1464_v44 = vmul.f32 %v5783_v40, %v7001_v33  ;;  %v5660_v39 = vld [vmem:[%s11899_s5 + $0x628] sm:$0xff]  ;;  %v5603_v40 = vld [vmem:[%s11899_s5 + $0x460] sm:$0xff] }
  0xe1   :  { %11990 = vst [vmem:[#allocation6_spill] sm:$0xff] %v7014_v42  ;;  %v388_v48 = vadd.f32 %v6275_v34, %v6992_v27  ;;  %v1208_v50 = vmul.f32 %v5657_v46, %v7001_v33  ;;  %v1084_v51 = vmul.f32 %v5598_v47, %v7014_v42  ;;  %v1335_v58 = vmul.f32 %v5719_v53, %v7014_v42  ;;  %v5602_v34 = vld [vmem:[%s11899_s5 + $0x458] sm:$0xff]  ;;  %v5787_v46 = vld [vmem:[%s11899_s5 + $0xa20] sm:$0xff] }
  0xe2   :  { %2251 = vrot.lane.b32.xlu0 %v1085_v36, %s6622_s26  ;;  %1997 = vrot.lane.b32.xlu1 %v957_v37, %s6621_s14  ;;  %v956_v59 = vmul.f32 %v5535_v54, %v7014_v42  ;;  %v383_v0 = vadd.f32 %v6992_v27, %v382_v38  ;;  %v1207_v1 = vmul.f32 %v5656_v61, %v7014_v42 }
  0xe3   :  { %v6278_v41 = vpop.f32.mrb[4].mxu0  ;;  %v7041_v55 = vmax.f32 %v388_v48, 0.0 }
  0xe4   :  { %v392_v45 = vpop.f32.mrb[5].mxu0  ;;  %v7074_v6 = vmax.f32 %v383_v0, 0.0  ;;  %v398_v12 = vadd.f32 %v6278_v41, %v6992_v27 }
  0xe5   :  { %11991 = vst [vmem:[#allocation7_spill] sm:$0xff] %v7041_v55  ;;  %v959_v62 = vmul.f32 %v5538_v56, %v7041_v55  ;;  %v1338_v7 = vmul.f32 %v5722_v3, %v7041_v55  ;;  %v1087_v8 = vmul.f32 %v5601_v4, %v7041_v55  ;;  %v1466_v15 = vmul.f32 %v5785_v11, %v7041_v55  ;;  %v5786_v3 = vld [vmem:[%s11899_s5 + $0xa18] sm:$0xff]  ;;  %v5723_v11 = vld [vmem:[%s11899_s5 + $0x820] sm:$0xff] }
  0xe6   :  { %2749 = vrot.lane.b32.xlu0 %v1336_v43, %s6624_s27  ;;  %3003 = vrot.lane.b32.xlu1 %v1464_v44, %s6625_s28  ;;  %11992 = vst [vmem:[#allocation8_spill] sm:$0xff] %v7074_v6  ;;  %v1086_v14 = vmul.f32 %v5600_v10, %v7074_v6  ;;  %v7103_v19 = vmax.f32 %v398_v12, 0.0  ;;  %v1209_v21 = vmul.f32 %v5658_v17, %v7074_v6  ;;  %v5542_v43 = vld [vmem:[%s11899_s5 + $0x278] sm:$0xff]  ;;  %v5789_v17 = vld [vmem:[%s11899_s5 + $0xa30] sm:$0xff] }
  0xe7   :  { %v7027_v49 = vpop.f32.mrb[6].mxu0  ;;  %v1210_v22 = vmul.f32 %v5659_v18, %v7041_v55  ;;  %v393_v25 = vadd.f32 %v6992_v27, %v392_v45  ;;  %v958_v26 = vmul.f32 %v5537_v23, %v7074_v6  ;;  %v1465_v32 = vmul.f32 %v5784_v29, %v7074_v6  ;;  %v5662_v10 = vld [vmem:[%s11899_s5 + $0x638] sm:$0xff]  ;;  %v5663_v23 = vld [vmem:[%s11899_s5 + $0x640] sm:$0xff] }
  0xe8   :  { %v7031_v52 = vpop.f32.mrb[7].mxu0  ;;  %11993 = vst [vmem:[#allocation9_spill] sm:$0xff] %v7103_v19  ;;  %v961_v24 = vmul.f32 %v5540_v20, %v7103_v19  ;;  %v1340_v31 = vmul.f32 %v5724_v28, %v7103_v19  ;;  %v408_v36 = vadd.f32 %v7027_v49, %v6992_v27  ;;  %v1337_v38 = vmul.f32 %v5721_v35, %v7074_v6  ;;  %v5847_v49 = vld [vmem:[%s11899_s5 + $0xc00] sm:$0xff] }
  0xe9   :  { %v7126_v30 = vmax.f32 %v393_v25, 0.0  ;;  %v1089_v45 = vmul.f32 %v5603_v40, %v7103_v19  ;;  %v1468_v48 = vmul.f32 %v5787_v46, %v7103_v19  ;;  %v403_v61 = vadd.f32 %v6992_v27, %v7031_v52  ;;  %v5848_v46 = vld [vmem:[%s11899_s5 + $0xc08] sm:$0xff]  ;;  %v5795_v6 = vld [vmem:[%s11899_s5 + $0xa60] sm:$0xff] }
  0xea   :  { %2495 = vrot.lane.b32.xlu0 %v1208_v50, %s6623_s25  ;;  %2249 = vrot.lane.b32.xlu1 %v1084_v51, %s6622_s26  ;;  %v7150_v41 = vmax.f32 %v408_v36, 0.0  ;;  %v5661_v50 = vld [vmem:[%s11899_s5 + $0x630] sm:$0xff] }
  0xeb   :  { %v7046_v57 = vpop.f32.mrb[8].mxu0  ;;  %11994 = vst [vmem:[#allocation10_spill] sm:$0xff] %v7126_v30  ;;  %v1088_v37 = vmul.f32 %v5602_v34, %v7126_v30  ;;  %v1211_v44 = vmul.f32 %v5660_v39, %v7126_v30  ;;  %v1212_v56 = vmul.f32 %v5661_v50, %v7103_v19  ;;  %v7200_v52 = vmax.f32 %v403_v61, 0.0  ;;  %v5788_v39 = vld [vmem:[%s11899_s5 + $0xa28] sm:$0xff]  ;;  %v5853_v19 = vld [vmem:[%s11899_s5 + $0xc30] sm:$0xff] }
  0xec   :  { %v7050_v60 = vpop.f32.mrb[9].mxu0  ;;  %11995 = vst [vmem:[#allocation11_spill] sm:$0xff] %v7150_v41  ;;  %v963_v47 = vmul.f32 %v5542_v43, %v7150_v41  ;;  %v1593_v54 = vmul.f32 %v5847_v49, %v7150_v41  ;;  %v418_v4 = vadd.f32 %v7046_v57, %v6992_v27  ;;  %v5544_v57 = vld [vmem:[%s11899_s5 + $0x288] sm:$0xff]  ;;  %v1470_v20 = vmul.f32 %v5789_v17, %v7150_v41  ;;  %v4483_v49 = vld [vmem:[%s11897_s3] sm:$0xff] }
  0xed   :  { %11996 = vst [vmem:[#allocation12_spill] sm:$0xff] %v7200_v52  ;;  %v1214_v29 = vmul.f32 %v5663_v23, %v7150_v41  ;;  %v413_v35 = vadd.f32 %v6992_v27, %v7050_v60  ;;  %v4484_v50 = vld [vmem:[%s11897_s3 + $0x8] sm:$0xff] }
  0xee   :  { %2747 = vrot.lane.b32.xlu1 %v1335_v58, %s6624_s27  ;;  %1995 = vrot.lane.b32.xlu0 %v956_v59, %s6621_s14  ;;  %v5726_v58 = vld [vmem:[%s11899_s5 + $0x838] sm:$0xff]  ;;  %v5539_v59 = vld [vmem:[%s11899_s5 + $0x260] sm:$0xff]  ;;  %v7212_v12 = vmax.f32 %v418_v4, 0.0 }
  0xef   :  { %v7058_v63 = vpop.f32.mrb[10].mxu0  ;;  %v960_v0 = vmul.f32 %v5539_v59, %v7126_v30  ;;  %v7268_v43 = vmax.f32 %v413_v35, 0.0  ;;  %v5664_v61 = vld [vmem:[%s11899_s5 + $0x648] sm:$0xff]  ;;  %v4490_v35 = vld [vmem:[%s11897_s3 + $0x38] sm:$0xff] }
  0xf0   :  { %v7062_v2 = vpop.f32.mrb[11].mxu0  ;;  %11997 = vst [vmem:[#allocation13_spill] sm:$0xff] %v7212_v12  ;;  %v965_v18 = vmul.f32 %v5544_v57, %v7212_v12 }
  0xf1   :  { %11998 = vst [vmem:[#allocation14_spill] sm:$0xff] %v7268_v43 }
  0xf2   :  { %2001 = vrot.lane.b32.xlu1 %v959_v62, %s6621_s14  ;;  %2493 = vrot.lane.b32.xlu0 %v1207_v1, %s6623_s25  ;;  %v1342_v62 = vmul.f32 %v5726_v58, %v7150_v41  ;;  %v5605_v1 = vld [vmem:[%s11899_s5 + $0x470] sm:$0xff]  ;;  %v1594_v58 = vmul.f32 %v5848_v46, %v7268_v43 }
  0xf3   :  { %v7072_v5 = vpop.f32.mrb[12].mxu0 }
  0xf4   :  { %v7078_v9 = vpop.f32.mrb[13].mxu0 }
  0xf6   :  { %2753 = vrot.lane.b32.xlu1 %v1338_v7, %s6624_s27  ;;  %2255 = vrot.lane.b32.xlu0 %v1087_v8, %s6622_s26  ;;  %v1091_v7 = vmul.f32 %v5605_v1, %v7150_v41  ;;  %v1467_v8 = vmul.f32 %v5786_v3, %v7126_v30  ;;  %v4485_v1 = vld [vmem:[%s11897_s3 + $0x10] sm:$0xff]  ;;  %v4486_v3 = vld [vmem:[%s11897_s3 + $0x18] sm:$0xff] }
  0xf7   :  { %v7089_v13 = vpop.f32.mrb[14].mxu0 }
  0xf8   :  { %v7093_v16 = vpop.f32.mrb[15].mxu0 }
  0xfa   :  { %2253 = vrot.lane.b32.xlu1 %v1086_v14, %s6622_s26  ;;  %3007 = vrot.lane.b32.xlu0 %v1466_v15, %s6625_s28  ;;  %v1213_v14 = vmul.f32 %v5662_v10, %v7200_v52  ;;  %v1339_v15 = vmul.f32 %v5723_v11, %v7126_v30  ;;  %v6532_v10 = vpack.c.bf16 %v4486_v3, %v4485_v1 }
  0xfb   :  { %v7172_v51 = vpop.f32.mrb[16].mxu0  ;;  %v1215_v11 = vmul.f32 %v5664_v61, %v7268_v43 }
  0xfc   :  { %v7174_v53 = vpop.f32.mrb[17].mxu0 }
  0xfe   :  { %2497 = vrot.lane.b32.xlu1 %v1209_v21, %s6623_s25  ;;  %2499 = vrot.lane.b32.xlu0 %v1210_v22, %s6623_s25  ;;  %v7226_v21 = vpop.permute.xlu1 %1983  ;;  %v5912_v22 = vld [vmem:[%s11899_s5 + $0xe08] sm:$0xff] }
  0xff   :  { %v1723_v28 = vmul.f32 %v5912_v22, %v7212_v12 }
 0x102   :  { %2005 = vrot.lane.b32.xlu1 %v961_v24, %s6621_s14  ;;  %1999 = vrot.lane.b32.xlu0 %v958_v26, %s6621_s14  ;;  %v7236_v24 = vpop.f32.mrb[18].mxu0  ;;  %v7240_v26 = vpop.permute.xlu0 %1979 }
 0x103   :  { %v7238_v25 = vpop.f32.mrb[19].mxu0  ;;  %v7252_v34 = vpop.permute.xlu1 %1985 }
 0x106   :  { %2757 = vrot.lane.b32.xlu1 %v1340_v31, %s6624_s27  ;;  %3005 = vrot.lane.b32.xlu0 %v1465_v32, %s6625_s28  ;;  %v5849_v31 = vld [vmem:[%s11899_s5 + $0xc10] sm:$0xff]  ;;  %v7264_v40 = vpop.permute.xlu0 %1981 }
 0x107   :  { %v5541_v32 = vld [vmem:[%s11899_s5 + $0x270] sm:$0xff]  ;;  %v1595_v36 = vmul.f32 %v5849_v31, %v7212_v12  ;;  %v5791_v31 = vld [vmem:[%s11899_s5 + $0xa40] sm:$0xff] }
 0x10a   :  { %2257 = vrot.lane.b32.xlu1 %v1088_v37, %s6622_s26  ;;  %2751 = vrot.lane.b32.xlu0 %v1337_v38, %s6624_s27  ;;  %v962_v37 = vmul.f32 %v5541_v32, %v7200_v52  ;;  %v5728_v38 = vld [vmem:[%s11899_s5 + $0x848] sm:$0xff]  ;;  %v4489_v32 = vld [vmem:[%s11897_s3 + $0x30] sm:$0xff] }
 0x10b   :  { %v1344_v60 = vmul.f32 %v5728_v38, %v7212_v12  ;;  %v1472_v38 = vmul.f32 %v5791_v31, %v7212_v12 }
 0x10e   :  { %2501 = vrot.lane.b32.xlu1 %v1211_v44, %s6623_s25  ;;  %2259 = vrot.lane.b32.xlu0 %v1089_v45, %s6622_s26  ;;  %v1469_v44 = vmul.f32 %v5788_v39, %v7200_v52  ;;  %v7272_v45 = vpop.permute.xlu1 %1989  ;;  %v6540_v39 = vpack.c.bf16 %v4490_v35, %v4489_v32 }
 0x10f   :  { %11999 = vst [vmem:[#allocation15_spill] sm:$0xff] %v7272_v45 }
 0x112   :  { %2009 = vrot.lane.b32.xlu1 %v963_v47, %s6621_s14  ;;  %3011 = vrot.lane.b32.xlu0 %v1468_v48, %s6625_s28  ;;  %v5725_v47 = vld [vmem:[%s11899_s5 + $0x830] sm:$0xff]  ;;  %v428_v48 = vadd.f32 %v7058_v63, %v6992_v27  ;;  %v5604_v63 = vld [vmem:[%s11899_s5 + $0x468] sm:$0xff]  ;;  %v7312_v4 = vpop.permute.xlu1 %1993 }
 0x113   :  { %v1341_v59 = vmul.f32 %v5725_v47, %v7200_v52  ;;  %12001 = vst [vmem:[#allocation17_spill] sm:$0xff] %v7312_v4  ;;  %v1090_v57 = vmul.f32 %v5604_v63, %v7200_v52  ;;  %v4491_v47 = vld [vmem:[%s11897_s3 + $0x40] sm:$0xff]  ;;  %v423_v63 = vadd.f32 %v6992_v27, %v7062_v2 }
 0x116   :  { %3259 = vrot.lane.b32.xlu1 %v1593_v54, %s6626_s29  ;;  %2503 = vrot.lane.b32.xlu0 %v1212_v56, %s6623_s25  ;;  %v6528_v54 = vpack.c.bf16 %v4484_v50, %v4483_v49  ;;  %v7290_v56 = vpop.permute.xlu0 %1987  ;;  %v5730_v50 = vld [vmem:[%s11899_s5 + $0x858] sm:$0xff] }
 0x118   :  { %6529 = vmatprep.subr.bf16.mxu1 %v6528_v54 }
 0x119   :  { %6531 = vmatpush3.bf16.msra.mxu1 %v6528_v54  ;;  %v5543_v54 = vld [vmem:[%s11899_s5 + $0x280] sm:$0xff] }
 0x11a   :  { %2761 = vrot.lane.b32.xlu1 %v1342_v62, %s6624_s27  ;;  %2003 = vrot.lane.b32.xlu0 %v960_v0, %s6621_s14  ;;  %v7302_v62 = vmax.f32 %v428_v48, 0.0  ;;  %v7304_v0 = vpop.f32.mrb[20].mxu0  ;;  %v964_v3 = vmul.f32 %v5543_v54, %v7268_v43 }
 0x11b   :  { %6533 = vmatprep.subr.bf16.mxu1 %v6532_v10 }
 0x11c   :  { %12000 = vst [vmem:[#allocation16_spill] sm:$0xff] %v7302_v62  ;;  %v1346_v1 = vmul.f32 %v5730_v50, %v7302_v62 }
 0x11d   :  { %6535 = vmatpush3.bf16.msra.mxu1 %v6532_v10  ;;  %v5667_v10 = vld [vmem:[%s11899_s5 + $0x660] sm:$0xff] }
 0x11e   :  { %2263 = vrot.lane.b32.xlu1 %v1091_v7, %s6622_s26  ;;  %3009 = vrot.lane.b32.xlu0 %v1467_v8, %s6625_s28  ;;  %v5546_v7 = vld [vmem:[%s11899_s5 + $0x298] sm:$0xff]  ;;  %v7317_v8 = vpop.f32.mrb[21].mxu0 }
 0x11f   :  { %v967_v17 = vmul.f32 %v5546_v7, %v7302_v62 }
 0x122   :  { %2505 = vrot.lane.b32.xlu1 %v1213_v14, %s6623_s25  ;;  %2755 = vrot.lane.b32.xlu0 %v1339_v15, %s6624_s27  ;;  %v5975_v14 = vld [vmem:[%s11899_s5 + $0x1000] sm:$0xff]  ;;  %v7324_v15 = vpop.permute.xlu0 %1991 }
 0x123   :  { %12002 = vst [vmem:[#allocation18_spill] sm:$0xff] %v7324_v15  ;;  %v1851_v23 = vmul.f32 %v5975_v14, %v7212_v12 }
 0x126   :  { %2013 = vrot.lane.b32.xlu1 %v965_v18, %s6621_s14  ;;  %3015 = vrot.lane.b32.xlu0 %v1470_v20, %s6625_s28  ;;  %v4487_v18 = vld [vmem:[%s11897_s3 + $0x20] sm:$0xff]  ;;  %v4488_v20 = vld [vmem:[%s11897_s3 + $0x28] sm:$0xff] }
 0x127   :  { %v6536_v22 = vpack.c.bf16 %v4488_v20, %v4487_v18  ;;  %v1218_v18 = vmul.f32 %v5667_v10, %v7302_v62 }
 0x129   :  { %6537 = vmatprep.subr.bf16.mxu1 %v6536_v22 }
 0x12a   :  { %3517 = vrot.lane.b32.xlu1 %v1723_v28, %s6627_s16  ;;  %2507 = vrot.lane.b32.xlu0 %v1214_v29, %s6623_s25  ;;  %v7336_v28 = vpop.permute.xlu1 %2237  ;;  %v5914_v29 = vld [vmem:[%s11899_s5 + $0xe18] sm:$0xff] }
 0x12b   :  { %6539 = vmatpush3.bf16.msra.mxu1 %v6536_v22  ;;  %v5976_v22 = vld [vmem:[%s11899_s5 + $0x1008] sm:$0xff] }
 0x12c   :  { %6541 = vmatprep.subr.bf16.mxu1 %v6540_v39 }
 0x12e   :  { %3263 = vrot.lane.b32.xlu1 %v1595_v36, %s6626_s29  ;;  %2007 = vrot.lane.b32.xlu0 %v962_v37, %s6621_s14  ;;  %v7352_v36 = vpop.permute.xlu0 %2235  ;;  %v1725_v37 = vmul.f32 %v5914_v29, %v7302_v62  ;;  %v7364_v46 = vpop.permute.xlu1 %2241 }
 0x12f   :  { %6543 = vmatpush3.bf16.msra.mxu1 %v6540_v39  ;;  %v5850_v39 = vld [vmem:[%s11899_s5 + $0xc18] sm:$0xff] }
 0x130   :  { %6382 = vmatprep.subr.mxu1 %v4491_v47 }
 0x132   :  { %2765 = vrot.lane.b32.xlu1 %v1344_v60, %s6624_s27  ;;  %3013 = vrot.lane.b32.xlu0 %v1469_v44, %s6625_s28  ;;  %v5851_v60 = vld [vmem:[%s11899_s5 + $0xc20] sm:$0xff]  ;;  %v5665_v44 = vld [vmem:[%s11899_s5 + $0x650] sm:$0xff]  ;;  %v7389_v7 = vpop.permute.xlu1 %2245 }
 0x133   :  { %v1597_v48 = vmul.f32 %v5851_v60, %v7302_v62  ;;  %v1216_v49 = vmul.f32 %v5665_v44, %v7212_v12  ;;  %6383 = vmatpush3.msra.mxu1 %v4491_v47  ;;  %12003 = vst [vmem:[#allocation19_spill] sm:$0xff] %v7389_v7  ;;  %v5727_v60 = vld [vmem:[%s11899_s5 + $0x840] sm:$0xff]  ;;  %v438_v47 = vadd.f32 %v7072_v5, %v6992_v27 }
 0x135   :  { %v7457_v5 = vmax.f32 %v438_v47, 0.0 }
 0x136   :  { %3261 = vrot.lane.b32.xlu1 %v1594_v58, %s6626_s29  ;;  %2759 = vrot.lane.b32.xlu0 %v1341_v59, %s6624_s27  ;;  %v7377_v58 = vpop.f32.mrb[22].mxu0  ;;  %v7379_v59 = vpop.permute.xlu0 %2239 }
 0x137   :  { %v7383_v61 = vpop.f32.mrb[23].mxu0  ;;  %v7421_v32 = vpop.permute.xlu1 %2491  ;;  %12009 = vst [vmem:[#allocation25_spill] sm:$0xff] %v7457_v5 }
 0x13a   :  { %2509 = vrot.lane.b32.xlu1 %v1215_v11, %s6623_s25  ;;  %2261 = vrot.lane.b32.xlu0 %v1090_v57, %s6622_s26  ;;  %v5911_v11 = vld [vmem:[%s11899_s5 + $0xe00] sm:$0xff]  ;;  %v7397_v57 = vpop.f32.mrb[24].mxu0  ;;  %v7399_v14 = vpop.permute.xlu0 %2243 }
 0x13b   :  { %12004 = vst [vmem:[#allocation20_spill] sm:$0xff] %v7399_v14  ;;  %v7403_v2 = vpop.f32.mrb[25].mxu0  ;;  %v1722_v20 = vmul.f32 %v5911_v11, %v7268_v43 }
 0x13c   :  { %v7415_v29 = vpop.f32.mrb[26].mxu0 }
 0x13d   :  { %v7419_v31 = vpop.f32.mrb[27].mxu0 }
 0x13e   :  { %2017 = vrot.lane.b32.xlu1 %v967_v17, %s6621_s14  ;;  %3771 = vrot.lane.b32.xlu0 %v1851_v23, %s6628_s21  ;;  %v7405_v17 = vmax.f32 %v423_v63, 0.0  ;;  %v5790_v23 = vld [vmem:[%s11899_s5 + $0xa38] sm:$0xff]  ;;  %v7423_v35 = vpop.permute.xlu0 %2247  ;;  %v7433_v44 = vpop.f32.mrb[28].mxu0  ;;  %v1343_v63 = vmul.f32 %v5727_v60, %v7268_v43 }
 0x13f   :  { %12006 = vst [vmem:[#allocation22_spill] sm:$0xff] %v7423_v35  ;;  %v5852_v35 = vld [vmem:[%s11899_s5 + $0xc28] sm:$0xff] }
 0x140   :  { %12005 = vst [vmem:[#allocation21_spill] sm:$0xff] %v7405_v17  ;;  %v1596_v54 = vmul.f32 %v5850_v39, %v7405_v17 }
 0x142   :  { %3521 = vrot.lane.b32.xlu1 %v1725_v37, %s6627_s16  ;;  %3019 = vrot.lane.b32.xlu0 %v1472_v38, %s6625_s28  ;;  %v1852_v37 = vmul.f32 %v5976_v22, %v7405_v17  ;;  %v1471_v38 = vmul.f32 %v5790_v23, %v7268_v43 }
 0x146   :  { %3267 = vrot.lane.b32.xlu1 %v1597_v48, %s6626_s29  ;;  %2511 = vrot.lane.b32.xlu0 %v1216_v49, %s6623_s25  ;;  %v7439_v48 = vpop.f32.mrb[29].mxu0 }
 0x147   :  { %v7453_v10 = vpop.f32.mrb[30].mxu0 }
 0x148   :  { %v7459_v11 = vpop.f32.mrb[31].mxu0 }
 0x149   :  { %v7473_v39 = vpop.f32.mrb[32].mxu0 }
 0x14a   :  { %2769 = vrot.lane.b32.xlu1 %v1346_v1, %s6624_s27  ;;  %2011 = vrot.lane.b32.xlu0 %v964_v3, %s6621_s14  ;;  %v5666_v1 = vld [vmem:[%s11899_s5 + $0x658] sm:$0xff]  ;;  %v7478_v47 = vpop.f32.mrb[33].mxu0 }
 0x14b   :  { %v5606_v3 = vld [vmem:[%s11899_s5 + $0x478] sm:$0xff]  ;;  %v1217_v23 = vmul.f32 %v5666_v1, %v7405_v17 }
 0x14e   :  { %2515 = vrot.lane.b32.xlu1 %v1218_v18, %s6623_s25  ;;  %3515 = vrot.lane.b32.xlu0 %v1722_v20, %s6627_s16  ;;  %v5548_v18 = vld [vmem:[%s11899_s5 + $0x2a8] sm:$0xff] }
 0x14f   :  { %v969_v60 = vmul.f32 %v5548_v18, %v7457_v5 }
 0x152   :  { %3773 = vrot.lane.b32.xlu1 %v1852_v37, %s6628_s21  ;;  %3017 = vrot.lane.b32.xlu0 %v1471_v38, %s6625_s28  ;;  %v1092_v37 = vmul.f32 %v5606_v3, %v7268_v43  ;;  %v5977_v38 = vld [vmem:[%s11899_s5 + $0x1010] sm:$0xff]  ;;  %v5916_v3 = vld [vmem:[%s11899_s5 + $0xe28] sm:$0xff]  ;;  %v7491_v43 = vpop.f32.mrb[34].mxu0 }
 0x153   :  { %v1853_v1 = vmul.f32 %v5977_v38, %v7302_v62  ;;  %v7495_v18 = vpop.f32.mrb[35].mxu0  ;;  %v1727_v38 = vmul.f32 %v5916_v3, %v7457_v5 }
 0x154   :  { %v7441_v49 = vpop.permute.xlu0 %2251  ;;  %v7443_v50 = vpop.permute.xlu1 %1997 }
 0x155   :  { %12007 = vst [vmem:[#allocation23_spill] sm:$0xff] %v7441_v49  ;;  %12008 = vst [vmem:[#allocation24_spill] sm:$0xff] %v7443_v50  ;;  %v7509_v30 = vpop.f32.mrb[36].mxu0  ;;  %v1476_v50 = vmul.f32 %v5795_v6, %v7457_v5  ;;  %v5669_v49 = vld [vmem:[%s11899_s5 + $0x670] sm:$0xff] }
 0x156   :  { %3265 = vrot.lane.b32.xlu1 %v1596_v54, %s6626_s29  ;;  %2763 = vrot.lane.b32.xlu0 %v1343_v63, %s6624_s27 }
 0x158   :  { %v7464_v20 = vpop.permute.xlu0 %2749  ;;  %v7466_v22 = vpop.permute.xlu1 %3003 }
 0x15a   :  { %2513 = vrot.lane.b32.xlu1 %v1217_v23, %s6623_s25  ;;  %2265 = vrot.lane.b32.xlu0 %v1092_v37, %s6622_s26  ;;  %v5793_v23 = vld [vmem:[%s11899_s5 + $0xa50] sm:$0xff] }
 0x15b   :  { %v1474_v52 = vmul.f32 %v5793_v23, %v7302_v62  ;;  %v1599_v23 = vmul.f32 %v5853_v19, %v7457_v5  ;;  %v433_v19 = vadd.f32 %v6992_v27, %v7078_v9 }
 0x15c   :  { %v7480_v54 = vpop.permute.xlu0 %2495  ;;  %v7482_v63 = vpop.permute.xlu1 %2249 }
 0x15d   :  { %12010 = vst [vmem:[#allocation26_spill] sm:$0xff] %v7482_v63  ;;  %v5978_v63 = vld [vmem:[%s11899_s5 + $0x1018] sm:$0xff] }
 0x15e   :  { %2021 = vrot.lane.b32.xlu1 %v969_v60, %s6621_s14  ;;  %3775 = vrot.lane.b32.xlu0 %v1853_v1, %s6628_s21  ;;  %v5545_v60 = vld [vmem:[%s11899_s5 + $0x290] sm:$0xff]  ;;  %v7513_v1 = vpop.f32.mrb[37].mxu0 }
 0x15f   :  { %v966_v62 = vmul.f32 %v5545_v60, %v7405_v17  ;;  %v7527_v33 = vpop.f32.mrb[38].mxu0 }
 0x160   :  { %v7497_v37 = vpop.permute.xlu1 %2747  ;;  %v7499_v41 = vpop.permute.xlu0 %1995 }
 0x161   :  { %12011 = vst [vmem:[#allocation27_spill] sm:$0xff] %v7499_v41  ;;  %v1220_v41 = vmul.f32 %v5669_v49, %v7457_v5 }
 0x162   :  { %3525 = vrot.lane.b32.xlu1 %v1727_v38, %s6627_s16  ;;  %3023 = vrot.lane.b32.xlu0 %v1474_v52, %s6625_s28  ;;  %v5913_v38 = vld [vmem:[%s11899_s5 + $0xe10] sm:$0xff]  ;;  %v7531_v52 = vpop.f32.mrb[39].mxu0 }
 0x163   :  { %v1724_v42 = vmul.f32 %v5913_v38, %v7405_v17 }
 0x164   :  { %v7515_v55 = vpop.permute.xlu1 %2001  ;;  %v7517_v3 = vpop.permute.xlu0 %2493 }
 0x165   :  { %12012 = vst [vmem:[#allocation28_spill] sm:$0xff] %v7515_v55 }
 0x166   :  { %3271 = vrot.lane.b32.xlu1 %v1599_v23, %s6626_s29  ;;  %2015 = vrot.lane.b32.xlu0 %v966_v62, %s6621_s14  ;;  %v5792_v62 = vld [vmem:[%s11899_s5 + $0xa48] sm:$0xff]  ;;  %v7547_v23 = vpop.f32.mrb[40].mxu0 }
 0x167   :  { %v7551_v9 = vpop.f32.mrb[41].mxu0  ;;  %v1473_v12 = vmul.f32 %v5792_v62, %v7405_v17 }
 0x168   :  { %v7535_v60 = vpop.permute.xlu1 %2753  ;;  %v7537_v55 = vpop.permute.xlu0 %2255 }
 0x169   :  { %12013 = vst [vmem:[#allocation29_spill] sm:$0xff] %v7537_v55  ;;  %v7553_v55 = vmax.f32 %v433_v19, 0.0 }
 0x16a   :  { %3027 = vrot.lane.b32.xlu1 %v1476_v50, %s6625_s28  ;;  %3519 = vrot.lane.b32.xlu0 %v1724_v42, %s6627_s16  ;;  %v5729_v42 = vld [vmem:[%s11899_s5 + $0x850] sm:$0xff]  ;;  %v7567_v50 = vpop.f32.mrb[42].mxu0 }
 0x16b   :  { %12014 = vst [vmem:[#allocation30_spill] sm:$0xff] %v7553_v55  ;;  %v7571_v19 = vpop.f32.mrb[43].mxu0  ;;  %v1854_v62 = vmul.f32 %v5978_v63, %v7553_v55  ;;  %v1345_v4 = vmul.f32 %v5729_v42, %v7405_v17  ;;  %v1598_v7 = vmul.f32 %v5852_v35, %v7553_v55  ;;  %v5550_v35 = vld [vmem:[%s11899_s5 + $0x2b8] sm:$0xff] }
 0x16c   :  { %v7555_v6 = vpop.permute.xlu1 %2253  ;;  %v7557_v38 = vpop.permute.xlu0 %3007  ;;  %12016 = vst [vmem:[#allocation32_spill] sm:$0xff] %v7571_v19  ;;  %v5984_v19 = vld [vmem:[%s11899_s5 + $0x1048] sm:$0xff] }
 0x16d   :  { %12015 = vst [vmem:[#allocation31_spill] sm:$0xff] %v7555_v6  ;;  %v7585_v15 = vpop.f32.mrb[44].mxu0 }
 0x16e   :  { %2519 = vrot.lane.b32.xlu1 %v1220_v41, %s6623_s25  ;;  %3021 = vrot.lane.b32.xlu0 %v1473_v12, %s6625_s28  ;;  %v5979_v41 = vld [vmem:[%s11899_s5 + $0x1020] sm:$0xff]  ;;  %12018 = vst [vmem:[#allocation34_spill] sm:$0xff] %v7585_v15  ;;  %v448_v12 = vadd.f32 %v7089_v13, %v6992_v27  ;;  %v7591_v63 = vpop.f32.mrb[45].mxu0 }
 0x16f   :  { %12019 = vst [vmem:[#allocation35_spill] sm:$0xff] %v7591_v63  ;;  %v1855_v45 = vmul.f32 %v5979_v41, %v7457_v5 }
 0x170   :  { %v7573_v6 = vpop.permute.xlu1 %2497  ;;  %v7575_v49 = vpop.permute.xlu0 %2499  ;;  %v7609_v13 = vmax.f32 %v448_v12, 0.0 }
 0x171   :  { %12017 = vst [vmem:[#allocation33_spill] sm:$0xff] %v7575_v49  ;;  %v5731_v49 = vld [vmem:[%s11899_s5 + $0x860] sm:$0xff] }
 0x172   :  { %3777 = vrot.lane.b32.xlu1 %v1854_v62, %s6628_s21  ;;  %2767 = vrot.lane.b32.xlu0 %v1345_v4, %s6624_s27  ;;  %v5732_v4 = vld [vmem:[%s11899_s5 + $0x868] sm:$0xff]  ;;  %v7605_v62 = vpop.f32.mrb[46].mxu0  ;;  %12023 = vst [vmem:[#allocation39_spill] sm:$0xff] %v7609_v13  ;;  %v1347_v63 = vmul.f32 %v5731_v49, %v7553_v55  ;;  %v971_v12 = vmul.f32 %v5550_v35, %v7609_v13 }
 0x173   :  { %12022 = vst [vmem:[#allocation38_spill] sm:$0xff] %v7605_v62  ;;  %v1348_v62 = vmul.f32 %v5732_v4, %v7457_v5  ;;  %v5918_v4 = vld [vmem:[%s11899_s5 + $0xe38] sm:$0xff] }
 0x174   :  { %v7593_v42 = vpop.permute.xlu1 %2005  ;;  %v7595_v17 = vpop.permute.xlu0 %1999 }
 0x175   :  { %12020 = vst [vmem:[#allocation36_spill] sm:$0xff] %v7593_v42  ;;  %12021 = vst [vmem:[#allocation37_spill] sm:$0xff] %v7595_v17  ;;  %v7611_v42 = vpop.f32.mrb[47].mxu0 }
 0x176   :  { %3269 = vrot.lane.b32.xlu1 %v1598_v7, %s6626_s29  ;;  %3779 = vrot.lane.b32.xlu0 %v1855_v45, %s6628_s21  ;;  %12024 = vst [vmem:[#allocation40_spill] sm:$0xff] %v7611_v42  ;;  %v5547_v45 = vld [vmem:[%s11899_s5 + $0x2a0] sm:$0xff]  ;;  %v7625_v7 = vpop.f32.mrb[48].mxu0 }
 0x177   :  { %12026 = vst [vmem:[#allocation42_spill] sm:$0xff] %v7625_v7  ;;  %v7630_v42 = vpop.f32.mrb[49].mxu0  ;;  %v968_v49 = vmul.f32 %v5547_v45, %v7553_v55  ;;  %v1729_v45 = vmul.f32 %v5918_v4, %v7609_v13  ;;  %v5855_v7 = vld [vmem:[%s11899_s5 + $0xc40] sm:$0xff]  ;;  %v443_v4 = vadd.f32 %v6992_v27, %v7093_v16 }
 0x178   :  { %v7616_v41 = vpop.permute.xlu1 %2757  ;;  %v7618_v17 = vpop.permute.xlu0 %3005  ;;  %12027 = vst [vmem:[#allocation43_spill] sm:$0xff] %v7630_v42 }
 0x179   :  { %12025 = vst [vmem:[#allocation41_spill] sm:$0xff] %v7616_v41  ;;  %v7643_v5 = vpop.f32.mrb[50].mxu0 }
 0x17a   :  { %2771 = vrot.lane.b32.xlu1 %v1347_v63, %s6624_s27  ;;  %2773 = vrot.lane.b32.xlu0 %v1348_v62, %s6624_s27  ;;  %v5915_v63 = vld [vmem:[%s11899_s5 + $0xe20] sm:$0xff]  ;;  %12029 = vst [vmem:[#allocation45_spill] sm:$0xff] %v7643_v5  ;;  %v7647_v62 = vpop.f32.mrb[51].mxu0 }
 0x17b   :  { %12030 = vst [vmem:[#allocation46_spill] sm:$0xff] %v7647_v62  ;;  %v1726_v42 = vmul.f32 %v5915_v63, %v7553_v55  ;;  %v7661_v5 = vpop.f32.mrb[52].mxu0  ;;  %v1601_v62 = vmul.f32 %v5855_v7, %v7609_v13 }
 0x17c   :  { %v7632_v41 = vpop.permute.xlu1 %2257  ;;  %v7634_v15 = vpop.permute.xlu0 %2751  ;;  %12033 = vst [vmem:[#allocation49_spill] sm:$0xff] %v7661_v5  ;;  %v5797_v5 = vld [vmem:[%s11899_s5 + $0xa70] sm:$0xff] }
 0x17d   :  { %12028 = vst [vmem:[#allocation44_spill] sm:$0xff] %v7632_v41 }
 0x17e   :  { %2025 = vrot.lane.b32.xlu1 %v971_v12, %s6621_s14  ;;  %2019 = vrot.lane.b32.xlu0 %v968_v49, %s6621_s14  ;;  %v5794_v12 = vld [vmem:[%s11899_s5 + $0xa58] sm:$0xff]  ;;  %v7665_v49 = vpop.f32.mrb[53].mxu0 }
 0x17f   :  { %12034 = vst [vmem:[#allocation50_spill] sm:$0xff] %v7665_v49  ;;  %v1478_v49 = vmul.f32 %v5797_v5, %v7609_v13 }
 0x180   :  { %v7649_v35 = vpop.permute.xlu1 %2501  ;;  %v7651_v41 = vpop.permute.xlu0 %2259 }
 0x181   :  { %12031 = vst [vmem:[#allocation47_spill] sm:$0xff] %v7649_v35  ;;  %12032 = vst [vmem:[#allocation48_spill] sm:$0xff] %v7651_v41  ;;  %v1475_v35 = vmul.f32 %v5794_v12, %v7553_v55 }
 0x182   :  { %3529 = vrot.lane.b32.xlu1 %v1729_v45, %s6627_s16  ;;  %3523 = vrot.lane.b32.xlu0 %v1726_v42, %s6627_s16  ;;  %v5668_v42 = vld [vmem:[%s11899_s5 + $0x668] sm:$0xff]  ;;  %v7681_v45 = vpop.f32.mrb[54].mxu0 }
 0x183   :  { %12037 = vst [vmem:[#allocation53_spill] sm:$0xff] %v7681_v45  ;;  %v7685_v16 = vpop.f32.mrb[55].mxu0  ;;  %v5980_v45 = vld [vmem:[%s11899_s5 + $0x1028] sm:$0xff] }
 0x184   :  { %v7669_v63 = vpop.permute.xlu1 %2009  ;;  %v7671_v41 = vpop.permute.xlu0 %3011  ;;  %12038 = vst [vmem:[#allocation54_spill] sm:$0xff] %v7685_v16 }
 0x185   :  { %12035 = vst [vmem:[#allocation51_spill] sm:$0xff] %v7669_v63  ;;  %12036 = vst [vmem:[#allocation52_spill] sm:$0xff] %v7671_v41  ;;  %v7687_v63 = vmax.f32 %v443_v4, 0.0  ;;  %v1219_v41 = vmul.f32 %v5668_v42, %v7553_v55  ;;  %v5854_v55 = vld [vmem:[%s11899_s5 + $0xc38] sm:$0xff] }
 0x186   :  { %3275 = vrot.lane.b32.xlu1 %v1601_v62, %s6626_s29  ;;  %3025 = vrot.lane.b32.xlu0 %v1475_v35, %s6625_s28  ;;  %v5981_v62 = vld [vmem:[%s11899_s5 + $0x1030] sm:$0xff] }
 0x187   :  { %12039 = vst [vmem:[#allocation55_spill] sm:$0xff] %v7687_v63  ;;  %v1856_v5 = vmul.f32 %v5980_v45, %v7687_v63  ;;  %v1857_v42 = vmul.f32 %v5981_v62, %v7609_v13  ;;  %v1600_v62 = vmul.f32 %v5854_v55, %v7687_v63  ;;  %v5552_v55 = vld [vmem:[%s11899_s5 + $0x2c8] sm:$0xff] }
 0x188   :  { %v7689_v7 = vpop.permute.xlu1 %3259  ;;  %v7691_v12 = vpop.permute.xlu0 %2503 }
 0x189   :  { %12040 = vst [vmem:[#allocation56_spill] sm:$0xff] %v7691_v12  ;;  %v5734_v12 = vld [vmem:[%s11899_s5 + $0x878] sm:$0xff] }
 0x18a   :  { %3031 = vrot.lane.b32.xlu1 %v1478_v49, %s6625_s28  ;;  %2517 = vrot.lane.b32.xlu0 %v1219_v41, %s6623_s25  ;;  %v458_v41 = vadd.f32 %v7172_v51, %v6992_v27 }
 0x18c   :  { %v7703_v35 = vpop.permute.xlu1 %2761  ;;  %v7705_v4 = vpop.permute.xlu0 %2003  ;;  %v7733_v51 = vmax.f32 %v458_v41, 0.0 }
 0x18d   :  { %12041 = vst [vmem:[#allocation57_spill] sm:$0xff] %v7703_v35  ;;  %12042 = vst [vmem:[#allocation58_spill] sm:$0xff] %v7705_v4  ;;  %v1350_v4 = vmul.f32 %v5734_v12, %v7609_v13  ;;  %v5733_v35 = vld [vmem:[%s11899_s5 + $0x870] sm:$0xff] }
 0x18e   :  { %3781 = vrot.lane.b32.xlu1 %v1856_v5, %s6628_s21  ;;  %3783 = vrot.lane.b32.xlu0 %v1857_v42, %s6628_s21  ;;  %v5549_v5 = vld [vmem:[%s11899_s5 + $0x2b0] sm:$0xff]  ;;  %12044 = vst [vmem:[#allocation60_spill] sm:$0xff] %v7733_v51 }
 0x18f   :  { %v970_v13 = vmul.f32 %v5549_v5, %v7687_v63  ;;  %v5796_v5 = vld [vmem:[%s11899_s5 + $0xa68] sm:$0xff] }
 0x190   :  { %v7719_v49 = vpop.permute.xlu1 %2263  ;;  %v7721_v45 = vpop.permute.xlu0 %3009 }
 0x191   :  { %12043 = vst [vmem:[#allocation59_spill] sm:$0xff] %v7719_v49  ;;  %v1349_v49 = vmul.f32 %v5733_v35, %v7687_v63  ;;  %v5920_v35 = vld [vmem:[%s11899_s5 + $0xe48] sm:$0xff] }
 0x192   :  { %3273 = vrot.lane.b32.xlu1 %v1600_v62, %s6626_s29  ;;  %2777 = vrot.lane.b32.xlu0 %v1350_v4, %s6624_s27  ;;  %v5917_v62 = vld [vmem:[%s11899_s5 + $0xe30] sm:$0xff]  ;;  %v973_v4 = vmul.f32 %v5552_v55, %v7733_v51 }
 0x194   :  { %v7738_v42 = vpop.permute.xlu1 %2505  ;;  %v7740_v12 = vpop.permute.xlu0 %2755 }
 0x195   :  { %12045 = vst [vmem:[#allocation61_spill] sm:$0xff] %v7738_v42  ;;  %12046 = vst [vmem:[#allocation62_spill] sm:$0xff] %v7740_v12  ;;  %v1728_v42 = vmul.f32 %v5917_v62, %v7687_v63  ;;  %v1731_v62 = vmul.f32 %v5920_v35, %v7733_v51  ;;  %v5982_v12 = vld [vmem:[%s11899_s5 + $0x1038] sm:$0xff] }
 0x196   :  { %2775 = vrot.lane.b32.xlu1 %v1349_v49, %s6624_s27  ;;  %2023 = vrot.lane.b32.xlu0 %v970_v13, %s6621_s14  ;;  %v453_v13 = vadd.f32 %v6992_v27, %v7174_v53 }
 0x198   :  { %v7750_v41 = vpop.permute.xlu1 %2013  ;;  %v7752_v16 = vpop.permute.xlu0 %3015  ;;  %v7779_v53 = vmax.f32 %v453_v13, 0.0 }
 0x199   :  { %12047 = vst [vmem:[#allocation63_spill] sm:$0xff] %v7750_v41  ;;  %12048 = vst [vmem:[#allocation64_spill] sm:$0xff] %v7752_v16  ;;  %v1477_v41 = vmul.f32 %v5796_v5, %v7687_v63  ;;  %v5857_v16 = vld [vmem:[%s11899_s5 + $0xc50] sm:$0xff] }
 0x19a   :  { %2029 = vrot.lane.b32.xlu1 %v973_v4, %s6621_s14  ;;  %3527 = vrot.lane.b32.xlu0 %v1728_v42, %s6627_s16  ;;  %v5670_v4 = vld [vmem:[%s11899_s5 + $0x678] sm:$0xff]  ;;  %12050 = vst [vmem:[#allocation66_spill] sm:$0xff] %v7779_v53  ;;  %v1603_v35 = vmul.f32 %v5857_v16, %v7733_v51 }
 0x19b   :  { %v1221_v5 = vmul.f32 %v5670_v4, %v7687_v63  ;;  %v1858_v4 = vmul.f32 %v5982_v12, %v7779_v53  ;;  %v5856_v63 = vld [vmem:[%s11899_s5 + $0xc48] sm:$0xff]  ;;  %v5554_v12 = vld [vmem:[%s11899_s5 + $0x2d8] sm:$0xff] }
 0x19c   :  { %v7765_v49 = vpop.permute.xlu1 %3517  ;;  %v7767_v55 = vpop.permute.xlu0 %2507 }
 0x19d   :  { %12049 = vst [vmem:[#allocation65_spill] sm:$0xff] %v7767_v55 }
 0x19e   :  { %3533 = vrot.lane.b32.xlu1 %v1731_v62, %s6627_s16  ;;  %3029 = vrot.lane.b32.xlu0 %v1477_v41, %s6625_s28  ;;  %v5983_v62 = vld [vmem:[%s11899_s5 + $0x1040] sm:$0xff]  ;;  %v468_v41 = vadd.f32 %v7236_v24, %v6992_v27 }
 0x1a0   :  { %v7781_v42 = vpop.permute.xlu1 %3263  ;;  %v7783_v55 = vpop.permute.xlu0 %2007  ;;  %v7811_v24 = vmax.f32 %v468_v41, 0.0  ;;  %v463_v41 = vadd.f32 %v6992_v27, %v7238_v25  ;;  %v756_v25 = vld [vmem:[%s11899_s5 + $0x8] sm:$0xff] }
 0x1a1   :  { %12051 = vst [vmem:[#allocation67_spill] sm:$0xff] %v7783_v55  ;;  %v1859_v55 = vmul.f32 %v5983_v62, %v7733_v51  ;;  %v1602_v51 = vmul.f32 %v5856_v63, %v7779_v53 }
 0x1a2   :  { %3279 = vrot.lane.b32.xlu1 %v1603_v35, %s6626_s29  ;;  %2521 = vrot.lane.b32.xlu0 %v1221_v5, %s6623_s25  ;;  %v5551_v35 = vld [vmem:[%s11899_s5 + $0x2c0] sm:$0xff]  ;;  %12054 = vst [vmem:[#allocation70_spill] sm:$0xff] %v7811_v24 }
 0x1a4   :  { %v7797_v13 = vpop.permute.xlu1 %2765  ;;  %v7799_v16 = vpop.permute.xlu0 %3013 }
 0x1a5   :  { %12052 = vst [vmem:[#allocation68_spill] sm:$0xff] %v7797_v13  ;;  %12053 = vst [vmem:[#allocation69_spill] sm:$0xff] %v7799_v16  ;;  %v972_v13 = vmul.f32 %v5551_v35, %v7779_v53  ;;  %v755_v35 = vld [vmem:[%s11899_s5] sm:$0xff] }
 0x1a6   :  { %3785 = vrot.lane.b32.xlu1 %v1858_v4, %s6628_s21  ;;  %3787 = vrot.lane.b32.xlu0 %v1859_v55, %s6628_s21  ;;  %v5919_v4 = vld [vmem:[%s11899_s5 + $0xe40] sm:$0xff]  ;;  %v975_v55 = vmul.f32 %v5554_v12, %v7811_v24  ;;  %v819_v27 = vmul.f32 0.0, %v755_v35  ;;  %v7849_v12 = vmax.f32 %v463_v41, 0.0 }
 0x1a7   :  { %v1730_v63 = vmul.f32 %v5919_v4, %v7779_v53  ;;  %v7868_v41 = vld [vmem:[%s11896_s2] ss:$0 sm:$0xff] }
 0x1a8   :  { %v7816_v5 = vpop.permute.xlu1 %3261  ;;  %v7818_v62 = vpop.permute.xlu0 %2759  ;;  %v478_v35 = vadd.f32 %v7868_v41, %v7304_v0  ;;  %v5858_v0 = vld [vmem:[%s11899_s5 + $0xc58] sm:$0xff] }
 0x1a9   :  { %12055 = vst [vmem:[#allocation71_spill] sm:$0xff] %v7818_v62 }
 0x1aa   :  { %3277 = vrot.lane.b32.xlu1 %v1602_v51, %s6626_s29  ;;  %2027 = vrot.lane.b32.xlu0 %v972_v13, %s6621_s14  ;;  %v5985_v51 = vld [vmem:[%s11899_s5 + $0x1050] sm:$0xff]  ;;  %v5922_v13 = vld [vmem:[%s11899_s5 + $0xe58] sm:$0xff] }
 0x1ab   :  { %v1733_v53 = vmul.f32 %v5922_v13, %v7811_v24  ;;  %v3964_v13 = vsel %vm3963_vm4, %v819_v27, %v7240_v26 }
 0x1ac   :  { %v7830_v16 = vpop.permute.xlu1 %2509  ;;  %v7832_v62 = vpop.permute.xlu0 %2261  ;;  %v4029_v27 = vsel %vm4028_vm5, %v3964_v13, %v7352_v36 }
 0x1ad   :  { %12056 = vst [vmem:[#allocation72_spill] sm:$0xff] %v7830_v16  ;;  %12057 = vst [vmem:[#allocation73_spill] sm:$0xff] %v7832_v62  ;;  %v1861_v16 = vmul.f32 %v5985_v51, %v7811_v24  ;;  %v820_v51 = vmul.f32 0.0, %v756_v25  ;;  %v7886_v25 = vmax.f32 %v478_v35, 0.0 }
 0x1ae   :  { %2033 = vrot.lane.b32.xlu1 %v975_v55, %s6621_s14  ;;  %3531 = vrot.lane.b32.xlu0 %v1730_v63, %s6627_s16  ;;  %v5859_v55 = vld [vmem:[%s11899_s5 + $0xc60] sm:$0xff]  ;;  %v5553_v63 = vld [vmem:[%s11899_s5 + $0x2d0] sm:$0xff] }
 0x1af   :  { %v3965_v26 = vsel %vm3963_vm4, %v820_v51, %v7264_v40  ;;  %v5921_v40 = vld [vmem:[%s11899_s5 + $0xe50] sm:$0xff]  ;;  %v4094_v51 = vsel %vm4093_vm6, %v4029_v27, %v7421_v32  ;;  %v5555_v32 = vld [vmem:[%s11899_s5 + $0x2e0] sm:$0xff] }
 0x1b0   :  { %v7851_v4 = vpop.permute.xlu1 %2017  ;;  %v7853_v62 = vpop.permute.xlu0 %3771 }
 0x1b1   :  { %12058 = vst [vmem:[#allocation74_spill] sm:$0xff] %v7851_v4 }
 0x1b2   :  { %3791 = vrot.lane.b32.xlu1 %v1861_v16, %s6628_s21  ;;  %3537 = vrot.lane.b32.xlu0 %v1733_v53, %s6627_s16  ;;  %v1605_v16 = vmul.f32 %v5859_v55, %v7811_v24  ;;  %v974_v53 = vmul.f32 %v5553_v63, %v7849_v12  ;;  %v5924_v55 = vld [vmem:[%s11899_s5 + $0xe68] sm:$0xff]  ;;  %v473_v63 = vadd.f32 %v7868_v41, %v7317_v8 }
 0x1b3   :  { %v1735_v36 = vmul.f32 %v5924_v55, %v7886_v25  ;;  %v4030_v8 = vsel %vm4028_vm5, %v3965_v26, %v7336_v28  ;;  %v1732_v55 = vmul.f32 %v5921_v40, %v7849_v12  ;;  %v5556_v28 = vld [vmem:[%s11899_s5 + $0x2e8] sm:$0xff] }
 0x1b4   :  { %v7874_v4 = vpop.permute.xlu1 %3521  ;;  %v7876_v14 = vpop.permute.xlu0 %3019  ;;  %v4095_v13 = vsel %vm4093_vm6, %v4030_v8, %v7517_v3  ;;  %v977_v26 = vmul.f32 %v5556_v28, %v7886_v25 }
 0x1b6   :  { %3283 = vrot.lane.b32.xlu1 %v1605_v16, %s6626_s29  ;;  %2031 = vrot.lane.b32.xlu0 %v974_v53, %s6621_s14  ;;  %v1860_v16 = vmul.f32 %v5984_v19, %v7849_v12  ;;  %v1604_v53 = vmul.f32 %v5858_v0, %v7849_v12  ;;  %v4159_v19 = vsel %vm4158_vm7, %v4094_v51, %v7497_v37  ;;  %v7919_v0 = vmax.f32 %v473_v63, 0.0  ;;  %v5987_v51 = vld [vmem:[%s11899_s5 + $0x1060] sm:$0xff] }
 0x1b7   :  { %v4160_v37 = vsel %vm4158_vm7, %v4095_v13, %v7464_v20  ;;  %v4224_v3 = vsel %vm4223_vm8, %v4159_v19, %v7466_v22  ;;  %v483_v19 = vadd.f32 %v7868_v41, %v7383_v61  ;;  %v5923_v61 = vld [vmem:[%s11899_s5 + $0xe60] sm:$0xff] }
 0x1b8   :  { %v7899_v35 = vpop.permute.xlu1 %3267  ;;  %v7901_v24 = vpop.permute.xlu0 %2511  ;;  %v4225_v27 = vsel %vm4223_vm8, %v4160_v37, %v7618_v17  ;;  %v4289_v63 = vsel %vm4288_vm9, %v4224_v3, %v7689_v7  ;;  %v5986_v17 = vld [vmem:[%s11899_s5 + $0x1058] sm:$0xff]  ;;  %v5860_v3 = vld [vmem:[%s11899_s5 + $0xc68] sm:$0xff] }
 0x1b9   :  { %v4290_v20 = vsel %vm4288_vm9, %v4225_v27, %v7816_v5  ;;  %v488_v5 = vadd.f32 %v7868_v41, %v7377_v58  ;;  %v1862_v37 = vmul.f32 %v5986_v17, %v7919_v0  ;;  %v498_v58 = vadd.f32 %v7868_v41, %v7397_v57  ;;  %v5558_v57 = vld [vmem:[%s11899_s5 + $0x2f8] sm:$0xff]  ;;  %v757_v17 = vld [vmem:[%s11899_s5 + $0x10] sm:$0xff] }
 0x1ba   :  { %3789 = vrot.lane.b32.xlu1 %v1860_v16, %s6628_s21  ;;  %3281 = vrot.lane.b32.xlu0 %v1604_v53, %s6626_s29  ;;  %v493_v27 = vadd.f32 %v7868_v41, %v7403_v2  ;;  %v508_v2 = vadd.f32 %v7868_v41, %v7415_v29  ;;  %v5560_v29 = vld [vmem:[%s11899_s5 + $0x308] sm:$0xff] }
 0x1bc   :  { %v7921_v16 = vpop.permute.xlu1 %2769  ;;  %v7923_v53 = vpop.permute.xlu0 %2011 }
 0x1be   :  { %3535 = vrot.lane.b32.xlu1 %v1732_v55, %s6627_s16  ;;  %3541 = vrot.lane.b32.xlu0 %v1735_v36, %s6627_s16  ;;  %v976_v36 = vmul.f32 %v5555_v32, %v7919_v0  ;;  %v4355_v55 = vsel %vm4353_vm10, %v4290_v20, %v7765_v49  ;;  %v1863_v32 = vmul.f32 %v5987_v51, %v7886_v25  ;;  %v7979_v49 = vmax.f32 %v488_v5, 0.0 }
 0x1bf   :  { %v1734_v20 = vmul.f32 %v5923_v61, %v7919_v0  ;;  %v8000_v51 = vmax.f32 %v498_v58, 0.0  ;;  %v503_v5 = vadd.f32 %v7868_v41, %v7419_v31  ;;  %v8025_v58 = vmax.f32 %v508_v2, 0.0 }
 0x1c0   :  { %v7943_v40 = vpop.permute.xlu1 %2515  ;;  %v3516_v8 = vpop.permute.xlu0 %3515  ;;  %v518_v31 = vadd.f32 %v7868_v41, %v7433_v44  ;;  %v5561_v44 = vld [vmem:[%s11899_s5 + $0x310] sm:$0xff] }
 0x1c1   :  { %v4354_v22 = vsel %vm4353_vm10, %v4289_v63, %v3516_v8  ;;  %v5557_v63 = vld [vmem:[%s11899_s5 + $0x2f0] sm:$0xff]  ;;  %12059 = vst [vmem:[#allocation75_spill] sm:$0xff] %v8000_v51  ;;  %v8029_v61 = vmax.f32 %v503_v5, 0.0  ;;  %v528_v5 = vadd.f32 %v7868_v41, %v7453_v10  ;;  %v5563_v10 = vld [vmem:[%s11899_s5 + $0x320] sm:$0xff] }
 0x1c2   :  { %2037 = vrot.lane.b32.xlu1 %v977_v26, %s6621_s14  ;;  %2035 = vrot.lane.b32.xlu0 %v976_v36, %s6621_s14  ;;  %v4419_v7 = vsel %vm4418_vm11, %v4354_v22, %v7853_v62  ;;  %v7981_v26 = vmax.f32 %v483_v19, 0.0  ;;  %v1606_v22 = vmul.f32 %v5860_v3, %v7919_v0  ;;  %v979_v19 = vmul.f32 %v5558_v57, %v7979_v49 }
 0x1c3   :  { %6384 = vmatprep.mubr.msk.f32.mxu1 %vm4499_vm12, %v4419_v7  ;;  %v8007_v7 = vmax.f32 %v493_v27, 0.0  ;;  %12061 = vst [vmem:[#allocation77_spill] sm:$0xff] %v8029_v61  ;;  %v513_v3 = vadd.f32 %v7868_v41, %v7439_v48  ;;  %v981_v27 = vmul.f32 %v5560_v29, %v8000_v51  ;;  %v758_v48 = vld [vmem:[%s11899_s5 + $0x18] sm:$0xff]  ;;  %v982_v29 = vmul.f32 %v5561_v44, %v8029_v61 }
 0x1c4   :  { %v3774_v13 = vpop.permute.xlu1 %3773  ;;  %v7966_v28 = vpop.permute.xlu0 %3017  ;;  %v533_v44 = vadd.f32 %v7868_v41, %v7478_v47 }
 0x1c5   :  { %v4420_v62 = vsel %vm4418_vm11, %v4355_v55, %v3774_v13  ;;  %12060 = vst [vmem:[#allocation76_spill] sm:$0xff] %v8007_v7  ;;  %v978_v13 = vmul.f32 %v5557_v63, %v7981_v26  ;;  %v5559_v55 = vld [vmem:[%s11899_s5 + $0x300] sm:$0xff]  ;;  %v5562_v63 = vld [vmem:[%s11899_s5 + $0x318] sm:$0xff] }
 0x1c6   :  { %3795 = vrot.lane.b32.xlu1 %v1863_v32, %s6628_s21  ;;  %3793 = vrot.lane.b32.xlu0 %v1862_v37, %s6628_s21  ;;  %v980_v57 = vmul.f32 %v5559_v55, %v8007_v7  ;;  %v5564_v55 = vld [vmem:[%s11899_s5 + $0x328] sm:$0xff] }
 0x1c7   :  { %6385 = vmatmul.mubr.msk.f32.vlgmr.msra.gmra.mrb[0].mxu1 %vm4499_vm12, %v4420_v62  ;;  %v821_v62 = vmul.f32 0.0, %v757_v17  ;;  %v8050_v17 = vmax.f32 %v518_v31, 0.0 }
 0x1c8   :  { %v7994_v8 = vpop.permute.xlu1 %3265  ;;  %v7996_v36 = vpop.permute.xlu0 %2763 }
 0x1c9   :  { %v3966_v2 = vsel %vm3963_vm4, %v821_v62, %v7226_v21  ;;  %v983_v21 = vmul.f32 %v5562_v63, %v8025_v58  ;;  %v822_v62 = vmul.f32 0.0, %v758_v48  ;;  %v985_v48 = vmul.f32 %v5564_v55, %v8050_v17 }
 0x1ca   :  { %3539 = vrot.lane.b32.xlu1 %v1734_v20, %s6627_s16  ;;  %3285 = vrot.lane.b32.xlu0 %v1606_v22, %s6626_s29  ;;  %v8106_v55 = vmax.f32 %v533_v44, 0.0 }
 0x1cc   :  { %v8021_v32 = vpop.permute.xlu1 %2513  ;;  %v8023_v37 = vpop.permute.xlu0 %2265 }
 0x1ce   :  { %2041 = vrot.lane.b32.xlu1 %v979_v19, %s6621_s14  ;;  %2039 = vrot.lane.b32.xlu0 %v978_v13, %s6621_s14  ;;  %v8054_v19 = vmax.f32 %v513_v3, 0.0  ;;  %v523_v13 = vadd.f32 %v7868_v41, %v7459_v11  ;;  %v4031_v11 = vsel %vm4028_vm5, %v3966_v2, %v7379_v59  ;;  %v5565_v2 = vld [vmem:[%s11899_s5 + $0x330] sm:$0xff] }
 0x1cf   :  { %v4096_v59 = vsel %vm4093_vm6, %v4031_v11, %v7480_v54  ;;  %v548_v54 = vadd.f32 %v7868_v41, %v7491_v43  ;;  %v5568_v43 = vld [vmem:[%s11899_s5 + $0x348] sm:$0xff] }
 0x1d0   :  { %v8043_v20 = vpop.permute.xlu1 %2021  ;;  %v3776_v22 = vpop.permute.xlu0 %3775  ;;  %v8078_v63 = vmax.f32 %v523_v13, 0.0  ;;  %v4161_v47 = vsel %vm4158_vm7, %v4096_v59, %v7634_v15  ;;  %v558_v59 = vadd.f32 %v7868_v41, %v7509_v30  ;;  %v5570_v30 = vld [vmem:[%s11899_s5 + $0x358] sm:$0xff] }
 0x1d1   :  { %12062 = vst [vmem:[#allocation78_spill] sm:$0xff] %v8043_v20  ;;  %v984_v20 = vmul.f32 %v5563_v10, %v8054_v19  ;;  %v4226_v11 = vsel %vm4223_vm8, %v4161_v47, %v7557_v38  ;;  %v8131_v38 = vmax.f32 %v548_v54, 0.0 }
 0x1d2   :  { %2045 = vrot.lane.b32.xlu1 %v981_v27, %s6621_s14  ;;  %2043 = vrot.lane.b32.xlu0 %v980_v57, %s6621_s14  ;;  %v8074_v27 = vmax.f32 %v528_v5, 0.0  ;;  %v538_v57 = vadd.f32 %v7868_v41, %v7473_v39  ;;  %v5566_v39 = vld [vmem:[%s11899_s5 + $0x338] sm:$0xff]  ;;  %v3967_v5 = vsel %vm3963_vm4, %v822_v62, %v7252_v34  ;;  %v543_v34 = vadd.f32 %v7868_v41, %v7495_v18 }
 0x1d3   :  { %v986_v10 = vmul.f32 %v5565_v2, %v8078_v63  ;;  %v4032_v62 = vsel %vm4028_vm5, %v3967_v5, %v7364_v46 }
 0x1d4   :  { %v8068_v31 = vpop.permute.xlu1 %3525  ;;  %v8070_v3 = vpop.permute.xlu0 %3023  ;;  %v987_v15 = vmul.f32 %v5566_v39, %v8074_v27  ;;  %v4097_v18 = vsel %vm4093_vm6, %v4032_v62, %v7573_v6  ;;  %v553_v39 = vadd.f32 %v7868_v41, %v7513_v1  ;;  %v8137_v2 = vmax.f32 %v543_v34, 0.0  ;;  %v5569_v1 = vld [vmem:[%s11899_s5 + $0x350] sm:$0xff]  ;;  %v759_v62 = vld [vmem:[%s11899_s5 + $0x20] sm:$0xff] }
 0x1d5   :  { %v4162_v47 = vsel %vm4158_vm7, %v4097_v18, %v7535_v60 }
 0x1d6   :  { %2049 = vrot.lane.b32.xlu1 %v983_v21, %s6621_s14  ;;  %2047 = vrot.lane.b32.xlu0 %v982_v29, %s6621_s14  ;;  %v8102_v29 = vmax.f32 %v538_v57, 0.0  ;;  %v4291_v57 = vsel %vm4288_vm9, %v4226_v11, %v7781_v42  ;;  %v8168_v11 = vmax.f32 %v553_v39, 0.0  ;;  %v578_v39 = vadd.f32 %v7868_v41, %v7547_v23  ;;  %v5573_v23 = vld [vmem:[%s11899_s5 + $0x370] sm:$0xff] }
 0x1d8   :  { %v8098_v13 = vpop.permute.xlu1 %3271  ;;  %v8100_v21 = vpop.permute.xlu0 %2015  ;;  %v989_v42 = vmul.f32 %v5568_v43, %v8102_v29  ;;  %12064 = vst [vmem:[#allocation80_spill] sm:$0xff] %v8168_v11  ;;  %v990_v43 = vmul.f32 %v5569_v1, %v8137_v2 }
 0x1da   :  { %2053 = vrot.lane.b32.xlu1 %v985_v48, %s6621_s14  ;;  %2051 = vrot.lane.b32.xlu0 %v984_v20, %s6621_s14  ;;  %v5567_v20 = vld [vmem:[%s11899_s5 + $0x340] sm:$0xff] }
 0x1db   :  { %v988_v5 = vmul.f32 %v5567_v20, %v8106_v55  ;;  %v5571_v20 = vld [vmem:[%s11899_s5 + $0x360] sm:$0xff] }
 0x1dc   :  { %v8128_v44 = vpop.permute.xlu1 %3027  ;;  %v3520_v46 = vpop.permute.xlu0 %3519 }
 0x1dd   :  { %v4356_v48 = vsel %vm4353_vm10, %v4291_v57, %v3520_v46 }
 0x1de   :  { %2057 = vrot.lane.b32.xlu1 %v987_v15, %s6621_s14  ;;  %2055 = vrot.lane.b32.xlu0 %v986_v10, %s6621_s14  ;;  %v4421_v6 = vsel %vm4418_vm11, %v4356_v48, %v3776_v22  ;;  %v4227_v22 = vsel %vm4223_vm8, %v4162_v47, %v7721_v45  ;;  %v8161_v15 = vmax.f32 %v558_v59, 0.0  ;;  %v568_v10 = vadd.f32 %v7868_v41, %v7527_v33  ;;  %v5572_v33 = vld [vmem:[%s11899_s5 + $0x368] sm:$0xff]  ;;  %v5574_v47 = vld [vmem:[%s11899_s5 + $0x378] sm:$0xff] }
 0x1df   :  { %6387 = vmatprep.mubr.msk.f32.mxu1 %vm4499_vm12, %v4421_v6  ;;  %v4292_v60 = vsel %vm4288_vm9, %v4227_v22, %v7994_v8  ;;  %v563_v45 = vadd.f32 %v7868_v41, %v7531_v52  ;;  %v991_v8 = vmul.f32 %v5570_v30, %v8131_v38  ;;  %v823_v48 = vmul.f32 0.0, %v759_v62  ;;  %v12069_v62 = vld [vmem:[#allocation32_spill] sm:$0xff] }
 0x1e0   :  { %v8155_v54 = vpop.permute.xlu1 %2519  ;;  %v8157_v34 = vpop.permute.xlu0 %3021  ;;  %12063 = vst [vmem:[#allocation79_spill] sm:$0xff] %v8161_v15  ;;  %v4357_v57 = vsel %vm4353_vm10, %v4292_v60, %v7874_v4  ;;  %v8187_v59 = vmax.f32 %v568_v10, 0.0  ;;  %v993_v4 = vmul.f32 %v5572_v33, %v8161_v15  ;;  %v8210_v22 = vmax.f32 %v578_v39, 0.0  ;;  %v12072_v39 = vld [vmem:[#allocation34_spill] sm:$0xff] }
 0x1e1   :  { %v8191_v6 = vmax.f32 %v563_v45, 0.0  ;;  %v588_v60 = vadd.f32 %v7868_v41, %v7567_v50  ;;  %v583_v45 = vadd.f32 %v7868_v41, %v12069_v62  ;;  %v5575_v50 = vld [vmem:[%s11899_s5 + $0x380] sm:$0xff] }
 0x1e2   :  { %2061 = vrot.lane.b32.xlu1 %v989_v42, %s6621_s14  ;;  %2059 = vrot.lane.b32.xlu0 %v988_v5, %s6621_s14  ;;  %12065 = vst [vmem:[#allocation81_spill] sm:$0xff] %v8187_v59  ;;  %v573_v42 = vadd.f32 %v7868_v41, %v7551_v9  ;;  %v992_v5 = vmul.f32 %v5571_v20, %v8168_v11  ;;  %12067 = vst [vmem:[#allocation83_spill] sm:$0xff] %v8210_v22  ;;  %v12138_v11 = vld [vmem:[#allocation16_spill] sm:$0xff] }
 0x1e3   :  { %12066 = vst [vmem:[#allocation82_spill] sm:$0xff] %v8191_v6  ;;  %v3968_v9 = vsel %vm3963_vm4, %v823_v48, %v7290_v56  ;;  %v5576_v56 = vld [vmem:[%s11899_s5 + $0x388] sm:$0xff] }
 0x1e4   :  { %v3778_v18 = vpop.permute.xlu1 %3777  ;;  %v8184_v46 = vpop.permute.xlu0 %2767  ;;  %v8214_v10 = vmax.f32 %v573_v42, 0.0  ;;  %v598_v42 = vadd.f32 %v7868_v41, %v12072_v39 }
 0x1e5   :  { %v4422_v52 = vsel %vm4418_vm11, %v4357_v57, %v3778_v18  ;;  %v760_v18 = vld [vmem:[%s11899_s5 + $0x28] sm:$0xff]  ;;  %v12070_v57 = vld [vmem:[#allocation20_spill] sm:$0xff] }
 0x1e6   :  { %2065 = vrot.lane.b32.xlu1 %v991_v8, %s6621_s14  ;;  %2063 = vrot.lane.b32.xlu0 %v990_v43, %s6621_s14  ;;  %12068 = vst [vmem:[#allocation84_spill] sm:$0xff] %v8214_v10  ;;  %v995_v8 = vmul.f32 %v5574_v47, %v8187_v59  ;;  %v994_v43 = vmul.f32 %v5573_v23, %v8191_v6  ;;  %v12075_v59 = vld [vmem:[#allocation33_spill] sm:$0xff] }
 0x1e7   :  { %6388 = vmatmul.mubr.msk.f32.gmra.mrb[2].mxu1 %vm4499_vm12, %v4422_v52  ;;  %v4033_v48 = vsel %vm4028_vm5, %v3968_v9, %v12070_v57  ;;  %v8237_v52 = vmax.f32 %v588_v60, 0.0  ;;  %v997_v23 = vmul.f32 %v5576_v56, %v8210_v22  ;;  %v996_v62 = vmul.f32 %v5575_v50, %v8214_v10  ;;  %v5578_v60 = vld [vmem:[%s11899_s5 + $0x398] sm:$0xff]  ;;  %v12082_v22 = vld [vmem:[#allocation40_spill] sm:$0xff] }
 0x1e8   :  { %v8206_v30 = vpop.permute.xlu1 %3269  ;;  %v3780_v1 = vpop.permute.xlu0 %3779  ;;  %v4098_v9 = vsel %vm4093_vm6, %v4033_v48, %v12075_v59  ;;  %v8263_v50 = vmax.f32 %v598_v42, 0.0  ;;  %v5580_v42 = vld [vmem:[%s11899_s5 + $0x3a8] sm:$0xff]  ;;  %v12083_v10 = vld [vmem:[#allocation52_spill] sm:$0xff] }
 0x1e9   :  { %12071 = vst [vmem:[#allocation32_spill] sm:$0xff] %v8237_v52 }
 0x1ea   :  { %2069 = vrot.lane.b32.xlu1 %v993_v4, %s6621_s14  ;;  %2067 = vrot.lane.b32.xlu0 %v992_v5, %s6621_s14  ;;  %v8241_v4 = vmax.f32 %v583_v45, 0.0  ;;  %v12074_v5 = vld [vmem:[#allocation35_spill] sm:$0xff]  ;;  %v5577_v45 = vld [vmem:[%s11899_s5 + $0x390] sm:$0xff]  ;;  %12079 = vst [vmem:[#allocation33_spill] sm:$0xff] %v8263_v50 }
 0x1eb   :  { %v593_v47 = vadd.f32 %v7868_v41, %v12074_v5  ;;  %v12080_v5 = vld [vmem:[#allocation38_spill] sm:$0xff] }
 0x1ec   :  { %v8228_v33 = vpop.permute.xlu1 %2771  ;;  %v8230_v20 = vpop.permute.xlu0 %2773  ;;  %12073 = vst [vmem:[#allocation20_spill] sm:$0xff] %v8241_v4  ;;  %v608_v59 = vadd.f32 %v7868_v41, %v12080_v5 }
 0x1ed   :  { %v8267_v48 = vmax.f32 %v593_v47, 0.0  ;;  %v5579_v47 = vld [vmem:[%s11899_s5 + $0x3a0] sm:$0xff] }
 0x1ee   :  { %2073 = vrot.lane.b32.xlu1 %v995_v8, %s6621_s14  ;;  %2071 = vrot.lane.b32.xlu0 %v994_v43, %s6621_s14  ;;  %v824_v8 = vmul.f32 0.0, %v760_v18  ;;  %v12076_v43 = vld [vmem:[#allocation62_spill] sm:$0xff]  ;;  %v603_v18 = vadd.f32 %v7868_v41, %v12082_v22 }
 0x1ef   :  { %v4163_v57 = vsel %vm4158_vm7, %v4098_v9, %v12076_v43  ;;  %12081 = vst [vmem:[#allocation62_spill] sm:$0xff] %v8267_v48  ;;  %v999_v9 = vmul.f32 %v5578_v60, %v8237_v52  ;;  %v998_v43 = vmul.f32 %v5577_v45, %v8241_v4  ;;  %v8290_v4 = vmax.f32 %v608_v59, 0.0  ;;  %v12089_v59 = vld [vmem:[#allocation19_spill] sm:$0xff] }
 0x1f0   :  { %v8259_v39 = vpop.permute.xlu1 %2025  ;;  %v8261_v56 = vpop.permute.xlu0 %2019  ;;  %v4228_v5 = vsel %vm4223_vm8, %v4163_v57, %v12083_v10  ;;  %v1001_v57 = vmul.f32 %v5580_v42, %v8263_v50  ;;  %v8295_v6 = vmax.f32 %v603_v18, 0.0  ;;  %v5581_v18 = vld [vmem:[%s11899_s5 + $0x3b0] sm:$0xff]  ;;  %v5584_v50 = vld [vmem:[%s11899_s5 + $0x3c8] sm:$0xff] }
 0x1f1   :  { %12077 = vst [vmem:[#allocation34_spill] sm:$0xff] %v8259_v39  ;;  %12078 = vst [vmem:[#allocation35_spill] sm:$0xff] %v8261_v56  ;;  %v4293_v22 = vsel %vm4288_vm9, %v4228_v5, %v7899_v35  ;;  %v12086_v39 = vld [vmem:[#allocation42_spill] sm:$0xff] }
 0x1f2   :  { %2077 = vrot.lane.b32.xlu1 %v997_v23, %s6621_s14  ;;  %2075 = vrot.lane.b32.xlu0 %v996_v62, %s6621_s14  ;;  %v12084_v23 = vld [vmem:[#allocation15_spill] sm:$0xff]  ;;  %12085 = vst [vmem:[#allocation38_spill] sm:$0xff] %v8290_v4  ;;  %v618_v10 = vadd.f32 %v7868_v41, %v12086_v39  ;;  %12087 = vst [vmem:[#allocation40_spill] sm:$0xff] %v8295_v6  ;;  %v12105_v56 = vld [vmem:[#allocation54_spill] sm:$0xff] }
 0x1f3   :  { %v3969_v62 = vsel %vm3963_vm4, %v824_v8, %v12084_v23  ;;  %v12088_v8 = vld [vmem:[#allocation43_spill] sm:$0xff]  ;;  %v1000_v23 = vmul.f32 %v5579_v47, %v8267_v48  ;;  %v12092_v47 = vld [vmem:[#allocation45_spill] sm:$0xff] }
 0x1f4   :  { %v8287_v60 = vpop.permute.xlu1 %3529  ;;  %v3524_v45 = vpop.permute.xlu0 %3523  ;;  %v613_v5 = vadd.f32 %v7868_v41, %v12088_v8  ;;  %v5582_v39 = vld [vmem:[%s11899_s5 + $0x3b8] sm:$0xff]  ;;  %v8318_v42 = vmax.f32 %v618_v10, 0.0  ;;  %v12094_v8 = vld [vmem:[#allocation46_spill] sm:$0xff]  ;;  %v1002_v10 = vmul.f32 %v5581_v18, %v8295_v6 }
 0x1f5   :  { %v4358_v52 = vsel %vm4353_vm10, %v4293_v22, %v3524_v45  ;;  %v4034_v22 = vsel %vm4028_vm5, %v3969_v62, %v12089_v59  ;;  %v628_v62 = vadd.f32 %v7868_v41, %v12092_v47  ;;  %v761_v45 = vld [vmem:[%s11899_s5 + $0x30] sm:$0xff]  ;;  %v623_v59 = vadd.f32 %v7868_v41, %v12094_v8 }
 0x1f6   :  { %2081 = vrot.lane.b32.xlu1 %v999_v9, %s6621_s14  ;;  %2079 = vrot.lane.b32.xlu0 %v998_v43, %s6621_s14  ;;  %v4423_v35 = vsel %vm4418_vm11, %v4358_v52, %v3780_v1  ;;  %v12090_v9 = vld [vmem:[#allocation47_spill] sm:$0xff]  ;;  %12091 = vst [vmem:[#allocation52_spill] sm:$0xff] %v8318_v42  ;;  %v1005_v15 = vmul.f32 %v5584_v50, %v8318_v42 }
 0x1f7   :  { %6390 = vmatprep.mubr.msk.f32.mxu1 %vm4499_vm12, %v4423_v35  ;;  %v4099_v1 = vsel %vm4093_vm6, %v4034_v22, %v12090_v9  ;;  %v8325_v35 = vmax.f32 %v613_v5, 0.0  ;;  %v1003_v22 = vmul.f32 %v5582_v39, %v8290_v4  ;;  %v12095_v9 = vld [vmem:[#allocation41_spill] sm:$0xff]  ;;  %v825_v39 = vmul.f32 0.0, %v761_v45 }
 0x1f8   :  { %v8314_v52 = vpop.permute.xlu1 %3275  ;;  %v8316_v43 = vpop.permute.xlu0 %3025  ;;  %v4164_v47 = vsel %vm4158_vm7, %v4099_v1, %v12095_v9  ;;  %v12096_v5 = vld [vmem:[#allocation69_spill] sm:$0xff]  ;;  %v8349_v1 = vmax.f32 %v628_v62, 0.0  ;;  %v8353_v6 = vmax.f32 %v623_v59, 0.0  ;;  %v5585_v62 = vld [vmem:[%s11899_s5 + $0x3d0] sm:$0xff] }
 0x1f9   :  { %12093 = vst [vmem:[#allocation15_spill] sm:$0xff] %v8325_v35  ;;  %v12098_v9 = vld [vmem:[#allocation49_spill] sm:$0xff] }
 0x1fa   :  { %2085 = vrot.lane.b32.xlu1 %v1001_v57, %s6621_s14  ;;  %2083 = vrot.lane.b32.xlu0 %v1000_v23, %s6621_s14  ;;  %v5583_v57 = vld [vmem:[%s11899_s5 + $0x3c0] sm:$0xff]  ;;  %v4229_v23 = vsel %vm4223_vm8, %v4164_v47, %v12096_v5  ;;  %12097 = vst [vmem:[#allocation42_spill] sm:$0xff] %v8349_v1  ;;  %v638_v4 = vadd.f32 %v7868_v41, %v12098_v9  ;;  %12099 = vst [vmem:[#allocation43_spill] sm:$0xff] %v8353_v6  ;;  %v12100_v47 = vld [vmem:[#allocation50_spill] sm:$0xff] }
 0x1fb   :  { %v4294_v18 = vsel %vm4288_vm9, %v4229_v23, %v8206_v30  ;;  %v633_v5 = vadd.f32 %v7868_v41, %v12100_v47  ;;  %v1004_v45 = vmul.f32 %v5583_v57, %v8325_v35  ;;  %v5586_v30 = vld [vmem:[%s11899_s5 + $0x3d8] sm:$0xff]  ;;  %v12101_v23 = vld [vmem:[#allocation18_spill] sm:$0xff]  ;;  %v12103_v57 = vld [vmem:[#allocation53_spill] sm:$0xff] }
 0x1fc   :  { %v8343_v48 = vpop.permute.xlu1 %3031  ;;  %v8345_v8 = vpop.permute.xlu0 %2517  ;;  %v3970_v9 = vsel %vm3963_vm4, %v825_v39, %v12101_v23  ;;  %v8372_v47 = vmax.f32 %v638_v4, 0.0  ;;  %v648_v42 = vadd.f32 %v7868_v41, %v12103_v57  ;;  %v1006_v39 = vmul.f32 %v5585_v62, %v8353_v6  ;;  %v5588_v4 = vld [vmem:[%s11899_s5 + $0x3e8] sm:$0xff]  ;;  %v762_v23 = vld [vmem:[%s11899_s5 + $0x38] sm:$0xff] }
 0x1fd   :  { %v8376_v35 = vmax.f32 %v633_v5, 0.0  ;;  %v5587_v5 = vld [vmem:[%s11899_s5 + $0x3e0] sm:$0xff] }
 0x1fe   :  { %2089 = vrot.lane.b32.xlu1 %v1003_v22, %s6621_s14  ;;  %2087 = vrot.lane.b32.xlu0 %v1002_v10, %s6621_s14  ;;  %v4359_v22 = vsel %vm4353_vm10, %v4294_v18, %v8068_v31  ;;  %12102 = vst [vmem:[#allocation19_spill] sm:$0xff] %v8372_v47  ;;  %v643_v31 = vadd.f32 %v7868_v41, %v12105_v56  ;;  %v8395_v56 = vmax.f32 %v648_v42, 0.0  ;;  %v5590_v42 = vld [vmem:[%s11899_s5 + $0x3f8] sm:$0xff] }
 0x1ff   :  { %12104 = vst [vmem:[#allocation47_spill] sm:$0xff] %v8376_v35  ;;  %v1007_v18 = vmul.f32 %v5586_v30, %v8349_v1  ;;  %v1009_v62 = vmul.f32 %v5588_v4, %v8372_v47 }
 0x200   :  { %v3782_v59 = vpop.permute.xlu1 %3781  ;;  %v3784_v10 = vpop.permute.xlu0 %3783  ;;  %12107 = vst [vmem:[#allocation45_spill] sm:$0xff] %v8395_v56  ;;  %v8397_v30 = vmax.f32 %v643_v31, 0.0  ;;  %v12110_v31 = vld [vmem:[#allocation71_spill] sm:$0xff] }
 0x201   :  { %v4424_v50 = vsel %vm4418_vm11, %v4359_v22, %v3782_v59  ;;  %v1008_v22 = vmul.f32 %v5587_v5, %v8376_v35  ;;  %v826_v5 = vmul.f32 0.0, %v762_v23  ;;  %v12114_v23 = vld [vmem:[#allocation17_spill] sm:$0xff] }
 0x202   :  { %2093 = vrot.lane.b32.xlu1 %v1005_v15, %s6621_s14  ;;  %2091 = vrot.lane.b32.xlu0 %v1004_v45, %s6621_s14  ;;  %v12106_v45 = vld [vmem:[#allocation22_spill] sm:$0xff]  ;;  %12108 = vst [vmem:[#allocation46_spill] sm:$0xff] %v8397_v30 }
 0x203   :  { %6391 = vmatmul.mubr.msk.f32.gmra.mrb[4].mxu1 %vm4499_vm12, %v4424_v50  ;;  %v4035_v41 = vsel %vm4028_vm5, %v3970_v9, %v12106_v45  ;;  %v12109_v50 = vld [vmem:[#allocation56_spill] sm:$0xff]  ;;  %v5589_v9 = vld [vmem:[%s11899_s5 + $0x3f0] sm:$0xff]  ;;  %v1011_v45 = vmul.f32 %v5590_v42, %v8395_v56  ;;  %v3971_v42 = vsel %vm3963_vm4, %v826_v5, %v12114_v23  ;;  %v5798_v23 = vld [vmem:[%s11899_s5 + $0xa78] sm:$0xff] }
 0x204   :  { %v3274_v15 = vpop.permute.xlu1 %3273  ;;  %v8391_v59 = vpop.permute.xlu0 %2777  ;;  %v4100_v57 = vsel %vm4093_vm6, %v4035_v41, %v12109_v50  ;;  %v1010_v41 = vmul.f32 %v5589_v9, %v8397_v30  ;;  %v12112_v50 = vld [vmem:[#allocation64_spill] sm:$0xff]  ;;  %v12119_v56 = vld [vmem:[#allocation66_spill] sm:$0xff] }
 0x205   :  { %v763_v9 = vld [vmem:[%s11899_s5 + $0x40] sm:$0xff]  ;;  %v1479_v30 = vmul.f32 %v5798_v23, %v12119_v56  ;;  %v12121_v23 = vld [vmem:[#allocation39_spill] sm:$0xff] }
 0x206   :  { %2097 = vrot.lane.b32.xlu1 %v1007_v18, %s6621_s14  ;;  %2095 = vrot.lane.b32.xlu0 %v1006_v39, %s6621_s14  ;;  %v4165_v18 = vsel %vm4158_vm7, %v4100_v57, %v12110_v31 }
 0x207   :  { %v4230_v47 = vsel %vm4223_vm8, %v4165_v18, %v12112_v50  ;;  %v12116_v18 = vld [vmem:[#allocation61_spill] sm:$0xff] }
 0x208   :  { %v8416_v39 = vpop.permute.xlu1 %2775  ;;  %v8418_v4 = vpop.permute.xlu0 %2023  ;;  %v4295_v35 = vsel %vm4288_vm9, %v4230_v47, %v8098_v13  ;;  %v12115_v47 = vld [vmem:[#allocation26_spill] sm:$0xff] }
 0x209   :  { %12111 = vst [vmem:[#allocation41_spill] sm:$0xff] %v8418_v4 }
 0x20a   :  { %2101 = vrot.lane.b32.xlu1 %v1009_v62, %s6621_s14  ;;  %2099 = vrot.lane.b32.xlu0 %v1008_v22, %s6621_s14  ;;  %v5607_v62 = vld [vmem:[%s11899_s5 + $0x480] sm:$0xff]  ;;  %v5988_v22 = vld [vmem:[%s11899_s5 + $0x1068] sm:$0xff] }
 0x20c   :  { %v8428_v57 = vpop.permute.xlu1 %2029  ;;  %v3528_v31 = vpop.permute.xlu0 %3527 }
 0x20d   :  { %12113 = vst [vmem:[#allocation69_spill] sm:$0xff] %v8428_v57  ;;  %v4360_v1 = vsel %vm4353_vm10, %v4295_v35, %v3528_v31  ;;  %v4036_v35 = vsel %vm4028_vm5, %v3971_v42, %v12115_v47  ;;  %v827_v42 = vmul.f32 0.0, %v763_v9  ;;  %v5671_v9 = vld [vmem:[%s11899_s5 + $0x680] sm:$0xff] }
 0x20e   :  { %2105 = vrot.lane.b32.xlu1 %v1011_v45, %s6621_s14  ;;  %2103 = vrot.lane.b32.xlu0 %v1010_v41, %s6621_s14  ;;  %v4425_v13 = vsel %vm4418_vm11, %v4360_v1, %v3784_v10  ;;  %v4101_v50 = vsel %vm4093_vm6, %v4036_v35, %v12116_v18  ;;  %v12117_v45 = vld [vmem:[#allocation13_spill] sm:$0xff]  ;;  %v1864_v1 = vmul.f32 %v5988_v22, %v7981_v26  ;;  %v5861_v10 = vld [vmem:[%s11899_s5 + $0xc70] sm:$0xff] }
 0x20f   :  { %6393 = vmatprep.mubr.msk.f32.mxu1 %vm4499_vm12, %v4425_v13  ;;  %v1093_v41 = vmul.f32 %v5607_v62, %v12117_v45  ;;  %v12118_v13 = vld [vmem:[#allocation57_spill] sm:$0xff]  ;;  %v1607_v18 = vmul.f32 %v5861_v10, %v7886_v25 }
 0x210   :  { %v8450_v31 = vpop.permute.xlu1 %3533  ;;  %v8452_v5 = vpop.permute.xlu0 %3029  ;;  %v4166_v47 = vsel %vm4158_vm7, %v4101_v50, %v12118_v13  ;;  %v5608_v50 = vld [vmem:[%s11899_s5 + $0x488] sm:$0xff]  ;;  %v1222_v13 = vmul.f32 %v5671_v9, %v12121_v23 }
 0x211   :  { %v4231_v62 = vsel %vm4223_vm8, %v4166_v47, %v7966_v28  ;;  %v12120_v28 = vld [vmem:[#allocation27_spill] sm:$0xff]  ;;  %v12122_v47 = vld [vmem:[#allocation21_spill] sm:$0xff] }
 0x212   :  { %2267 = vrot.lane.b32.xlu1 %v1093_v41, %s6622_s26  ;;  %3797 = vrot.lane.b32.xlu0 %v1864_v1, %s6628_s21  ;;  %v4296_v6 = vsel %vm4288_vm9, %v4231_v62, %v3274_v15  ;;  %v3972_v41 = vsel %vm3963_vm4, %v827_v42, %v12120_v28  ;;  %v1094_v62 = vmul.f32 %v5608_v50, %v12122_v47  ;;  %v12123_v42 = vld [vmem:[#allocation23_spill] sm:$0xff] }
 0x213   :  { %v4361_v10 = vsel %vm4353_vm10, %v4296_v6, %v8287_v60  ;;  %v4037_v28 = vsel %vm4028_vm5, %v3972_v41, %v12123_v42  ;;  %v12124_v6 = vld [vmem:[#allocation65_spill] sm:$0xff] }
 0x214   :  { %v8468_v22 = vpop.permute.xlu1 %3279  ;;  %v8470_v35 = vpop.permute.xlu0 %2521  ;;  %v4102_v60 = vsel %vm4093_vm6, %v4037_v28, %v12124_v6  ;;  %v764_v41 = vld [vmem:[%s11899_s5 + $0x48] sm:$0xff] }
 0x215   :  { %v4167_v9 = vsel %vm4158_vm7, %v4102_v60, %v7996_v36 }
 0x216   :  { %3287 = vrot.lane.b32.xlu1 %v1607_v18, %s6626_s29  ;;  %3033 = vrot.lane.b32.xlu0 %v1479_v30, %s6625_s28  ;;  %v5925_v18 = vld [vmem:[%s11899_s5 + $0xe70] sm:$0xff]  ;;  %v5862_v30 = vld [vmem:[%s11899_s5 + $0xc78] sm:$0xff]  ;;  %v4232_v36 = vsel %vm4223_vm8, %v4167_v9, %v7876_v14  ;;  %v12128_v9 = vld [vmem:[#allocation24_spill] sm:$0xff] }
 0x217   :  { %v1608_v4 = vmul.f32 %v5862_v30, %v7981_v26  ;;  %v4297_v30 = vsel %vm4288_vm9, %v4232_v36, %v8314_v52  ;;  %v5926_v14 = vld [vmem:[%s11899_s5 + $0xe78] sm:$0xff]  ;;  %v12130_v36 = vld [vmem:[#allocation72_spill] sm:$0xff] }
 0x218   :  { %v3786_v1 = vpop.permute.xlu1 %3785  ;;  %v3788_v15 = vpop.permute.xlu0 %3787 }
 0x219   :  { %v4426_v57 = vsel %vm4418_vm11, %v4361_v10, %v3786_v1  ;;  %v1736_v10 = vmul.f32 %v5925_v18, %v7981_v26 }
 0x21a   :  { %2523 = vrot.lane.b32.xlu1 %v1222_v13, %s6623_s25  ;;  %2269 = vrot.lane.b32.xlu0 %v1094_v62, %s6622_s26  ;;  %v5735_v13 = vld [vmem:[%s11899_s5 + $0x880] sm:$0xff]  ;;  %v12126_v62 = vld [vmem:[#allocation6_spill] sm:$0xff] }
 0x21b   :  { %6394 = vmatmul.mubr.msk.f32.gmra.mrb[6].mxu1 %vm4499_vm12, %v4426_v57  ;;  %v5672_v57 = vld [vmem:[%s11899_s5 + $0x688] sm:$0xff]  ;;  %v828_v18 = vmul.f32 %v764_v41, %v12126_v62  ;;  %v1351_v6 = vmul.f32 %v5735_v13, %v12119_v56  ;;  %v12129_v13 = vld [vmem:[#allocation31_spill] sm:$0xff] }
 0x21c   :  { %v3278_v50 = vpop.permute.xlu1 %3277  ;;  %v8505_v1 = vpop.permute.xlu0 %2027  ;;  %v1223_v60 = vmul.f32 %v5672_v57, %v12119_v56 }
 0x21d   :  { %12125 = vst [vmem:[#allocation49_spill] sm:$0xff] %v8505_v1  ;;  %v3973_v52 = vsel %vm3963_vm4, %v828_v18, %v12128_v9  ;;  %v1737_v9 = vmul.f32 %v5926_v14, %v7979_v49 }
 0x21e   :  { %3543 = vrot.lane.b32.xlu1 %v1736_v10, %s6627_s16  ;;  %3289 = vrot.lane.b32.xlu0 %v1608_v4, %s6626_s29  ;;  %v5989_v4 = vld [vmem:[%s11899_s5 + $0x1070] sm:$0xff]  ;;  %v4038_v57 = vsel %vm4028_vm5, %v3973_v52, %v12129_v13 }
 0x21f   :  { %v765_v10 = vld [vmem:[%s11899_s5 + $0x50] sm:$0xff]  ;;  %v4103_v62 = vsel %vm4093_vm6, %v4038_v57, %v12130_v36  ;;  %v12135_v36 = vld [vmem:[#allocation60_spill] sm:$0xff] }
 0x220   :  { %v8525_v42 = vpop.permute.xlu1 %2033  ;;  %v3532_v28 = vpop.permute.xlu0 %3531 }
 0x221   :  { %12127 = vst [vmem:[#allocation50_spill] sm:$0xff] %v8525_v42  ;;  %v4362_v1 = vsel %vm4353_vm10, %v4297_v30, %v3532_v28  ;;  %v1865_v28 = vmul.f32 %v5989_v4, %v7979_v49  ;;  %v12133_v4 = vld [vmem:[#allocation68_spill] sm:$0xff] }
 0x222   :  { %2779 = vrot.lane.b32.xlu1 %v1351_v6, %s6624_s27  ;;  %2525 = vrot.lane.b32.xlu0 %v1223_v60, %s6623_s25  ;;  %v4427_v41 = vsel %vm4418_vm11, %v4362_v1, %v3788_v15  ;;  %v12131_v6 = vld [vmem:[#allocation5_spill] sm:$0xff]  ;;  %v5799_v15 = vld [vmem:[%s11899_s5 + $0xa80] sm:$0xff]  ;;  %v4168_v14 = vsel %vm4158_vm7, %v4103_v62, %v12133_v4  ;;  %v5609_v62 = vld [vmem:[%s11899_s5 + $0x490] sm:$0xff] }
 0x223   :  { %6396 = vmatprep.mubr.msk.f32.mxu1 %vm4499_vm12, %v4427_v41  ;;  %v829_v42 = vmul.f32 %v765_v10, %v12131_v6  ;;  %v5736_v1 = vld [vmem:[%s11899_s5 + $0x888] sm:$0xff]  ;;  %v766_v10 = vld [vmem:[%s11899_s5 + $0x58] sm:$0xff]  ;;  %v4233_v41 = vsel %vm4223_vm8, %v4168_v14, %v8157_v34  ;;  %v1095_v47 = vmul.f32 %v5609_v62, %v12138_v11 }
 0x224   :  { %v3792_v30 = vpop.permute.xlu1 %3791  ;;  %v8549_v18 = vpop.permute.xlu0 %3537  ;;  %v12132_v60 = vld [vmem:[#allocation37_spill] sm:$0xff]  ;;  %v5990_v6 = vld [vmem:[%s11899_s5 + $0x1078] sm:$0xff] }
 0x225   :  { %v3974_v52 = vsel %vm3963_vm4, %v829_v42, %v12132_v60  ;;  %v4298_v42 = vsel %vm4288_vm9, %v4233_v41, %v3278_v50  ;;  %v12136_v60 = vld [vmem:[#allocation29_spill] sm:$0xff] }
 0x226   :  { %3799 = vrot.lane.b32.xlu1 %v1865_v28, %s6628_s21  ;;  %3545 = vrot.lane.b32.xlu0 %v1737_v9, %s6627_s16  ;;  %v1480_v28 = vmul.f32 %v5799_v15, %v12135_v36  ;;  %v1352_v9 = vmul.f32 %v5736_v1, %v12135_v36  ;;  %v4039_v34 = vsel %vm4028_vm5, %v3974_v52, %v12136_v60  ;;  %v12137_v15 = vld [vmem:[#allocation8_spill] sm:$0xff] }
 0x227   :  { %v830_v4 = vmul.f32 %v766_v10, %v12137_v15  ;;  %v4104_v50 = vsel %vm4093_vm6, %v4039_v34, %v7901_v24  ;;  %v4363_v41 = vsel %vm4353_vm10, %v4298_v42, %v8450_v31  ;;  %v1866_v52 = vmul.f32 %v5990_v6, %v8007_v7  ;;  %v5863_v10 = vld [vmem:[%s11899_s5 + $0xc80] sm:$0xff]  ;;  %v5800_v24 = vld [vmem:[%s11899_s5 + $0xa88] sm:$0xff] }
 0x228   :  { %v8571_v13 = vpop.permute.xlu1 %3283  ;;  %v8573_v57 = vpop.permute.xlu0 %2031  ;;  %v4169_v1 = vsel %vm4158_vm7, %v4104_v50, %v8184_v46  ;;  %v12139_v46 = vld [vmem:[#allocation28_spill] sm:$0xff]  ;;  %v1481_v50 = vmul.f32 %v5800_v24, %v7849_v12 }
 0x229   :  { %12134 = vst [vmem:[#allocation18_spill] sm:$0xff] %v8573_v57  ;;  %v767_v31 = vld [vmem:[%s11899_s5 + $0x60] sm:$0xff]  ;;  %v4234_v6 = vsel %vm4223_vm8, %v4169_v1, %v8070_v3  ;;  %v5673_v3 = vld [vmem:[%s11899_s5 + $0x690] sm:$0xff] }
 0x22a   :  { %3035 = vrot.lane.b32.xlu1 %v1480_v28, %s6625_s28  ;;  %2781 = vrot.lane.b32.xlu0 %v1352_v9, %s6624_s27  ;;  %v3975_v9 = vsel %vm3963_vm4, %v830_v4, %v12139_v46  ;;  %v12140_v42 = vld [vmem:[#allocation44_spill] sm:$0xff]  ;;  %v4299_v34 = vsel %vm4288_vm9, %v4234_v6, %v8468_v22  ;;  %v12142_v1 = vld [vmem:[#allocation58_spill] sm:$0xff] }
 0x22b   :  { %v4040_v62 = vsel %vm4028_vm5, %v3975_v9, %v12140_v42  ;;  %v12143_v42 = vld [vmem:[#allocation30_spill] sm:$0xff]  ;;  %v5927_v6 = vld [vmem:[%s11899_s5 + $0xe80] sm:$0xff] }
 0x22c   :  { %v3790_v14 = vpop.permute.xlu1 %3789  ;;  %v3282_v57 = vpop.permute.xlu0 %3281  ;;  %v4105_v60 = vsel %vm4093_vm6, %v4040_v62, %v8021_v32  ;;  %v5610_v32 = vld [vmem:[%s11899_s5 + $0x498] sm:$0xff] }
 0x22d   :  { %v4428_v28 = vsel %vm4418_vm11, %v4363_v41, %v3790_v14  ;;  %v12141_v14 = vld [vmem:[#allocation7_spill] sm:$0xff]  ;;  %v1096_v62 = vmul.f32 %v5610_v32, %v12143_v42 }
 0x22e   :  { %2271 = vrot.lane.b32.xlu1 %v1095_v47, %s6622_s26  ;;  %3801 = vrot.lane.b32.xlu0 %v1866_v52, %s6628_s21  ;;  %v1609_v47 = vmul.f32 %v5863_v10, %v7979_v49  ;;  %v831_v41 = vmul.f32 %v767_v31, %v12141_v14  ;;  %v4170_v10 = vsel %vm4158_vm7, %v4105_v60, %v7921_v16  ;;  %v5864_v16 = vld [vmem:[%s11899_s5 + $0xc88] sm:$0xff]  ;;  %v12144_v60 = vld [vmem:[#allocation48_spill] sm:$0xff] }
 0x22f   :  { %6397 = vmatmul.mubr.msk.f32.gmra.mrb[8].mxu1 %vm4499_vm12, %v4428_v28  ;;  %v4235_v24 = vsel %vm4223_vm8, %v4170_v10, %v8316_v43  ;;  %v1224_v31 = vmul.f32 %v5673_v3, %v12135_v36  ;;  %v1738_v14 = vmul.f32 %v5927_v6, %v8007_v7  ;;  %v5737_v3 = vld [vmem:[%s11899_s5 + $0x890] sm:$0xff] }
 0x230   :  { %v3536_v15 = vpop.permute.xlu1 %3535  ;;  %v8620_v4 = vpop.permute.xlu0 %3541  ;;  %v3976_v28 = vsel %vm3963_vm4, %v831_v41, %v12142_v1  ;;  %v1610_v41 = vmul.f32 %v5864_v16, %v8007_v7  ;;  %v1353_v1 = vmul.f32 %v5737_v3, %v7849_v12  ;;  %v5801_v16 = vld [vmem:[%s11899_s5 + $0xa90] sm:$0xff]  ;;  %v12149_v3 = vld [vmem:[#allocation25_spill] sm:$0xff] }
 0x231   :  { %v4364_v52 = vsel %vm4353_vm10, %v4299_v34, %v3536_v15  ;;  %v4041_v43 = vsel %vm4028_vm5, %v3976_v28, %v12144_v60  ;;  %v5738_v60 = vld [vmem:[%s11899_s5 + $0x898] sm:$0xff] }
 0x232   :  { %3291 = vrot.lane.b32.xlu1 %v1609_v47, %s6626_s29  ;;  %3037 = vrot.lane.b32.xlu0 %v1481_v50, %s6625_s28  ;;  %v4429_v22 = vsel %vm4418_vm11, %v4364_v52, %v3792_v30  ;;  %v4300_v30 = vsel %vm4288_vm9, %v4235_v24, %v3282_v57  ;;  %v4106_v34 = vsel %vm4093_vm6, %v4041_v43, %v7943_v40  ;;  %v5674_v40 = vld [vmem:[%s11899_s5 + $0x698] sm:$0xff]  ;;  %v5991_v24 = vld [vmem:[%s11899_s5 + $0x1080] sm:$0xff] }
 0x233   :  { %6399 = vmatprep.mubr.msk.f32.mxu1 %vm4499_vm12, %v4429_v22  ;;  %v4171_v57 = vsel %vm4158_vm7, %v4106_v34, %v8228_v33  ;;  %v4365_v47 = vsel %vm4353_vm10, %v4300_v30, %v8549_v18  ;;  %v1225_v28 = vmul.f32 %v5674_v40, %v7849_v12  ;;  %v1867_v30 = vmul.f32 %v5991_v24, %v8000_v51 }
 0x234   :  { %v8642_v46 = vpop.permute.xlu1 %2037  ;;  %v8644_v9 = vpop.permute.xlu0 %2035  ;;  %v4236_v33 = vsel %vm4223_vm8, %v4171_v57, %v8128_v44  ;;  %v5928_v44 = vld [vmem:[%s11899_s5 + $0xe88] sm:$0xff]  ;;  %v12146_v57 = vld [vmem:[#allocation70_spill] sm:$0xff] }
 0x235   :  { %v4301_v18 = vsel %vm4288_vm9, %v4236_v33, %v8571_v13  ;;  %v1739_v6 = vmul.f32 %v5928_v44, %v8000_v51  ;;  %v5675_v44 = vld [vmem:[%s11899_s5 + $0x6a0] sm:$0xff] }
 0x236   :  { %2527 = vrot.lane.b32.xlu1 %v1224_v31, %s6623_s25  ;;  %2273 = vrot.lane.b32.xlu0 %v1096_v62, %s6622_s26 }
 0x238   :  { %v3796_v15 = vpop.permute.xlu1 %3795  ;;  %v3794_v50 = vpop.permute.xlu0 %3793 }
 0x239   :  { %v4430_v52 = vsel %vm4418_vm11, %v4365_v47, %v3794_v50  ;;  %v1354_v47 = vmul.f32 %v5738_v60, %v12146_v57  ;;  %v5611_v50 = vld [vmem:[%s11899_s5 + $0x4a0] sm:$0xff]  ;;  %v12154_v60 = vld [vmem:[#allocation55_spill] sm:$0xff] }
 0x23a   :  { %3547 = vrot.lane.b32.xlu1 %v1738_v14, %s6627_s16  ;;  %3293 = vrot.lane.b32.xlu0 %v1610_v41, %s6626_s29  ;;  %v5992_v14 = vld [vmem:[%s11899_s5 + $0x1088] sm:$0xff]  ;;  %v1097_v40 = vmul.f32 %v5611_v50, %v12149_v3  ;;  %v5866_v50 = vld [vmem:[%s11899_s5 + $0xc98] sm:$0xff] }
 0x23b   :  { %6400 = vmatmul.mubr.msk.f32.gmra.mrb[10].mxu1 %vm4499_vm12, %v4430_v52  ;;  %v1868_v33 = vmul.f32 %v5992_v14, %v8029_v61 }
 0x23c   :  { %v3540_v32 = vpop.permute.xlu1 %3539  ;;  %v8681_v22 = vpop.permute.xlu0 %3285 }
 0x23d   :  { %v4366_v10 = vsel %vm4353_vm10, %v4301_v18, %v3540_v32  ;;  %v5865_v18 = vld [vmem:[%s11899_s5 + $0xc90] sm:$0xff]  ;;  %v5802_v32 = vld [vmem:[%s11899_s5 + $0xa98] sm:$0xff] }
 0x23e   :  { %2783 = vrot.lane.b32.xlu1 %v1353_v1, %s6624_s27  ;;  %2529 = vrot.lane.b32.xlu0 %v1225_v28, %s6623_s25  ;;  %v4431_v13 = vsel %vm4418_vm11, %v4366_v10, %v3796_v15  ;;  %v1482_v15 = vmul.f32 %v5801_v16, %v12146_v57  ;;  %v1611_v10 = vmul.f32 %v5865_v18, %v8000_v51 }
 0x23f   :  { %6402 = vmatprep.mubr.msk.f32.mxu1 %vm4499_vm12, %v4431_v13  ;;  %v1483_v24 = vmul.f32 %v5802_v32, %v7919_v0  ;;  %v5612_v13 = vld [vmem:[%s11899_s5 + $0x4a8] sm:$0xff]  ;;  %v1226_v16 = vmul.f32 %v5675_v44, %v12146_v57  ;;  %v1612_v18 = vmul.f32 %v5866_v50, %v8029_v61  ;;  %v5739_v32 = vld [vmem:[%s11899_s5 + $0x8a0] sm:$0xff] }
 0x240   :  { %v8696_v31 = vpop.permute.xlu1 %2041  ;;  %v8698_v62 = vpop.permute.xlu0 %2039 }
 0x242   :  { %3803 = vrot.lane.b32.xlu1 %v1867_v30, %s6628_s21  ;;  %3549 = vrot.lane.b32.xlu0 %v1739_v6, %s6627_s16 }
 0x244   :  { %v8710_v43 = vpop.permute.xlu1 %2045  ;;  %v8712_v34 = vpop.permute.xlu0 %2043 }
 0x245   :  { %12145 = vst [vmem:[#allocation53_spill] sm:$0xff] %v8710_v43 }
 0x246   :  { %3039 = vrot.lane.b32.xlu1 %v1482_v15, %s6625_s28  ;;  %2785 = vrot.lane.b32.xlu0 %v1354_v47, %s6624_s27  ;;  %v1098_v15 = vmul.f32 %v5612_v13, %v12154_v60  ;;  %v5929_v47 = vld [vmem:[%s11899_s5 + $0xe90] sm:$0xff]  ;;  %v1355_v13 = vmul.f32 %v5739_v32, %v7919_v0 }
 0x248   :  { %v8724_v41 = vpop.permute.xlu1 %2049  ;;  %v8726_v52 = vpop.permute.xlu0 %2047 }
 0x249   :  { %12147 = vst [vmem:[#allocation54_spill] sm:$0xff] %v8724_v41  ;;  %12148 = vst [vmem:[#allocation22_spill] sm:$0xff] %v8726_v52 }
 0x24a   :  { %2275 = vrot.lane.b32.xlu1 %v1097_v40, %s6622_s26  ;;  %3805 = vrot.lane.b32.xlu0 %v1868_v33, %s6628_s21  ;;  %v1740_v33 = vmul.f32 %v5929_v47, %v8029_v61  ;;  %v5930_v47 = vld [vmem:[%s11899_s5 + $0xe98] sm:$0xff] }
 0x24b   :  { %v1741_v32 = vmul.f32 %v5930_v47, %v8025_v58 }
 0x24c   :  { %v8738_v1 = vpop.permute.xlu1 %2053  ;;  %v8740_v28 = vpop.permute.xlu0 %2051 }
 0x24d   :  { %12150 = vst [vmem:[#allocation56_spill] sm:$0xff] %v8738_v1  ;;  %12151 = vst [vmem:[#allocation71_spill] sm:$0xff] %v8740_v28 }
 0x24e   :  { %3295 = vrot.lane.b32.xlu1 %v1611_v10, %s6626_s29  ;;  %3041 = vrot.lane.b32.xlu0 %v1483_v24, %s6625_s28  ;;  %v5676_v10 = vld [vmem:[%s11899_s5 + $0x6a8] sm:$0xff] }
 0x250   :  { %v8752_v30 = vpop.permute.xlu1 %2057  ;;  %v8754_v6 = vpop.permute.xlu0 %2055 }
 0x251   :  { %12152 = vst [vmem:[#allocation64_spill] sm:$0xff] %v8752_v30  ;;  %12153 = vst [vmem:[#allocation17_spill] sm:$0xff] %v8754_v6 }
 0x252   :  { %2531 = vrot.lane.b32.xlu1 %v1226_v16, %s6623_s25  ;;  %2277 = vrot.lane.b32.xlu0 %v1098_v15, %s6622_s26  ;;  %v1227_v16 = vmul.f32 %v5676_v10, %v7919_v0  ;;  %v5993_v15 = vld [vmem:[%s11899_s5 + $0x1090] sm:$0xff]  ;;  %v5803_v10 = vld [vmem:[%s11899_s5 + $0xaa0] sm:$0xff] }
 0x254   :  { %v8766_v14 = vpop.permute.xlu1 %2061  ;;  %v8768_v40 = vpop.permute.xlu0 %2059 }
 0x255   :  { %12155 = vst [vmem:[#allocation26_spill] sm:$0xff] %v8766_v14  ;;  %12156 = vst [vmem:[#allocation61_spill] sm:$0xff] %v8768_v40  ;;  %v5805_v14 = vld [vmem:[%s11899_s5 + $0xab0] sm:$0xff]  ;;  %v12176_v40 = vld [vmem:[#allocation36_spill] sm:$0xff] }
 0x256   :  { %3551 = vrot.lane.b32.xlu1 %v1740_v33, %s6627_s16  ;;  %3297 = vrot.lane.b32.xlu0 %v1612_v18, %s6626_s29  ;;  %v1869_v18 = vmul.f32 %v5993_v15, %v8025_v58  ;;  %v1484_v15 = vmul.f32 %v5803_v10, %v7886_v25 }
 0x258   :  { %v8780_v24 = vpop.permute.xlu1 %2065  ;;  %v8782_v44 = vpop.permute.xlu0 %2063 }
 0x259   :  { %12157 = vst [vmem:[#allocation13_spill] sm:$0xff] %v8780_v24  ;;  %12158 = vst [vmem:[#allocation57_spill] sm:$0xff] %v8782_v44  ;;  %v5740_v24 = vld [vmem:[%s11899_s5 + $0x8a8] sm:$0xff] }
 0x25a   :  { %2787 = vrot.lane.b32.xlu1 %v1355_v13, %s6624_s27  ;;  %2533 = vrot.lane.b32.xlu0 %v1227_v16, %s6623_s25  ;;  %v1356_v47 = vmul.f32 %v5740_v24, %v7886_v25 }
 0x25c   :  { %v8794_v50 = vpop.permute.xlu1 %2069  ;;  %v8796_v33 = vpop.permute.xlu0 %2067 }
 0x25d   :  { %12159 = vst [vmem:[#allocation66_spill] sm:$0xff] %v8794_v50  ;;  %12160 = vst [vmem:[#allocation27_spill] sm:$0xff] %v8796_v33  ;;  %v5613_v50 = vld [vmem:[%s11899_s5 + $0x4b0] sm:$0xff]  ;;  %v5994_v33 = vld [vmem:[%s11899_s5 + $0x1098] sm:$0xff] }
 0x25e   :  { %3807 = vrot.lane.b32.xlu1 %v1869_v18, %s6628_s21  ;;  %3553 = vrot.lane.b32.xlu0 %v1741_v32, %s6627_s16  ;;  %v1099_v10 = vmul.f32 %v5613_v50, %v12121_v23  ;;  %v1870_v24 = vmul.f32 %v5994_v33, %v8054_v19 }
 0x260   :  { %v8808_v13 = vpop.permute.xlu1 %2073  ;;  %v8810_v16 = vpop.permute.xlu0 %2071 }
 0x261   :  { %12161 = vst [vmem:[#allocation39_spill] sm:$0xff] %v8808_v13  ;;  %12162 = vst [vmem:[#allocation23_spill] sm:$0xff] %v8810_v16  ;;  %v5867_v13 = vld [vmem:[%s11899_s5 + $0xca0] sm:$0xff]  ;;  %v5804_v16 = vld [vmem:[%s11899_s5 + $0xaa8] sm:$0xff] }
 0x262   :  { %3043 = vrot.lane.b32.xlu1 %v1484_v15, %s6625_s28  ;;  %2789 = vrot.lane.b32.xlu0 %v1356_v47, %s6624_s27  ;;  %v1613_v50 = vmul.f32 %v5867_v13, %v8025_v58  ;;  %v1485_v33 = vmul.f32 %v5804_v16, %v7981_v26 }
 0x264   :  { %v8822_v18 = vpop.permute.xlu1 %2077  ;;  %v8824_v32 = vpop.permute.xlu0 %2075 }
 0x265   :  { %12163 = vst [vmem:[#allocation65_spill] sm:$0xff] %v8822_v18  ;;  %12164 = vst [vmem:[#allocation6_spill] sm:$0xff] %v8824_v32  ;;  %v5677_v18 = vld [vmem:[%s11899_s5 + $0x6b0] sm:$0xff]  ;;  %v5614_v32 = vld [vmem:[%s11899_s5 + $0x4b8] sm:$0xff] }
 0x266   :  { %2279 = vrot.lane.b32.xlu1 %v1099_v10, %s6622_s26  ;;  %3809 = vrot.lane.b32.xlu0 %v1870_v24, %s6628_s21  ;;  %v1228_v13 = vmul.f32 %v5677_v18, %v7886_v25  ;;  %v1100_v16 = vmul.f32 %v5614_v32, %v12119_v56 }
 0x268   :  { %v8836_v15 = vpop.permute.xlu1 %2081  ;;  %v8838_v47 = vpop.permute.xlu0 %2079 }
 0x269   :  { %12165 = vst [vmem:[#allocation24_spill] sm:$0xff] %v8836_v15  ;;  %12166 = vst [vmem:[#allocation31_spill] sm:$0xff] %v8838_v47  ;;  %v5931_v15 = vld [vmem:[%s11899_s5 + $0xea0] sm:$0xff]  ;;  %v5868_v47 = vld [vmem:[%s11899_s5 + $0xca8] sm:$0xff] }
 0x26a   :  { %3299 = vrot.lane.b32.xlu1 %v1613_v50, %s6626_s29  ;;  %3045 = vrot.lane.b32.xlu0 %v1485_v33, %s6625_s28  ;;  %v1742_v18 = vmul.f32 %v5931_v15, %v8054_v19  ;;  %v1614_v32 = vmul.f32 %v5868_v47, %v8054_v19 }
 0x26c   :  { %v8850_v10 = vpop.permute.xlu1 %2085  ;;  %v8852_v24 = vpop.permute.xlu0 %2083 }
 0x26d   :  { %12167 = vst [vmem:[#allocation72_spill] sm:$0xff] %v8850_v10  ;;  %12168 = vst [vmem:[#allocation5_spill] sm:$0xff] %v8852_v24  ;;  %v5741_v10 = vld [vmem:[%s11899_s5 + $0x8b0] sm:$0xff]  ;;  %v5678_v24 = vld [vmem:[%s11899_s5 + $0x6b8] sm:$0xff] }
 0x26e   :  { %2535 = vrot.lane.b32.xlu1 %v1228_v13, %s6623_s25  ;;  %2281 = vrot.lane.b32.xlu0 %v1100_v16, %s6622_s26  ;;  %v1357_v15 = vmul.f32 %v5741_v10, %v7981_v26  ;;  %v1229_v47 = vmul.f32 %v5678_v24, %v7981_v26 }
 0x270   :  { %v8864_v50 = vpop.permute.xlu1 %2089  ;;  %v8866_v33 = vpop.permute.xlu0 %2087 }
 0x271   :  { %12169 = vst [vmem:[#allocation37_spill] sm:$0xff] %v8864_v50  ;;  %12170 = vst [vmem:[#allocation68_spill] sm:$0xff] %v8866_v33  ;;  %v768_v50 = vld [vmem:[%s11899_s5 + $0x68] sm:$0xff]  ;;  %v5995_v33 = vld [vmem:[%s11899_s5 + $0x10a0] sm:$0xff] }
 0x272   :  { %3555 = vrot.lane.b32.xlu1 %v1742_v18, %s6627_s16  ;;  %3301 = vrot.lane.b32.xlu0 %v1614_v32, %s6626_s29  ;;  %v5932_v18 = vld [vmem:[%s11899_s5 + $0xea8] sm:$0xff]  ;;  %v12173_v32 = vld [vmem:[#allocation10_spill] sm:$0xff] }
 0x273   :  { %v832_v10 = vmul.f32 %v768_v50, %v12173_v32  ;;  %v1743_v44 = vmul.f32 %v5932_v18, %v8050_v17  ;;  %v12177_v50 = vld [vmem:[#allocation73_spill] sm:$0xff] }
 0x274   :  { %v8878_v13 = vpop.permute.xlu1 %2093  ;;  %v8880_v16 = vpop.permute.xlu0 %2091 }
 0x275   :  { %12171 = vst [vmem:[#allocation60_spill] sm:$0xff] %v8878_v13  ;;  %12172 = vst [vmem:[#allocation29_spill] sm:$0xff] %v8880_v16  ;;  %v1871_v16 = vmul.f32 %v5995_v33, %v8050_v17 }
 0x276   :  { %2791 = vrot.lane.b32.xlu1 %v1357_v15, %s6624_s27  ;;  %2537 = vrot.lane.b32.xlu0 %v1229_v47, %s6623_s25  ;;  %v5742_v15 = vld [vmem:[%s11899_s5 + $0x8b8] sm:$0xff]  ;;  %v3977_v47 = vsel %vm3963_vm4, %v832_v10, %v12176_v40  ;;  %v5615_v40 = vld [vmem:[%s11899_s5 + $0x4c0] sm:$0xff] }
 0x277   :  { %v4042_v33 = vsel %vm4028_vm5, %v3977_v47, %v12177_v50  ;;  %v1358_v30 = vmul.f32 %v5742_v15, %v7979_v49  ;;  %v1101_v15 = vmul.f32 %v5615_v40, %v12135_v36 }
 0x278   :  { %v8896_v13 = vpop.permute.xlu1 %2097  ;;  %v8898_v24 = vpop.permute.xlu0 %2095  ;;  %v4107_v18 = vsel %vm4093_vm6, %v4042_v33, %v8345_v8 }
 0x279   :  { %12174 = vst [vmem:[#allocation8_spill] sm:$0xff] %v8896_v13  ;;  %12175 = vst [vmem:[#allocation16_spill] sm:$0xff] %v8898_v24  ;;  %v1486_v24 = vmul.f32 %v5805_v14, %v7979_v49  ;;  %v4172_v8 = vsel %vm4158_vm7, %v4107_v18, %v8230_v20  ;;  %v5806_v20 = vld [vmem:[%s11899_s5 + $0xab8] sm:$0xff] }
 0x27a   :  { %3811 = vrot.lane.b32.xlu1 %v1871_v16, %s6628_s21  ;;  %3557 = vrot.lane.b32.xlu0 %v1743_v44, %s6627_s16  ;;  %v5996_v44 = vld [vmem:[%s11899_s5 + $0x10a8] sm:$0xff]  ;;  %v4237_v14 = vsel %vm4223_vm8, %v4172_v8, %v8452_v5  ;;  %v1487_v18 = vmul.f32 %v5806_v20, %v8007_v7  ;;  %v5870_v20 = vld [vmem:[%s11899_s5 + $0xcb8] sm:$0xff] }
 0x27b   :  { %v1872_v47 = vmul.f32 %v5996_v44, %v8078_v63  ;;  %v4302_v50 = vsel %vm4288_vm9, %v4237_v14, %v8681_v22  ;;  %v5679_v44 = vld [vmem:[%s11899_s5 + $0x6c0] sm:$0xff]  ;;  %v5616_v8 = vld [vmem:[%s11899_s5 + $0x4c8] sm:$0xff] }
 0x27c   :  { %v8916_v32 = vpop.permute.xlu1 %2101  ;;  %v8918_v13 = vpop.permute.xlu0 %2099 }
 0x27d   :  { %12178 = vst [vmem:[#allocation28_spill] sm:$0xff] %v8916_v32  ;;  %12179 = vst [vmem:[#allocation44_spill] sm:$0xff] %v8918_v13  ;;  %v5997_v13 = vld [vmem:[%s11899_s5 + $0x10b0] sm:$0xff] }
 0x27e   :  { %3047 = vrot.lane.b32.xlu1 %v1486_v24, %s6625_s28  ;;  %2793 = vrot.lane.b32.xlu0 %v1358_v30, %s6624_s27  ;;  %v5869_v30 = vld [vmem:[%s11899_s5 + $0xcb0] sm:$0xff]  ;;  %v4367_v24 = vsel %vm4353_vm10, %v4302_v50, %v8620_v4 }
 0x27f   :  { %v1615_v22 = vmul.f32 %v5869_v30, %v8050_v17  ;;  %v769_v50 = vld [vmem:[%s11899_s5 + $0x70] sm:$0xff] }
 0x280   :  { %v8934_v16 = vpop.permute.xlu1 %2105  ;;  %v8936_v10 = vpop.permute.xlu0 %2103  ;;  %v5933_v30 = vld [vmem:[%s11899_s5 + $0xeb0] sm:$0xff] }
 0x281   :  { %12180 = vst [vmem:[#allocation7_spill] sm:$0xff] %v8934_v16  ;;  %12181 = vst [vmem:[#allocation58_spill] sm:$0xff] %v8936_v10  ;;  %v12183_v10 = vld [vmem:[#allocation67_spill] sm:$0xff] }
 0x282   :  { %2283 = vrot.lane.b32.xlu1 %v1101_v15, %s6622_s26  ;;  %3813 = vrot.lane.b32.xlu0 %v1872_v47, %s6628_s21  ;;  %v1230_v15 = vmul.f32 %v5679_v44, %v7979_v49  ;;  %v1102_v47 = vmul.f32 %v5616_v8, %v7849_v12  ;;  %v1616_v44 = vmul.f32 %v5870_v20, %v8078_v63  ;;  %v5743_v8 = vld [vmem:[%s11899_s5 + $0x8c0] sm:$0xff]  ;;  %v12184_v16 = vld [vmem:[#allocation59_spill] sm:$0xff] }
 0x284   :  { %v8950_v5 = vpop.permute.xlu1 %2267  ;;  %v3798_v33 = vpop.permute.xlu0 %3797 }
 0x285   :  { %v4432_v40 = vsel %vm4418_vm11, %v4367_v24, %v3798_v33  ;;  %v12182_v24 = vld [vmem:[#allocation9_spill] sm:$0xff] }
 0x286   :  { %3303 = vrot.lane.b32.xlu1 %v1615_v22, %s6626_s29  ;;  %3049 = vrot.lane.b32.xlu0 %v1487_v18, %s6625_s28  ;;  %v833_v33 = vmul.f32 %v769_v50, %v12182_v24 }
 0x287   :  { %6403 = vmatmul.mubr.msk.f32.gmra.mrb[12].mxu1 %vm4499_vm12, %v4432_v40  ;;  %v1744_v40 = vmul.f32 %v5933_v30, %v8078_v63  ;;  %v1359_v30 = vmul.f32 %v5743_v8, %v8007_v7 }
 0x288   :  { %v3288_v4 = vpop.permute.xlu1 %3287  ;;  %v8966_v14 = vpop.permute.xlu0 %3033 }
 0x28a   :  { %2539 = vrot.lane.b32.xlu1 %v1230_v15, %s6623_s25  ;;  %2285 = vrot.lane.b32.xlu0 %v1102_v47, %s6622_s26  ;;  %v5680_v15 = vld [vmem:[%s11899_s5 + $0x6c8] sm:$0xff]  ;;  %v3978_v47 = vsel %vm3963_vm4, %v833_v33, %v12183_v10  ;;  %v5934_v10 = vld [vmem:[%s11899_s5 + $0xeb8] sm:$0xff] }
 0x28b   :  { %v1231_v20 = vmul.f32 %v5680_v15, %v8007_v7  ;;  %v4043_v32 = vsel %vm4028_vm5, %v3978_v47, %v12184_v16  ;;  %v93_v47 = vld [vmem:[%s11894_s0 + $0x1c8] sm:$0xff] }
 0x28c   :  { %v8982_v22 = vpop.permute.xlu1 %2523  ;;  %v8984_v18 = vpop.permute.xlu0 %2269  ;;  %v4108_v33 = vsel %vm4093_vm6, %v4043_v32, %v8155_v54  ;;  %v1873_v54 = vmul.f32 %v5997_v13, %v8074_v27  ;;  %v1745_v32 = vmul.f32 %v5934_v10, %v8074_v27 }
 0x28d   :  { %v4173_v16 = vsel %vm4158_vm7, %v4108_v33, %v8416_v39  ;;  %v5807_v39 = vld [vmem:[%s11899_s5 + $0xac0] sm:$0xff] }
 0x28e   :  { %3559 = vrot.lane.b32.xlu1 %v1744_v40, %s6627_s16  ;;  %3305 = vrot.lane.b32.xlu0 %v1616_v44, %s6626_s29  ;;  %v770_v40 = vld [vmem:[%s11899_s5 + $0x78] sm:$0xff]  ;;  %v92_v44 = vld [vmem:[%s11894_s0 + $0x1c0] sm:$0xff]  ;;  %v4238_v10 = vsel %vm4223_vm8, %v4173_v16, %v8343_v48  ;;  %v1488_v48 = vmul.f32 %v5807_v39, %v8000_v51 }
 0x28f   :  { %6354 = vmatprep.mubr.msk.f32.mxu0 %vm109_vm3, %v92_v44  ;;  %v4303_v33 = vsel %vm4288_vm9, %v4238_v10, %v3288_v4  ;;  %v12186_v44 = vld [vmem:[#allocation51_spill] sm:$0xff] }
 0x290   :  { %v3544_v50 = vpop.permute.xlu1 %3543  ;;  %v3290_v24 = vpop.permute.xlu0 %3289  ;;  %6355 = vmatmul.mubr.msk.f32.gmra.mrb[56].mxu0 %vm109_vm3, %v93_v47 }
 0x291   :  { %v4368_v1 = vsel %vm4353_vm10, %v4303_v33, %v3544_v50  ;;  %v5617_v50 = vld [vmem:[%s11899_s5 + $0x4d0] sm:$0xff]  ;;  %v5871_v33 = vld [vmem:[%s11899_s5 + $0xcc0] sm:$0xff] }
 0x292   :  { %2795 = vrot.lane.b32.xlu1 %v1359_v30, %s6624_s27  ;;  %2541 = vrot.lane.b32.xlu0 %v1231_v20, %s6623_s25  ;;  %v5744_v30 = vld [vmem:[%s11899_s5 + $0x8c8] sm:$0xff]  ;;  %v12185_v20 = vld [vmem:[#allocation12_spill] sm:$0xff] }
 0x293   :  { %v834_v13 = vmul.f32 %v770_v40, %v12185_v20  ;;  %v9049_v40 = vld [vmem:[%s11898_s4] ss:$0 sm:$0xff]  ;;  %v1360_v16 = vmul.f32 %v5744_v30, %v8000_v51  ;;  %v1103_v30 = vmul.f32 %v5617_v50, %v12146_v57 }
 0x294   :  { %v9020_v8 = vpop.permute.xlu1 %2779  ;;  %v9022_v15 = vpop.permute.xlu0 %2525 }
 0x295   :  { %v3979_v6 = vsel %vm3963_vm4, %v834_v13, %v12186_v44  ;;  %v5808_v44 = vld [vmem:[%s11899_s5 + $0xac8] sm:$0xff] }
 0x296   :  { %3815 = vrot.lane.b32.xlu1 %v1873_v54, %s6628_s21  ;;  %3561 = vrot.lane.b32.xlu0 %v1745_v32, %s6627_s16  ;;  %v4044_v54 = vsel %vm4028_vm5, %v3979_v6, %v8023_v37  ;;  %v5998_v32 = vld [vmem:[%s11899_s5 + $0x10b8] sm:$0xff] }
 0x297   :  { %v4109_v47 = vsel %vm4093_vm6, %v4044_v54, %v8470_v35  ;;  %v1874_v35 = vmul.f32 %v5998_v32, %v8106_v55 }
 0x298   :  { %v3800_v28 = vpop.permute.xlu1 %3799  ;;  %v3546_v41 = vpop.permute.xlu0 %3545  ;;  %v4174_v13 = vsel %vm4158_vm7, %v4109_v47, %v8391_v59  ;;  %v1617_v47 = vmul.f32 %v5871_v33, %v8074_v27 }
 0x299   :  { %v4433_v4 = vsel %vm4418_vm11, %v4368_v1, %v3800_v28 }
 0x29a   :  { %v6386_v20 = vpop.f32.mrb[0].mxu1  ;;  %3051 = vrot.lane.b32.xlu1 %v1488_v48, %s6625_s28  ;;  %2797 = vrot.lane.b32.xlu0 %v1360_v16, %s6624_s27  ;;  %v4239_v48 = vsel %vm4223_vm8, %v4174_v13, %v8966_v14  ;;  %v5872_v13 = vld [vmem:[%s11899_s5 + $0xcc8] sm:$0xff] }
 0x29b   :  { %v4764_v37 = vadd.f32 %v6386_v20, %v9049_v40  ;;  %v4758_v6 = vpop.f32.mrb[1].mxu1  ;;  %6405 = vmatprep.mubr.msk.f32.mxu1 %vm4499_vm12, %v4433_v4  ;;  %v4304_v54 = vsel %vm4288_vm9, %v4239_v48, %v3290_v24  ;;  %v1489_v20 = vmul.f32 %v5808_v44, %v8029_v61  ;;  %v5618_v24 = vld [vmem:[%s11899_s5 + $0x4d8] sm:$0xff]  ;;  %v1618_v48 = vmul.f32 %v5872_v13, %v8106_v55 }
 0x29c   :  { %v4759_v1 = vadd.f32 %v9049_v40, %v4758_v6  ;;  %v9069_v28 = vpop.permute.xlu1 %3035  ;;  %v9071_v39 = vpop.permute.xlu0 %2781  ;;  %v4369_v59 = vsel %vm4353_vm10, %v4304_v54, %v3546_v41  ;;  %v5745_v54 = vld [vmem:[%s11899_s5 + $0x8d0] sm:$0xff]  ;;  %v95_v13 = vld [vmem:[%s11894_s0 + $0x1d8] sm:$0xff] }
 0x29d   :  { %v5078_v10 = vmax.f32 %v4764_v37, 0.0  ;;  %v5681_v37 = vld [vmem:[%s11899_s5 + $0x6d0] sm:$0xff] }
 0x29e   :  { %v5077_v16 = vmax.f32 %v4759_v1, 0.0  ;;  %2287 = vrot.lane.b32.xlu1 %v1103_v30, %s6622_s26  ;;  %3817 = vrot.lane.b32.xlu0 %v1874_v35, %s6628_s21  ;;  %v1232_v1 = vmul.f32 %v5681_v37, %v8000_v51  ;;  %v1104_v30 = vmul.f32 %v5618_v24, %v7919_v0  ;;  %v5935_v35 = vld [vmem:[%s11899_s5 + $0xec0] sm:$0xff]  ;;  %v1361_v37 = vmul.f32 %v5745_v54, %v8029_v61 }
 0x29f   :  { %v1746_v44 = vmul.f32 %v5935_v35, %v8106_v55  ;;  %v94_v35 = vld [vmem:[%s11894_s0 + $0x1d0] sm:$0xff] }
 0x2a0   :  { %v9089_v4 = vmax.f32 %v5077_v16, %v5078_v10  ;;  %v9091_v50 = vpop.permute.xlu1 %2271  ;;  %v3802_v32 = vpop.permute.xlu0 %3801  ;;  %v771_v16 = vld [vmem:[%s11899_s5 + $0x80] sm:$0xff]  ;;  %6357 = vmatprep.mubr.msk.f32.mxu0 %vm109_vm3, %v94_v35 }
 0x2a1   :  { %v4434_v14 = vsel %vm4418_vm11, %v4369_v59, %v3802_v32  ;;  %v5682_v59 = vld [vmem:[%s11899_s5 + $0x6d8] sm:$0xff]  ;;  %6358 = vmatmul.mubr.msk.f32.gmra.mrb[58].mxu0 %vm109_vm3, %v95_v13 }
 0x2a2   :  { %12187 = vst [vmem:[#allocation30_spill] sm:$0xff] %v9089_v4  ;;  %3307 = vrot.lane.b32.xlu1 %v1617_v47, %s6626_s29  ;;  %3053 = vrot.lane.b32.xlu0 %v1489_v20, %s6625_s28  ;;  %v12188_v32 = vld [vmem:[#allocation11_spill] sm:$0xff]  ;;  %v1233_v24 = vmul.f32 %v5682_v59, %v8029_v61 }
 0x2a3   :  { %6406 = vmatmul.mubr.msk.f32.gmra.mrb[14].mxu1 %vm4499_vm12, %v4434_v14  ;;  %v835_v47 = vmul.f32 %v771_v16, %v12188_v32 }
 0x2a4   :  { %v3292_v41 = vpop.permute.xlu1 %3291  ;;  %v9105_v6 = vpop.permute.xlu0 %3037 }
 0x2a6   :  { %2543 = vrot.lane.b32.xlu1 %v1232_v1, %s6623_s25  ;;  %2289 = vrot.lane.b32.xlu0 %v1104_v30, %s6622_s26  ;;  %v5999_v1 = vld [vmem:[%s11899_s5 + $0x10c0] sm:$0xff]  ;;  %v5936_v30 = vld [vmem:[%s11899_s5 + $0xec8] sm:$0xff] }
 0x2a7   :  { %v1875_v32 = vmul.f32 %v5999_v1, %v8102_v29 }
 0x2a8   :  { %v9117_v10 = vpop.permute.xlu1 %2527  ;;  %v9119_v33 = vpop.permute.xlu0 %2273 }
 0x2aa   :  { %3563 = vrot.lane.b32.xlu1 %v1746_v44, %s6627_s16  ;;  %3309 = vrot.lane.b32.xlu0 %v1618_v48, %s6626_s29  ;;  %v3980_v44 = vsel %vm3963_vm4, %v835_v47, %v7923_v53  ;;  %v1747_v53 = vmul.f32 %v5936_v30, %v8102_v29  ;;  %v772_v47 = vld [vmem:[%s11899_s5 + $0x88] sm:$0xff]  ;;  %v12189_v30 = vld [vmem:[#allocation14_spill] sm:$0xff] }
 0x2ab   :  { %v4045_v48 = vsel %vm4028_vm5, %v3980_v44, %v8950_v5  ;;  %v836_v35 = vmul.f32 %v772_v47, %v12189_v30 }
 0x2ac   :  { %v3548_v20 = vpop.permute.xlu1 %3547  ;;  %v3294_v14 = vpop.permute.xlu0 %3293  ;;  %v4110_v16 = vsel %vm4093_vm6, %v4045_v48, %v8982_v22  ;;  %v5809_v22 = vld [vmem:[%s11899_s5 + $0xad0] sm:$0xff] }
 0x2ad   :  { %v4175_v5 = vsel %vm4158_vm7, %v4110_v16, %v9020_v8  ;;  %v1490_v48 = vmul.f32 %v5809_v22, %v8025_v58 }
 0x2ae   :  { %2799 = vrot.lane.b32.xlu1 %v1361_v37, %s6624_s27  ;;  %2545 = vrot.lane.b32.xlu0 %v1233_v24, %s6623_s25  ;;  %v5746_v37 = vld [vmem:[%s11899_s5 + $0x8d8] sm:$0xff]  ;;  %v4240_v24 = vsel %vm4223_vm8, %v4175_v5, %v9069_v28  ;;  %v5619_v28 = vld [vmem:[%s11899_s5 + $0x4e0] sm:$0xff] }
 0x2af   :  { %v4305_v1 = vsel %vm4288_vm9, %v4240_v24, %v3292_v41  ;;  %v1362_v16 = vmul.f32 %v5746_v37, %v8025_v58  ;;  %v6000_v41 = vld [vmem:[%s11899_s5 + $0x10c8] sm:$0xff]  ;;  %v1105_v37 = vmul.f32 %v5619_v28, %v7886_v25 }
 0x2b0   :  { %v9158_v54 = vpop.permute.xlu1 %2783  ;;  %v9160_v59 = vpop.permute.xlu0 %2529  ;;  %v4370_v8 = vsel %vm4353_vm10, %v4305_v1, %v3548_v20  ;;  %v1876_v24 = vmul.f32 %v6000_v41, %v8137_v2 }
 0x2b2   :  { %3819 = vrot.lane.b32.xlu1 %v1875_v32, %s6628_s21  ;;  %3565 = vrot.lane.b32.xlu0 %v1747_v53, %s6627_s16  ;;  %v12190_v32 = vld [vmem:[#allocation63_spill] sm:$0xff] }
 0x2b3   :  { %v3981_v53 = vsel %vm3963_vm4, %v836_v35, %v12190_v32 }
 0x2b4   :  { %v3804_v13 = vpop.permute.xlu1 %3803  ;;  %v3550_v44 = vpop.permute.xlu0 %3549  ;;  %v4046_v20 = vsel %vm4028_vm5, %v3981_v53, %v8984_v18  ;;  %v5873_v18 = vld [vmem:[%s11899_s5 + $0xcd0] sm:$0xff] }
 0x2b5   :  { %v4435_v52 = vsel %vm4418_vm11, %v4370_v8, %v3804_v13  ;;  %v4111_v47 = vsel %vm4093_vm6, %v4046_v20, %v9022_v15  ;;  %v1619_v41 = vmul.f32 %v5873_v18, %v8102_v29 }
 0x2b6   :  { %3055 = vrot.lane.b32.xlu1 %v1490_v48, %s6625_s28  ;;  %2801 = vrot.lane.b32.xlu0 %v1362_v16, %s6624_s27  ;;  %v4176_v1 = vsel %vm4158_vm7, %v4111_v47, %v9071_v39 }
 0x2b7   :  { %6408 = vmatprep.mubr.msk.f32.mxu1 %vm4499_vm12, %v4435_v52  ;;  %v5810_v52 = vld [vmem:[%s11899_s5 + $0xad8] sm:$0xff]  ;;  %v4241_v15 = vsel %vm4223_vm8, %v4176_v1, %v9105_v6 }
 0x2b8   :  { %v9201_v5 = vpop.permute.xlu1 %3039  ;;  %v9203_v22 = vpop.permute.xlu0 %2785  ;;  %v4306_v35 = vsel %vm4288_vm9, %v4241_v15, %v3294_v14  ;;  %v1491_v6 = vmul.f32 %v5810_v52, %v8054_v19  ;;  %v5683_v14 = vld [vmem:[%s11899_s5 + $0x6e0] sm:$0xff]  ;;  %v5937_v52 = vld [vmem:[%s11899_s5 + $0xed0] sm:$0xff]  ;;  %v5874_v15 = vld [vmem:[%s11899_s5 + $0xcd8] sm:$0xff] }
 0x2b9   :  { %v4371_v13 = vsel %vm4353_vm10, %v4306_v35, %v3550_v44  ;;  %v5620_v44 = vld [vmem:[%s11899_s5 + $0x4e8] sm:$0xff]  ;;  %v1234_v1 = vmul.f32 %v5683_v14, %v8025_v58 }
 0x2ba   :  { %v6389_v30 = vpop.f32.mrb[2].mxu1  ;;  %2291 = vrot.lane.b32.xlu1 %v1105_v37, %s6622_s26  ;;  %3821 = vrot.lane.b32.xlu0 %v1876_v24, %s6628_s21  ;;  %v1106_v18 = vmul.f32 %v5620_v44, %v7981_v26  ;;  %v6001_v44 = vld [vmem:[%s11899_s5 + $0x10d0] sm:$0xff] }
 0x2bb   :  { %v4774_v39 = vadd.f32 %v6389_v30, %v9049_v40  ;;  %v4768_v8 = vpop.f32.mrb[3].mxu1 }
 0x2bc   :  { %v4769_v48 = vadd.f32 %v9049_v40, %v4768_v8  ;;  %v9223_v16 = vpop.permute.xlu1 %2275  ;;  %v3806_v28 = vpop.permute.xlu0 %3805  ;;  %v1620_v8 = vmul.f32 %v5874_v15, %v8137_v2 }
 0x2bd   :  { %v5080_v32 = vmax.f32 %v4774_v39, 0.0  ;;  %v4436_v53 = vsel %vm4418_vm11, %v4371_v13, %v3806_v28  ;;  %v1748_v39 = vmul.f32 %v5937_v52, %v8137_v2  ;;  %v773_v13 = vld [vmem:[%s11899_s5 + $0x90] sm:$0xff]  ;;  %v5684_v28 = vld [vmem:[%s11899_s5 + $0x6e8] sm:$0xff] }
 0x2be   :  { %v5079_v20 = vmax.f32 %v4769_v48, 0.0  ;;  %3311 = vrot.lane.b32.xlu1 %v1619_v41, %s6626_s29  ;;  %3057 = vrot.lane.b32.xlu0 %v1491_v6, %s6625_s28  ;;  %v5747_v48 = vld [vmem:[%s11899_s5 + $0x8e0] sm:$0xff]  ;;  %v837_v41 = vmul.f32 %v773_v13, %v12117_v45  ;;  %v1235_v14 = vmul.f32 %v5684_v28, %v8054_v19  ;;  %v97_v45 = vld [vmem:[%s11894_s0 + $0x1e8] sm:$0xff]  ;;  %v1877_v13 = vmul.f32 %v6001_v44, %v8131_v38 }
 0x2bf   :  { %6409 = vmatmul.mubr.msk.f32.gmra.mrb[16].mxu1 %vm4499_vm12, %v4436_v53  ;;  %v1363_v53 = vmul.f32 %v5747_v48, %v8054_v19  ;;  %v774_v48 = vld [vmem:[%s11899_s5 + $0x98] sm:$0xff]  ;;  %v5748_v28 = vld [vmem:[%s11899_s5 + $0x8e8] sm:$0xff] }
 0x2c0   :  { %v9237_v47 = vmax.f32 %v5079_v20, %v5080_v32  ;;  %v3296_v37 = vpop.permute.xlu1 %3295  ;;  %v9239_v24 = vpop.permute.xlu0 %3041  ;;  %v5938_v20 = vld [vmem:[%s11899_s5 + $0xed8] sm:$0xff] }
 0x2c2   :  { %12191 = vst [vmem:[#allocation48_spill] sm:$0xff] %v9237_v47  ;;  %2547 = vrot.lane.b32.xlu1 %v1234_v1, %s6623_s25  ;;  %2293 = vrot.lane.b32.xlu0 %v1106_v18, %s6622_s26  ;;  %v96_v1 = vld [vmem:[%s11894_s0 + $0x1e0] sm:$0xff]  ;;  %v3982_v18 = vsel %vm3963_vm4, %v837_v41, %v8100_v21  ;;  %v1749_v21 = vmul.f32 %v5938_v20, %v8131_v38 }
 0x2c3   :  { %v4047_v52 = vsel %vm4028_vm5, %v3982_v18, %v9091_v50  ;;  %6360 = vmatprep.mubr.msk.f32.mxu0 %vm109_vm3, %v96_v1  ;;  %v1364_v18 = vmul.f32 %v5748_v28, %v8050_v17  ;;  %v12194_v28 = vld [vmem:[#allocation80_spill] sm:$0xff] }
 0x2c4   :  { %v9251_v30 = vpop.permute.xlu1 %2531  ;;  %v9253_v35 = vpop.permute.xlu0 %2277  ;;  %v4112_v15 = vsel %vm4093_vm6, %v4047_v52, %v9117_v10  ;;  %6361 = vmatmul.mubr.msk.f32.gmra.mrb[60].mxu0 %vm109_vm3, %v97_v45  ;;  %v5811_v10 = vld [vmem:[%s11899_s5 + $0xae0] sm:$0xff] }
 0x2c5   :  { %v4177_v50 = vsel %vm4158_vm7, %v4112_v15, %v9158_v54  ;;  %v1492_v45 = vmul.f32 %v5811_v10, %v8050_v17  ;;  %v12193_v15 = vld [vmem:[#allocation74_spill] sm:$0xff] }
 0x2c6   :  { %3567 = vrot.lane.b32.xlu1 %v1748_v39, %s6627_s16  ;;  %3313 = vrot.lane.b32.xlu0 %v1620_v8, %s6626_s29  ;;  %v4242_v41 = vsel %vm4223_vm8, %v4177_v50, %v9201_v5  ;;  %v5621_v5 = vld [vmem:[%s11899_s5 + $0x4f0] sm:$0xff] }
 0x2c7   :  { %v1107_v10 = vmul.f32 %v5621_v5, %v7979_v49 }
 0x2c8   :  { %v3552_v6 = vpop.permute.xlu1 %3551  ;;  %v3298_v32 = vpop.permute.xlu0 %3297 }
 0x2ca   :  { %2803 = vrot.lane.b32.xlu1 %v1363_v53, %s6624_s27  ;;  %2549 = vrot.lane.b32.xlu0 %v1235_v14, %s6623_s25  ;;  %v4307_v53 = vsel %vm4288_vm9, %v4242_v41, %v3296_v37  ;;  %v12192_v14 = vld [vmem:[#allocation21_spill] sm:$0xff]  ;;  %v6002_v37 = vld [vmem:[%s11899_s5 + $0x10d8] sm:$0xff] }
 0x2cb   :  { %v838_v44 = vmul.f32 %v774_v48, %v12192_v14  ;;  %v4372_v54 = vsel %vm4353_vm10, %v4307_v53, %v3552_v6  ;;  %v1878_v41 = vmul.f32 %v6002_v37, %v12194_v28  ;;  %v5812_v14 = vld [vmem:[%s11899_s5 + $0xae8] sm:$0xff] }
 0x2cc   :  { %v9292_v39 = vpop.permute.xlu1 %2787  ;;  %v9294_v8 = vpop.permute.xlu0 %2533 }
 0x2ce   :  { %3823 = vrot.lane.b32.xlu1 %v1877_v13, %s6628_s21  ;;  %3569 = vrot.lane.b32.xlu0 %v1749_v21, %s6627_s16  ;;  %v3983_v13 = vsel %vm3963_vm4, %v838_v44, %v12193_v15 }
 0x2cf   :  { %v4048_v6 = vsel %vm4028_vm5, %v3983_v13, %v9119_v33  ;;  %v5875_v33 = vld [vmem:[%s11899_s5 + $0xce0] sm:$0xff] }
 0x2d0   :  { %v3808_v20 = vpop.permute.xlu1 %3807  ;;  %v3554_v1 = vpop.permute.xlu0 %3553  ;;  %v4113_v21 = vsel %vm4093_vm6, %v4048_v6, %v9160_v59  ;;  %v1621_v37 = vmul.f32 %v5875_v33, %v8131_v38 }
 0x2d1   :  { %v4437_v52 = vsel %vm4418_vm11, %v4372_v54, %v3808_v20  ;;  %v4178_v53 = vsel %vm4158_vm7, %v4113_v21, %v9203_v22 }
 0x2d2   :  { %3059 = vrot.lane.b32.xlu1 %v1492_v45, %s6625_s28  ;;  %2805 = vrot.lane.b32.xlu0 %v1364_v18, %s6624_s27  ;;  %v4243_v59 = vsel %vm4223_vm8, %v4178_v53, %v9239_v24  ;;  %v1493_v24 = vmul.f32 %v5812_v14, %v8078_v63  ;;  %v5939_v14 = vld [vmem:[%s11899_s5 + $0xee0] sm:$0xff] }
 0x2d3   :  { %6411 = vmatprep.mubr.msk.f32.mxu1 %vm4499_vm12, %v4437_v52  ;;  %v4308_v54 = vsel %vm4288_vm9, %v4243_v59, %v3298_v32  ;;  %v5685_v32 = vld [vmem:[%s11899_s5 + $0x6f0] sm:$0xff]  ;;  %v5876_v59 = vld [vmem:[%s11899_s5 + $0xce8] sm:$0xff] }
 0x2d4   :  { %v9335_v48 = vpop.permute.xlu1 %3043  ;;  %v9337_v50 = vpop.permute.xlu0 %2789  ;;  %v4373_v45 = vsel %vm4353_vm10, %v4308_v54, %v3554_v1  ;;  %v5622_v1 = vld [vmem:[%s11899_s5 + $0x4f8] sm:$0xff]  ;;  %v1236_v53 = vmul.f32 %v5685_v32, %v8050_v17 }
 0x2d5   :  { %v1108_v33 = vmul.f32 %v5622_v1, %v8007_v7  ;;  %v6003_v1 = vld [vmem:[%s11899_s5 + $0x10e0] sm:$0xff] }
 0x2d6   :  { %v6392_v44 = vpop.f32.mrb[4].mxu1  ;;  %2295 = vrot.lane.b32.xlu1 %v1107_v10, %s6622_s26  ;;  %3825 = vrot.lane.b32.xlu0 %v1878_v41, %s6628_s21 }
 0x2d7   :  { %v4784_v22 = vadd.f32 %v6392_v44, %v9049_v40  ;;  %v4778_v20 = vpop.f32.mrb[5].mxu1 }
 0x2d8   :  { %v4779_v18 = vadd.f32 %v9049_v40, %v4778_v20  ;;  %v9357_v52 = vpop.permute.xlu1 %2279  ;;  %v3810_v5 = vpop.permute.xlu0 %3809  ;;  %v1622_v20 = vmul.f32 %v5876_v59, %v12194_v28 }
 0x2d9   :  { %v5082_v15 = vmax.f32 %v4784_v22, 0.0  ;;  %v4438_v13 = vsel %vm4418_vm11, %v4373_v45, %v3810_v5  ;;  %v1750_v22 = vmul.f32 %v5939_v14, %v12194_v28  ;;  %v775_v45 = vld [vmem:[%s11899_s5 + $0xa0] sm:$0xff]  ;;  %v5686_v5 = vld [vmem:[%s11899_s5 + $0x6f8] sm:$0xff] }
 0x2da   :  { %v5081_v6 = vmax.f32 %v4779_v18, 0.0  ;;  %3315 = vrot.lane.b32.xlu1 %v1621_v37, %s6626_s29  ;;  %3061 = vrot.lane.b32.xlu0 %v1493_v24, %s6625_s28  ;;  %v5749_v18 = vld [vmem:[%s11899_s5 + $0x8f0] sm:$0xff]  ;;  %v839_v37 = vmul.f32 %v775_v45, %v12138_v11  ;;  %v1237_v32 = vmul.f32 %v5686_v5, %v8078_v63  ;;  %v99_v11 = vld [vmem:[%s11894_s0 + $0x1f8] sm:$0xff] }
 0x2db   :  { %6412 = vmatmul.mubr.msk.f32.gmra.mrb[18].mxu1 %vm4499_vm12, %v4438_v13  ;;  %v1365_v13 = vmul.f32 %v5749_v18, %v8078_v63  ;;  %v12197_v18 = vld [vmem:[#allocation79_spill] sm:$0xff] }
 0x2dc   :  { %v9371_v21 = vmax.f32 %v5081_v6, %v5082_v15  ;;  %v3300_v10 = vpop.permute.xlu1 %3299  ;;  %v9373_v41 = vpop.permute.xlu0 %3045  ;;  %v5940_v6 = vld [vmem:[%s11899_s5 + $0xee8] sm:$0xff]  ;;  %v1879_v5 = vmul.f32 %v6003_v1, %v12197_v18 }
 0x2de   :  { %12195 = vst [vmem:[#allocation70_spill] sm:$0xff] %v9371_v21  ;;  %2551 = vrot.lane.b32.xlu1 %v1236_v53, %s6623_s25  ;;  %2297 = vrot.lane.b32.xlu0 %v1108_v33, %s6622_s26  ;;  %v98_v53 = vld [vmem:[%s11894_s0 + $0x1f0] sm:$0xff]  ;;  %v12196_v33 = vld [vmem:[#allocation35_spill] sm:$0xff] }
 0x2df   :  { %v3984_v14 = vsel %vm3963_vm4, %v839_v37, %v12196_v33  ;;  %6363 = vmatprep.mubr.msk.f32.mxu0 %vm109_vm3, %v98_v53  ;;  %v1751_v37 = vmul.f32 %v5940_v6, %v12197_v18 }
 0x2e0   :  { %v9385_v44 = vpop.permute.xlu1 %2535  ;;  %v9387_v54 = vpop.permute.xlu0 %2281  ;;  %v4049_v59 = vsel %vm4028_vm5, %v3984_v14, %v9223_v16  ;;  %6364 = vmatmul.mubr.msk.f32.gmra.mrb[62].mxu0 %vm109_vm3, %v99_v11  ;;  %vm5268_vm3 = vcmask 982016  }
 0x2e2   :  { %3571 = vrot.lane.b32.xlu1 %v1750_v22, %s6627_s16  ;;  %3317 = vrot.lane.b32.xlu0 %v1622_v20, %s6626_s29  ;;  %v4114_v22 = vsel %vm4093_vm6, %v4049_v59, %v9251_v30  ;;  %v5813_v30 = vld [vmem:[%s11899_s5 + $0xaf0] sm:$0xff] }
 0x2e3   :  { %v4179_v16 = vsel %vm4158_vm7, %v4114_v22, %v9292_v39  ;;  %v1494_v14 = vmul.f32 %v5813_v30, %v8074_v27 }
 0x2e4   :  { %v3556_v24 = vpop.permute.xlu1 %3555  ;;  %v3302_v15 = vpop.permute.xlu0 %3301  ;;  %v4244_v1 = vsel %vm4223_vm8, %v4179_v16, %v9335_v48  ;;  %v5623_v48 = vld [vmem:[%s11899_s5 + $0x500] sm:$0xff] }
 0x2e5   :  { %v4309_v6 = vsel %vm4288_vm9, %v4244_v1, %v3300_v10  ;;  %v6004_v10 = vld [vmem:[%s11899_s5 + $0x10e8] sm:$0xff] }
 0x2e6   :  { %2807 = vrot.lane.b32.xlu1 %v1365_v13, %s6624_s27  ;;  %2553 = vrot.lane.b32.xlu0 %v1237_v32, %s6623_s25  ;;  %v776_v13 = vld [vmem:[%s11899_s5 + $0xa8] sm:$0xff]  ;;  %v5750_v32 = vld [vmem:[%s11899_s5 + $0x8f8] sm:$0xff]  ;;  %v4374_v39 = vsel %vm4353_vm10, %v4309_v6, %v3556_v24 }
 0x2e7   :  { %v840_v53 = vmul.f32 %v776_v13, %v12143_v42  ;;  %v1366_v59 = vmul.f32 %v5750_v32, %v8074_v27 }
 0x2e8   :  { %v9426_v20 = vpop.permute.xlu1 %2791  ;;  %v9428_v45 = vpop.permute.xlu0 %2537 }
 0x2ea   :  { %3827 = vrot.lane.b32.xlu1 %v1879_v5, %s6628_s21  ;;  %3573 = vrot.lane.b32.xlu0 %v1751_v37, %s6627_s16  ;;  %v12198_v5 = vld [vmem:[#allocation78_spill] sm:$0xff] }
 0x2eb   :  { %v3985_v42 = vsel %vm3963_vm4, %v840_v53, %v12198_v5  ;;  %v1109_v53 = vmul.f32 %v5623_v48, %v8000_v51 }
 0x2ec   :  { %v3812_v11 = vpop.permute.xlu1 %3811  ;;  %v3558_v33 = vpop.permute.xlu0 %3557  ;;  %v4050_v37 = vsel %vm4028_vm5, %v3985_v42, %v9253_v35 }
 0x2ed   :  { %v4439_v22 = vsel %vm4418_vm11, %v4374_v39, %v3812_v11  ;;  %v4115_v30 = vsel %vm4093_vm6, %v4050_v37, %v9294_v8  ;;  %v12199_v39 = vld [vmem:[#allocation82_spill] sm:$0xff]  ;;  %v5814_v8 = vld [vmem:[%s11899_s5 + $0xaf8] sm:$0xff] }
 0x2ee   :  { %v6395_v24 = vpop.f32.mrb[6].mxu1  ;;  %3063 = vrot.lane.b32.xlu1 %v1494_v14, %s6625_s28  ;;  %2809 = vrot.lane.b32.xlu0 %v1366_v59, %s6624_s27  ;;  %v1880_v11 = vmul.f32 %v6004_v10, %v12199_v39  ;;  %v4180_v35 = vsel %vm4158_vm7, %v4115_v30, %v9337_v50  ;;  %v5877_v59 = vld [vmem:[%s11899_s5 + $0xcf0] sm:$0xff] }
 0x2ef   :  { %v4794_v13 = vadd.f32 %v6395_v24, %v9049_v40  ;;  %v4788_v16 = vpop.f32.mrb[7].mxu1  ;;  %6414 = vmatprep.mubr.msk.f32.mxu1 %vm4499_vm12, %v4439_v22  ;;  %v4245_v22 = vsel %vm4223_vm8, %v4180_v35, %v9373_v41  ;;  %v1623_v37 = vmul.f32 %v5877_v59, %v12197_v18  ;;  %v5878_v35 = vld [vmem:[%s11899_s5 + $0xcf8] sm:$0xff] }
 0x2f0   :  { %v4789_v32 = vadd.f32 %v9049_v40, %v4788_v16  ;;  %v9471_v1 = vpop.permute.xlu1 %3047  ;;  %v9473_v6 = vpop.permute.xlu0 %2793  ;;  %v4310_v48 = vsel %vm4288_vm9, %v4245_v22, %v3302_v15  ;;  %v5687_v16 = vld [vmem:[%s11899_s5 + $0x700] sm:$0xff]  ;;  %v5624_v15 = vld [vmem:[%s11899_s5 + $0x508] sm:$0xff]  ;;  %v1624_v22 = vmul.f32 %v5878_v35, %v12199_v39 }
 0x2f1   :  { %v5084_v14 = vmax.f32 %v4794_v13, 0.0  ;;  %v4375_v50 = vsel %vm4353_vm10, %v4310_v48, %v3558_v33  ;;  %v1495_v13 = vmul.f32 %v5814_v8, %v8106_v55  ;;  %v5751_v48 = vld [vmem:[%s11899_s5 + $0x900] sm:$0xff] }
 0x2f2   :  { %v5083_v5 = vmax.f32 %v4789_v32, 0.0  ;;  %2299 = vrot.lane.b32.xlu1 %v1109_v53, %s6622_s26  ;;  %3829 = vrot.lane.b32.xlu0 %v1880_v11, %s6628_s21  ;;  %v1238_v32 = vmul.f32 %v5687_v16, %v8074_v27  ;;  %v1110_v53 = vmul.f32 %v5624_v15, %v8029_v61  ;;  %v5941_v11 = vld [vmem:[%s11899_s5 + $0xef0] sm:$0xff]  ;;  %v5815_v61 = vld [vmem:[%s11899_s5 + $0xb00] sm:$0xff] }
 0x2f3   :  { %v1752_v8 = vmul.f32 %v5941_v11, %v12199_v39  ;;  %v6005_v15 = vld [vmem:[%s11899_s5 + $0x10f0] sm:$0xff]  ;;  %v1496_v43 = vmul.f32 %v5815_v61, %v8102_v29 }
 0x2f4   :  { %v9491_v10 = vmax.f32 %v5083_v5, %v5084_v14  ;;  %v9493_v42 = vpop.permute.xlu1 %2283  ;;  %v3814_v24 = vpop.permute.xlu0 %3813  ;;  %v777_v5 = vld [vmem:[%s11899_s5 + $0xb0] sm:$0xff] }
 0x2f5   :  { %v4440_v41 = vsel %vm4418_vm11, %v4375_v50, %v3814_v24  ;;  %v5688_v50 = vld [vmem:[%s11899_s5 + $0x708] sm:$0xff]  ;;  %v841_v24 = vmul.f32 %v777_v5, %v12149_v3  ;;  %v778_v5 = vld [vmem:[%s11899_s5 + $0xb8] sm:$0xff] }
 0x2f6   :  { %12200 = vst [vmem:[#allocation25_spill] sm:$0xff] %v9491_v10  ;;  %3319 = vrot.lane.b32.xlu1 %v1623_v37, %s6626_s29  ;;  %3065 = vrot.lane.b32.xlu0 %v1495_v13, %s6625_s28  ;;  %v1239_v16 = vmul.f32 %v5688_v50, %v8106_v55 }
 0x2f7   :  { %6415 = vmatmul.mubr.msk.f32.gmra.mrb[20].mxu1 %vm4499_vm12, %v4440_v41  ;;  %v1367_v41 = vmul.f32 %v5751_v48, %v8106_v55 }
 0x2f8   :  { %v3304_v33 = vpop.permute.xlu1 %3303  ;;  %v9507_v30 = vpop.permute.xlu0 %3049 }
 0x2fa   :  { %2555 = vrot.lane.b32.xlu1 %v1238_v32, %s6623_s25  ;;  %2301 = vrot.lane.b32.xlu0 %v1110_v53, %s6622_s26  ;;  %v5942_v32 = vld [vmem:[%s11899_s5 + $0xef8] sm:$0xff]  ;;  %v12201_v53 = vld [vmem:[#allocation41_spill] sm:$0xff] }
 0x2fb   :  { %v3986_v11 = vsel %vm3963_vm4, %v841_v24, %v12201_v53 }
 0x2fc   :  { %v9519_v14 = vpop.permute.xlu1 %2539  ;;  %v9521_v59 = vpop.permute.xlu0 %2285  ;;  %v4051_v3 = vsel %vm4028_vm5, %v3986_v11, %v9357_v52 }
 0x2fd   :  { %v4116_v48 = vsel %vm4093_vm6, %v4051_v3, %v9385_v44  ;;  %v5752_v44 = vld [vmem:[%s11899_s5 + $0x908] sm:$0xff] }
 0x2fe   :  { %3575 = vrot.lane.b32.xlu1 %v1752_v8, %s6627_s16  ;;  %3321 = vrot.lane.b32.xlu0 %v1624_v22, %s6626_s29  ;;  %v4181_v11 = vsel %vm4158_vm7, %v4116_v48, %v9426_v20  ;;  %v1368_v7 = vmul.f32 %v5752_v44, %v8102_v29  ;;  %v12205_v44 = vld [vmem:[#allocation84_spill] sm:$0xff] }
 0x2ff   :  { %v4246_v3 = vsel %vm4223_vm8, %v4181_v11, %v9471_v1 }
 0x300   :  { %v3560_v37 = vpop.permute.xlu1 %3559  ;;  %v3306_v13 = vpop.permute.xlu0 %3305  ;;  %v4311_v20 = vsel %vm4288_vm9, %v4246_v3, %v3304_v33  ;;  %v12204_v33 = vld [vmem:[#allocation34_spill] sm:$0xff] }
 0x302   :  { %v6398_v35 = vpop.f32.mrb[8].mxu1  ;;  %2811 = vrot.lane.b32.xlu1 %v1367_v41, %s6624_s27  ;;  %2557 = vrot.lane.b32.xlu0 %v1239_v16, %s6623_s25  ;;  %v12202_v16 = vld [vmem:[#allocation81_spill] sm:$0xff] }
 0x303   :  { %v4804_v8 = vadd.f32 %v6398_v35, %v9049_v40  ;;  %v4798_v22 = vpop.f32.mrb[9].mxu1  ;;  %v1881_v53 = vmul.f32 %v6005_v15, %v12202_v16  ;;  %v1753_v52 = vmul.f32 %v5942_v32, %v12202_v16  ;;  %v842_v15 = vmul.f32 %v778_v5, %v12154_v60  ;;  %v6006_v60 = vld [vmem:[%s11899_s5 + $0x10f8] sm:$0xff] }
 0x304   :  { %v4799_v50 = vadd.f32 %v9049_v40, %v4798_v22  ;;  %v9558_v24 = vpop.permute.xlu1 %2795  ;;  %v9560_v41 = vpop.permute.xlu0 %2541  ;;  %v4376_v32 = vsel %vm4353_vm10, %v4311_v20, %v3560_v37  ;;  %v1882_v3 = vmul.f32 %v6006_v60, %v12205_v44 }
 0x305   :  { %v5086_v35 = vmax.f32 %v4804_v8, 0.0  ;;  %v3987_v37 = vsel %vm3963_vm4, %v842_v15, %v12204_v33 }
 0x306   :  { %v5085_v22 = vmax.f32 %v4799_v50, 0.0  ;;  %3831 = vrot.lane.b32.xlu1 %v1881_v53, %s6628_s21  ;;  %3577 = vrot.lane.b32.xlu0 %v1753_v52, %s6627_s16  ;;  %v5625_v50 = vld [vmem:[%s11899_s5 + $0x510] sm:$0xff]  ;;  %v4052_v61 = vsel %vm4028_vm5, %v3987_v37, %v9387_v54  ;;  %v5816_v54 = vld [vmem:[%s11899_s5 + $0xb08] sm:$0xff] }
 0x307   :  { %v4117_v53 = vsel %vm4093_vm6, %v4052_v61, %v9428_v45 }
 0x308   :  { %v9579_v8 = vmax.f32 %v5085_v22, %v5086_v35  ;;  %v3816_v48 = vpop.permute.xlu1 %3815  ;;  %v3562_v51 = vpop.permute.xlu0 %3561  ;;  %v1111_v35 = vmul.f32 %v5625_v50, %v8025_v58 }
 0x309   :  { %v4441_v1 = vsel %vm4418_vm11, %v4376_v32, %v3816_v48 }
 0x30a   :  { %12203 = vst [vmem:[#allocation55_spill] sm:$0xff] %v9579_v8  ;;  %3067 = vrot.lane.b32.xlu1 %v1496_v43, %s6625_s28  ;;  %2813 = vrot.lane.b32.xlu0 %v1368_v7, %s6624_s27  ;;  %v4182_v43 = vsel %vm4158_vm7, %v4117_v53, %v9473_v6  ;;  %v5879_v7 = vld [vmem:[%s11899_s5 + $0xd00] sm:$0xff] }
 0x30b   :  { %6417 = vmatprep.mubr.msk.f32.mxu1 %vm4499_vm12, %v4441_v1  ;;  %v4247_v45 = vsel %vm4223_vm8, %v4182_v43, %v9507_v30  ;;  %v1625_v60 = vmul.f32 %v5879_v7, %v12202_v16  ;;  %v1497_v30 = vmul.f32 %v5816_v54, %v8137_v2  ;;  %v5943_v7 = vld [vmem:[%s11899_s5 + $0xf00] sm:$0xff]  ;;  %v5880_v54 = vld [vmem:[%s11899_s5 + $0xd08] sm:$0xff] }
 0x30c   :  { %v9601_v52 = vpop.permute.xlu1 %3051  ;;  %v9603_v11 = vpop.permute.xlu0 %2797  ;;  %v4312_v15 = vsel %vm4288_vm9, %v4247_v45, %v3306_v13  ;;  %v5689_v13 = vld [vmem:[%s11899_s5 + $0x710] sm:$0xff] }
 0x30d   :  { %v4377_v32 = vsel %vm4353_vm10, %v4312_v15, %v3562_v51  ;;  %v5626_v51 = vld [vmem:[%s11899_s5 + $0x518] sm:$0xff] }
 0x30e   :  { %v6401_v22 = vpop.f32.mrb[10].mxu1  ;;  %2303 = vrot.lane.b32.xlu1 %v1111_v35, %s6622_s26  ;;  %3833 = vrot.lane.b32.xlu0 %v1882_v3, %s6628_s21  ;;  %v1240_v3 = vmul.f32 %v5689_v13, %v8102_v29  ;;  %v1112_v43 = vmul.f32 %v5626_v51, %v8054_v19  ;;  %v6007_v51 = vld [vmem:[%s11899_s5 + $0x1100] sm:$0xff] }
 0x30f   :  { %v4814_v6 = vadd.f32 %v6401_v22, %v9049_v40  ;;  %v4808_v20 = vpop.f32.mrb[11].mxu1 }
 0x310   :  { %v4809_v48 = vadd.f32 %v9049_v40, %v4808_v20  ;;  %v9623_v1 = vpop.permute.xlu1 %2287  ;;  %v3818_v50 = vpop.permute.xlu0 %3817  ;;  %v1626_v20 = vmul.f32 %v5880_v54, %v12205_v44 }
 0x311   :  { %v5088_v33 = vmax.f32 %v4814_v6, 0.0  ;;  %v4442_v37 = vsel %vm4418_vm11, %v4377_v32, %v3818_v50  ;;  %v1754_v6 = vmul.f32 %v5943_v7, %v12205_v44  ;;  %v779_v32 = vld [vmem:[%s11899_s5 + $0xc0] sm:$0xff]  ;;  %v5690_v50 = vld [vmem:[%s11899_s5 + $0x718] sm:$0xff] }
 0x312   :  { %v5087_v61 = vmax.f32 %v4809_v48, 0.0  ;;  %3323 = vrot.lane.b32.xlu1 %v1625_v60, %s6626_s29  ;;  %3069 = vrot.lane.b32.xlu0 %v1497_v30, %s6625_s28  ;;  %v5753_v48 = vld [vmem:[%s11899_s5 + $0x910] sm:$0xff]  ;;  %v843_v60 = vmul.f32 %v779_v32, %v12121_v23  ;;  %v1241_v13 = vmul.f32 %v5690_v50, %v8137_v2  ;;  %v780_v50 = vld [vmem:[%s11899_s5 + $0xc8] sm:$0xff] }
 0x313   :  { %6418 = vmatmul.mubr.msk.f32.gmra.mrb[22].mxu1 %vm4499_vm12, %v4442_v37  ;;  %v1369_v37 = vmul.f32 %v5753_v48, %v8137_v2 }
 0x314   :  { %v9637_v40 = vmax.f32 %v5087_v61, %v5088_v33  ;;  %v3308_v53 = vpop.permute.xlu1 %3307  ;;  %v9639_v35 = vpop.permute.xlu0 %3053  ;;  %v5944_v61 = vld [vmem:[%s11899_s5 + $0xf08] sm:$0xff] }
 0x316   :  { %12206 = vst [vmem:[#allocation10_spill] sm:$0xff] %v9637_v40  ;;  %2559 = vrot.lane.b32.xlu1 %v1240_v3, %s6623_s25  ;;  %2305 = vrot.lane.b32.xlu0 %v1112_v43, %s6622_s26  ;;  %v12207_v3 = vld [vmem:[#allocation49_spill] sm:$0xff] }
 0x317   :  { %v3988_v43 = vsel %vm3963_vm4, %v843_v60, %v12207_v3 }
 0x318   :  { %v9653_v22 = vpop.permute.xlu1 %2543  ;;  %v9655_v15 = vpop.permute.xlu0 %2289  ;;  %v4053_v23 = vsel %vm4028_vm5, %v3988_v43, %v9493_v42  ;;  %v5817_v42 = vld [vmem:[%s11899_s5 + $0xb10] sm:$0xff] }
 0x319   :  { %v4118_v7 = vsel %vm4093_vm6, %v4053_v23, %v9519_v14  ;;  %v5754_v14 = vld [vmem:[%s11899_s5 + $0x918] sm:$0xff]  ;;  %v1498_v43 = vmul.f32 %v5817_v42, %v8131_v38 }
 0x31a   :  { %3579 = vrot.lane.b32.xlu1 %v1754_v6, %s6627_s16  ;;  %3325 = vrot.lane.b32.xlu0 %v1626_v20, %s6626_s29  ;;  %v12208_v20 = vld [vmem:[#allocation83_spill] sm:$0xff]  ;;  %v4183_v60 = vsel %vm4158_vm7, %v4118_v7, %v9558_v24  ;;  %v1370_v23 = vmul.f32 %v5754_v14, %v8131_v38  ;;  %v12210_v14 = vld [vmem:[#allocation20_spill] sm:$0xff] }
 0x31b   :  { %v1883_v32 = vmul.f32 %v6007_v51, %v12208_v20  ;;  %v1755_v48 = vmul.f32 %v5944_v61, %v12208_v20  ;;  %v844_v51 = vmul.f32 %v780_v50, %v12119_v56 }
 0x31c   :  { %v3564_v30 = vpop.permute.xlu1 %3563  ;;  %v3310_v33 = vpop.permute.xlu0 %3309 }
 0x31e   :  { %2815 = vrot.lane.b32.xlu1 %v1369_v37, %s6624_s27  ;;  %2561 = vrot.lane.b32.xlu0 %v1241_v13, %s6623_s25  ;;  %v4248_v37 = vsel %vm4223_vm8, %v4183_v60, %v9601_v52  ;;  %v5627_v52 = vld [vmem:[%s11899_s5 + $0x520] sm:$0xff] }
 0x31f   :  { %v4313_v13 = vsel %vm4288_vm9, %v4248_v37, %v3308_v53  ;;  %v6008_v53 = vld [vmem:[%s11899_s5 + $0x1108] sm:$0xff]  ;;  %v1113_v42 = vmul.f32 %v5627_v52, %v8050_v17 }
 0x320   :  { %v9687_v54 = vpop.permute.xlu1 %2799  ;;  %v9689_v6 = vpop.permute.xlu0 %2545  ;;  %v4378_v24 = vsel %vm4353_vm10, %v4313_v13, %v3564_v30  ;;  %v1884_v37 = vmul.f32 %v6008_v53, %v12210_v14  ;;  %v5628_v53 = vld [vmem:[%s11899_s5 + $0x528] sm:$0xff] }
 0x322   :  { %3835 = vrot.lane.b32.xlu1 %v1883_v32, %s6628_s21  ;;  %3581 = vrot.lane.b32.xlu0 %v1755_v48, %s6627_s16  ;;  %v12209_v32 = vld [vmem:[#allocation69_spill] sm:$0xff] }
 0x323   :  { %v3989_v56 = vsel %vm3963_vm4, %v844_v51, %v12209_v32  ;;  %v5881_v51 = vld [vmem:[%s11899_s5 + $0xd10] sm:$0xff] }
 0x324   :  { %v3820_v61 = vpop.permute.xlu1 %3819  ;;  %v3566_v3 = vpop.permute.xlu0 %3565  ;;  %v4054_v30 = vsel %vm4028_vm5, %v3989_v56, %v9521_v59  ;;  %v5818_v59 = vld [vmem:[%s11899_s5 + $0xb18] sm:$0xff]  ;;  %v1114_v56 = vmul.f32 %v5628_v53, %v8078_v63 }
 0x325   :  { %v4443_v7 = vsel %vm4418_vm11, %v4378_v24, %v3820_v61  ;;  %v4119_v48 = vsel %vm4093_vm6, %v4054_v30, %v9560_v41  ;;  %v5945_v30 = vld [vmem:[%s11899_s5 + $0xf10] sm:$0xff]  ;;  %v5946_v53 = vld [vmem:[%s11899_s5 + $0xf18] sm:$0xff] }
 0x326   :  { %3071 = vrot.lane.b32.xlu1 %v1498_v43, %s6625_s28  ;;  %2817 = vrot.lane.b32.xlu0 %v1370_v23, %s6624_s27  ;;  %v4184_v13 = vsel %vm4158_vm7, %v4119_v48, %v9603_v11  ;;  %v1627_v23 = vmul.f32 %v5881_v51, %v12208_v20  ;;  %v5882_v48 = vld [vmem:[%s11899_s5 + $0xd18] sm:$0xff] }
 0x327   :  { %6420 = vmatprep.mubr.msk.f32.mxu1 %vm4499_vm12, %v4443_v7  ;;  %v4249_v41 = vsel %vm4223_vm8, %v4184_v13, %v9639_v35  ;;  %v1499_v7 = vmul.f32 %v5818_v59, %v12194_v28  ;;  %v5691_v35 = vld [vmem:[%s11899_s5 + $0x720] sm:$0xff]  ;;  %v1756_v13 = vmul.f32 %v5945_v30, %v12210_v14  ;;  %v1628_v51 = vmul.f32 %v5882_v48, %v12210_v14  ;;  %v781_v59 = vld [vmem:[%s11899_s5 + $0xd0] sm:$0xff] }
 0x328   :  { %v3056_v50 = vpop.permute.xlu1 %3055  ;;  %v9729_v60 = vpop.permute.xlu0 %2801  ;;  %v4314_v24 = vsel %vm4288_vm9, %v4249_v41, %v3310_v33  ;;  %v1242_v32 = vmul.f32 %v5691_v35, %v8131_v38  ;;  %v5755_v41 = vld [vmem:[%s11899_s5 + $0x920] sm:$0xff]  ;;  %v6009_v35 = vld [vmem:[%s11899_s5 + $0x1110] sm:$0xff] }
 0x329   :  { %v4379_v61 = vsel %vm4353_vm10, %v4314_v24, %v3566_v3  ;;  %v5692_v24 = vld [vmem:[%s11899_s5 + $0x728] sm:$0xff] }
 0x32a   :  { %2307 = vrot.lane.b32.xlu1 %v1113_v42, %s6622_s26  ;;  %3837 = vrot.lane.b32.xlu0 %v1884_v37, %s6628_s21 }
 0x32c   :  { %v9747_v11 = vpop.permute.xlu1 %2291  ;;  %v3822_v43 = vpop.permute.xlu0 %3821 }
 0x32d   :  { %v4444_v52 = vsel %vm4418_vm11, %v4379_v61, %v3822_v43  ;;  %v845_v61 = vmul.f32 %v781_v59, %v12135_v36 }
 0x32e   :  { %3327 = vrot.lane.b32.xlu1 %v1627_v23, %s6626_s29  ;;  %3073 = vrot.lane.b32.xlu0 %v1499_v7, %s6625_s28  ;;  %v1371_v7 = vmul.f32 %v5755_v41, %v12194_v28 }
 0x32f   :  { %6421 = vmatmul.mubr.msk.f32.gmra.mrb[24].mxu1 %vm4499_vm12, %v4444_v52  ;;  %v1243_v52 = vmul.f32 %v5692_v24, %v12194_v28  ;;  %v782_v24 = vld [vmem:[%s11899_s5 + $0xd8] sm:$0xff] }
 0x330   :  { %v3312_v33 = vpop.permute.xlu1 %3311  ;;  %v9761_v3 = vpop.permute.xlu0 %3057 }
 0x332   :  { %2563 = vrot.lane.b32.xlu1 %v1242_v32, %s6623_s25  ;;  %2309 = vrot.lane.b32.xlu0 %v1114_v56, %s6622_s26  ;;  %v12211_v32 = vld [vmem:[#allocation18_spill] sm:$0xff] }
 0x333   :  { %v3990_v56 = vsel %vm3963_vm4, %v845_v61, %v12211_v32 }
 0x334   :  { %v9773_v42 = vpop.permute.xlu1 %2547  ;;  %v9775_v37 = vpop.permute.xlu0 %2293  ;;  %v4055_v36 = vsel %vm4028_vm5, %v3990_v56, %v9623_v1  ;;  %v5819_v1 = vld [vmem:[%s11899_s5 + $0xb20] sm:$0xff] }
 0x335   :  { %v4120_v30 = vsel %vm4093_vm6, %v4055_v36, %v9653_v22  ;;  %v5756_v22 = vld [vmem:[%s11899_s5 + $0x928] sm:$0xff]  ;;  %v1500_v56 = vmul.f32 %v5819_v1, %v12197_v18 }
 0x336   :  { %3583 = vrot.lane.b32.xlu1 %v1756_v13, %s6627_s16  ;;  %3329 = vrot.lane.b32.xlu0 %v1628_v51, %s6626_s29  ;;  %v12212_v51 = vld [vmem:[#allocation32_spill] sm:$0xff]  ;;  %v4185_v61 = vsel %vm4158_vm7, %v4120_v30, %v9687_v54  ;;  %v1372_v36 = vmul.f32 %v5756_v22, %v12197_v18  ;;  %v12214_v22 = vld [vmem:[#allocation62_spill] sm:$0xff] }
 0x337   :  { %v1885_v59 = vmul.f32 %v6009_v35, %v12212_v51  ;;  %v1757_v41 = vmul.f32 %v5946_v53, %v12212_v51  ;;  %v846_v35 = vmul.f32 %v782_v24, %v7849_v12 }
 0x338   :  { %v3568_v43 = vpop.permute.xlu1 %3567  ;;  %v3314_v23 = vpop.permute.xlu0 %3313 }
 0x33a   :  { %2819 = vrot.lane.b32.xlu1 %v1371_v7, %s6624_s27  ;;  %2565 = vrot.lane.b32.xlu0 %v1243_v52, %s6623_s25  ;;  %v4250_v7 = vsel %vm4223_vm8, %v4185_v61, %v3056_v50  ;;  %v5629_v50 = vld [vmem:[%s11899_s5 + $0x530] sm:$0xff] }
 0x33b   :  { %v4315_v52 = vsel %vm4288_vm9, %v4250_v7, %v3312_v33  ;;  %v6010_v33 = vld [vmem:[%s11899_s5 + $0x1118] sm:$0xff]  ;;  %v1115_v1 = vmul.f32 %v5629_v50, %v8074_v27 }
 0x33c   :  { %v9807_v48 = vpop.permute.xlu1 %2803  ;;  %v9809_v13 = vpop.permute.xlu0 %2549  ;;  %v4380_v54 = vsel %vm4353_vm10, %v4315_v52, %v3568_v43  ;;  %v1886_v7 = vmul.f32 %v6010_v33, %v12214_v22  ;;  %v5630_v33 = vld [vmem:[%s11899_s5 + $0x538] sm:$0xff] }
 0x33e   :  { %3839 = vrot.lane.b32.xlu1 %v1885_v59, %s6628_s21  ;;  %3585 = vrot.lane.b32.xlu0 %v1757_v41, %s6627_s16  ;;  %v12213_v59 = vld [vmem:[#allocation50_spill] sm:$0xff] }
 0x33f   :  { %v3991_v12 = vsel %vm3963_vm4, %v846_v35, %v12213_v59  ;;  %v5883_v35 = vld [vmem:[%s11899_s5 + $0xd20] sm:$0xff] }
 0x340   :  { %v3824_v53 = vpop.permute.xlu1 %3823  ;;  %v3570_v32 = vpop.permute.xlu0 %3569  ;;  %v4056_v43 = vsel %vm4028_vm5, %v3991_v12, %v9655_v15  ;;  %v5820_v15 = vld [vmem:[%s11899_s5 + $0xb28] sm:$0xff]  ;;  %v1116_v12 = vmul.f32 %v5630_v33, %v8106_v55 }
 0x341   :  { %v4445_v30 = vsel %vm4418_vm11, %v4380_v54, %v3824_v53  ;;  %v4121_v41 = vsel %vm4093_vm6, %v4056_v43, %v9689_v6  ;;  %v5947_v43 = vld [vmem:[%s11899_s5 + $0xf20] sm:$0xff]  ;;  %v5948_v33 = vld [vmem:[%s11899_s5 + $0xf28] sm:$0xff] }
 0x342   :  { %3075 = vrot.lane.b32.xlu1 %v1500_v56, %s6625_s28  ;;  %2821 = vrot.lane.b32.xlu0 %v1372_v36, %s6624_s27  ;;  %v4186_v52 = vsel %vm4158_vm7, %v4121_v41, %v9729_v60  ;;  %v1629_v36 = vmul.f32 %v5883_v35, %v12212_v51  ;;  %v5884_v41 = vld [vmem:[%s11899_s5 + $0xd28] sm:$0xff] }
 0x343   :  { %6423 = vmatprep.mubr.msk.f32.mxu1 %vm4499_vm12, %v4445_v30  ;;  %v4251_v6 = vsel %vm4223_vm8, %v4186_v52, %v9761_v3  ;;  %v1501_v30 = vmul.f32 %v5820_v15, %v12199_v39  ;;  %v5693_v3 = vld [vmem:[%s11899_s5 + $0x730] sm:$0xff]  ;;  %v1758_v52 = vmul.f32 %v5947_v43, %v12214_v22  ;;  %v1630_v35 = vmul.f32 %v5884_v41, %v12214_v22  ;;  %v783_v15 = vld [vmem:[%s11899_s5 + $0xe0] sm:$0xff] }
 0x344   :  { %v3060_v24 = vpop.permute.xlu1 %3059  ;;  %v9848_v61 = vpop.permute.xlu0 %2805  ;;  %v4316_v54 = vsel %vm4288_vm9, %v4251_v6, %v3314_v23  ;;  %v1244_v59 = vmul.f32 %v5693_v3, %v12197_v18  ;;  %v5757_v6 = vld [vmem:[%s11899_s5 + $0x930] sm:$0xff]  ;;  %v6011_v3 = vld [vmem:[%s11899_s5 + $0x1120] sm:$0xff] }
 0x345   :  { %v4381_v53 = vsel %vm4353_vm10, %v4316_v54, %v3570_v32  ;;  %v5694_v54 = vld [vmem:[%s11899_s5 + $0x738] sm:$0xff] }
 0x346   :  { %2311 = vrot.lane.b32.xlu1 %v1115_v1, %s6622_s26  ;;  %3841 = vrot.lane.b32.xlu0 %v1886_v7, %s6628_s21 }
 0x348   :  { %v9866_v60 = vpop.permute.xlu1 %2295  ;;  %v3826_v56 = vpop.permute.xlu0 %3825 }
 0x349   :  { %v4446_v50 = vsel %vm4418_vm11, %v4381_v53, %v3826_v56  ;;  %v847_v53 = vmul.f32 %v783_v15, %v12146_v57 }
 0x34a   :  { %3331 = vrot.lane.b32.xlu1 %v1629_v36, %s6626_s29  ;;  %3077 = vrot.lane.b32.xlu0 %v1501_v30, %s6625_s28  ;;  %v1373_v30 = vmul.f32 %v5757_v6, %v12199_v39 }
 0x34b   :  { %6424 = vmatmul.mubr.msk.f32.gmra.mrb[26].mxu1 %vm4499_vm12, %v4446_v50  ;;  %v1245_v50 = vmul.f32 %v5694_v54, %v12199_v39  ;;  %v5758_v54 = vld [vmem:[%s11899_s5 + $0x938] sm:$0xff] }
 0x34c   :  { %v3316_v23 = vpop.permute.xlu1 %3315  ;;  %v9880_v32 = vpop.permute.xlu0 %3061 }
 0x34e   :  { %2567 = vrot.lane.b32.xlu1 %v1244_v59, %s6623_s25  ;;  %2313 = vrot.lane.b32.xlu0 %v1116_v12, %s6622_s26  ;;  %v3992_v59 = vsel %vm3963_vm4, %v847_v53, %v8644_v9  ;;  %v784_v12 = vld [vmem:[%s11899_s5 + $0xe8] sm:$0xff] }
 0x34f   :  { %v4057_v57 = vsel %vm4028_vm5, %v3992_v59, %v9747_v11  ;;  %v5821_v11 = vld [vmem:[%s11899_s5 + $0xb30] sm:$0xff] }
 0x350   :  { %v9892_v1 = vpop.permute.xlu1 %2551  ;;  %v9894_v7 = vpop.permute.xlu0 %2297  ;;  %v4122_v43 = vsel %vm4093_vm6, %v4057_v57, %v9773_v42 }
 0x351   :  { %v4187_v6 = vsel %vm4158_vm7, %v4122_v43, %v9807_v48  ;;  %v9951_v48 = vld [vmem:[%s11898_s4] ss:$0 sm:$0xff] }
 0x352   :  { %3587 = vrot.lane.b32.xlu1 %v1758_v52, %s6627_s16  ;;  %3333 = vrot.lane.b32.xlu0 %v1630_v35, %s6626_s29  ;;  %v12215_v35 = vld [vmem:[#allocation33_spill] sm:$0xff]  ;;  %v4252_v42 = vsel %vm4223_vm8, %v4187_v6, %v3060_v24 }
 0x353   :  { %v1887_v9 = vmul.f32 %v6011_v3, %v12215_v35  ;;  %v1759_v15 = vmul.f32 %v5948_v33, %v12215_v35  ;;  %v6012_v6 = vld [vmem:[%s11899_s5 + $0x1128] sm:$0xff] }
 0x354   :  { %v3572_v56 = vpop.permute.xlu1 %3571  ;;  %v3318_v36 = vpop.permute.xlu0 %3317 }
 0x356   :  { %2823 = vrot.lane.b32.xlu1 %v1373_v30, %s6624_s27  ;;  %2569 = vrot.lane.b32.xlu0 %v1245_v50, %s6623_s25  ;;  %v848_v30 = vmul.f32 %v784_v12, %v7919_v0  ;;  %v4317_v50 = vsel %vm4288_vm9, %v4252_v42, %v3316_v23  ;;  %v1374_v0 = vmul.f32 %v5758_v54, %v12202_v16 }
 0x357   :  { %v4382_v59 = vsel %vm4353_vm10, %v4317_v50, %v3572_v56 }
 0x358   :  { %v9929_v41 = vpop.permute.xlu1 %2807  ;;  %v9931_v52 = vpop.permute.xlu0 %2553  ;;  %v3993_v56 = vsel %vm3963_vm4, %v848_v30, %v8642_v46  ;;  %v12217_v30 = vld [vmem:[#allocation40_spill] sm:$0xff] }
 0x35a   :  { %v6404_v53 = vpop.f32.mrb[12].mxu1  ;;  %3843 = vrot.lane.b32.xlu1 %v1887_v9, %s6628_s21  ;;  %3589 = vrot.lane.b32.xlu0 %v1759_v15, %s6627_s16  ;;  %v1502_v9 = vmul.f32 %v5821_v11, %v12202_v16  ;;  %v5631_v15 = vld [vmem:[%s11899_s5 + $0x540] sm:$0xff]  ;;  %v4058_v11 = vsel %vm4028_vm5, %v3993_v56, %v9775_v37  ;;  %v5885_v37 = vld [vmem:[%s11899_s5 + $0xd30] sm:$0xff] }
 0x35b   :  { %v4824_v3 = vadd.f32 %v9951_v48, %v6404_v53  ;;  %v4818_v33 = vpop.f32.mrb[13].mxu1  ;;  %v4123_v54 = vsel %vm4093_vm6, %v4058_v11, %v9809_v13  ;;  %v1117_v46 = vmul.f32 %v5631_v15, %v8102_v29  ;;  %v5822_v13 = vld [vmem:[%s11899_s5 + $0xb38] sm:$0xff]  ;;  %v5632_v56 = vld [vmem:[%s11899_s5 + $0x548] sm:$0xff] }
 0x35c   :  { %v4819_v24 = vadd.f32 %v9951_v48, %v4818_v33  ;;  %v3828_v57 = vpop.permute.xlu1 %3827  ;;  %v3574_v43 = vpop.permute.xlu0 %3573  ;;  %v1888_v33 = vmul.f32 %v6012_v6, %v12217_v30  ;;  %v1503_v15 = vmul.f32 %v5822_v13, %v12205_v44  ;;  %v5695_v6 = vld [vmem:[%s11899_s5 + $0x740] sm:$0xff]  ;;  %v1118_v11 = vmul.f32 %v5632_v56, %v8137_v2 }
 0x35d   :  { %v5090_v12 = vmax.f32 %v4824_v3, 0.0  ;;  %v4447_v23 = vsel %vm4418_vm11, %v4382_v59, %v3828_v57  ;;  %v4188_v59 = vsel %vm4158_vm7, %v4123_v54, %v9848_v61  ;;  %v5949_v54 = vld [vmem:[%s11899_s5 + $0xf30] sm:$0xff] }
 0x35e   :  { %v5089_v42 = vmax.f32 %v4819_v24, 0.0  ;;  %3079 = vrot.lane.b32.xlu1 %v1502_v9, %s6625_s28  ;;  %2825 = vrot.lane.b32.xlu0 %v1374_v0, %s6624_s27  ;;  %v4253_v24 = vsel %vm4223_vm8, %v4188_v59, %v9880_v32 }
 0x35f   :  { %6426 = vmatprep.mubr.msk.f32.mxu1 %vm4499_vm12, %v4447_v23  ;;  %v4318_v61 = vsel %vm4288_vm9, %v4253_v24, %v3318_v36  ;;  %v1631_v23 = vmul.f32 %v5885_v37, %v12215_v35  ;;  %v1760_v24 = vmul.f32 %v5949_v54, %v12217_v30  ;;  %v5950_v54 = vld [vmem:[%s11899_s5 + $0xf38] sm:$0xff] }
 0x360   :  { %v9974_v53 = vmax.f32 %v5089_v42, %v5090_v12  ;;  %v9976_v50 = vpop.permute.xlu1 %3063  ;;  %v9978_v3 = vpop.permute.xlu0 %2809  ;;  %v4383_v9 = vsel %vm4353_vm10, %v4318_v61, %v3574_v43  ;;  %v1246_v42 = vmul.f32 %v5695_v6, %v12202_v16 }
 0x362   :  { %12216 = vst [vmem:[#allocation36_spill] sm:$0xff] %v9974_v53  ;;  %2315 = vrot.lane.b32.xlu1 %v1117_v46, %s6622_s26  ;;  %3845 = vrot.lane.b32.xlu0 %v1888_v33, %s6628_s21  ;;  %v5886_v46 = vld [vmem:[%s11899_s5 + $0xd38] sm:$0xff] }
 0x363   :  { %v10022_v33 = vpop.f32.mrb[56].mxu0  ;;  %v1632_v61 = vmul.f32 %v5886_v46, %v12217_v30 }
 0x364   :  { %v9998_v0 = vpop.permute.xlu1 %2299  ;;  %v3830_v12 = vpop.permute.xlu0 %3829 }
 0x365   :  { %v4448_v32 = vsel %vm4418_vm11, %v4383_v9, %v3830_v12  ;;  %v10026_v59 = vpop.f32.mrb[57].mxu0  ;;  %v785_v9 = vld [vmem:[%s11899_s5 + $0xf0] sm:$0xff]  ;;  %v5759_v12 = vld [vmem:[%s11899_s5 + $0x940] sm:$0xff] }
 0x366   :  { %3335 = vrot.lane.b32.xlu1 %v1631_v23, %s6626_s29  ;;  %3081 = vrot.lane.b32.xlu0 %v1503_v15, %s6625_s28  ;;  %v5696_v23 = vld [vmem:[%s11899_s5 + $0x748] sm:$0xff]  ;;  %v849_v15 = vmul.f32 %v785_v9, %v7886_v25  ;;  %v1375_v56 = vmul.f32 %v5759_v12, %v12205_v44 }
 0x367   :  { %6427 = vmatmul.mubr.msk.f32.gmra.mrb[28].mxu1 %vm4499_vm12, %v4448_v32 }
 0x368   :  { %v3320_v36 = vpop.permute.xlu1 %3319  ;;  %v10012_v43 = vpop.permute.xlu0 %3065  ;;  %v3994_v46 = vsel %vm3963_vm4, %v849_v15, %v8698_v62 }
 0x369   :  { %v4059_v25 = vsel %vm4028_vm5, %v3994_v46, %v9866_v60  ;;  %v5823_v60 = vld [vmem:[%s11899_s5 + $0xb40] sm:$0xff] }
 0x36a   :  { %2571 = vrot.lane.b32.xlu1 %v1246_v42, %s6623_s25  ;;  %2317 = vrot.lane.b32.xlu0 %v1118_v11, %s6622_s26  ;;  %v1247_v42 = vmul.f32 %v5696_v23, %v12205_v44  ;;  %v6013_v11 = vld [vmem:[%s11899_s5 + $0x1130] sm:$0xff] }
 0x36b   :  { %v12218_v23 = vld [vmem:[#allocation38_spill] sm:$0xff] }
 0x36c   :  { %v10028_v37 = vpop.permute.xlu1 %2555  ;;  %v10030_v13 = vpop.permute.xlu0 %2301  ;;  %v1889_v62 = vmul.f32 %v6013_v11, %v12218_v23  ;;  %v1761_v15 = vmul.f32 %v5950_v54, %v12218_v23 }
 0x36e   :  { %3591 = vrot.lane.b32.xlu1 %v1760_v24, %s6627_s16  ;;  %3337 = vrot.lane.b32.xlu0 %v1632_v61, %s6626_s29  ;;  %v786_v24 = vld [vmem:[%s11899_s5 + $0xf8] sm:$0xff]  ;;  %v4124_v61 = vsel %vm4093_vm6, %v4059_v25, %v9892_v1 }
 0x36f   :  { %v850_v11 = vmul.f32 %v786_v24, %v7981_v26  ;;  %v5633_v26 = vld [vmem:[%s11899_s5 + $0x550] sm:$0xff] }
 0x370   :  { %v3576_v32 = vpop.permute.xlu1 %3575  ;;  %v3322_v6 = vpop.permute.xlu0 %3321 }
 0x372   :  { %2827 = vrot.lane.b32.xlu1 %v1375_v56, %s6624_s27  ;;  %2573 = vrot.lane.b32.xlu0 %v1247_v42, %s6623_s25  ;;  %v4189_v56 = vsel %vm4158_vm7, %v4124_v61, %v9929_v41  ;;  %v5760_v42 = vld [vmem:[%s11899_s5 + $0x948] sm:$0xff] }
 0x373   :  { %v4254_v1 = vsel %vm4223_vm8, %v4189_v56, %v9976_v50  ;;  %v1504_v50 = vmul.f32 %v5823_v60, %v12208_v20  ;;  %v1376_v56 = vmul.f32 %v5760_v42, %v12208_v20 }
 0x374   :  { %v10065_v9 = vpop.permute.xlu1 %2811  ;;  %v10067_v12 = vpop.permute.xlu0 %2557  ;;  %v4319_v41 = vsel %vm4288_vm9, %v4254_v1, %v3320_v36  ;;  %v6014_v36 = vld [vmem:[%s11899_s5 + $0x1138] sm:$0xff] }
 0x375   :  { %v4384_v61 = vsel %vm4353_vm10, %v4319_v41, %v3576_v32  ;;  %v3995_v32 = vsel %vm3963_vm4, %v850_v11, %v8696_v31  ;;  %v1119_v31 = vmul.f32 %v5633_v26, %v8131_v38  ;;  %v5697_v26 = vld [vmem:[%s11899_s5 + $0x750] sm:$0xff] }
 0x376   :  { %v6407_v46 = vpop.f32.mrb[14].mxu1  ;;  %3847 = vrot.lane.b32.xlu1 %v1889_v62, %s6628_s21  ;;  %3593 = vrot.lane.b32.xlu0 %v1761_v15, %s6627_s16  ;;  %v4060_v60 = vsel %vm4028_vm5, %v3995_v32, %v9894_v7  ;;  %v5887_v7 = vld [vmem:[%s11899_s5 + $0xd40] sm:$0xff] }
 0x377   :  { %v4834_v54 = vadd.f32 %v9951_v48, %v6407_v46  ;;  %v4828_v25 = vpop.f32.mrb[15].mxu1 }
 0x378   :  { %v4829_v5 = vadd.f32 %v9951_v48, %v4828_v25  ;;  %v3832_v45 = vpop.permute.xlu1 %3831  ;;  %v3578_v57 = vpop.permute.xlu0 %3577 }
 0x379   :  { %v5092_v62 = vmax.f32 %v4834_v54, 0.0  ;;  %v4449_v15 = vsel %vm4418_vm11, %v4384_v61, %v3832_v45  ;;  %v4125_v45 = vsel %vm4093_vm6, %v4060_v60, %v9931_v52  ;;  %v5824_v52 = vld [vmem:[%s11899_s5 + $0xb48] sm:$0xff] }
 0x37a   :  { %v5091_v24 = vmax.f32 %v4829_v5, 0.0  ;;  %3083 = vrot.lane.b32.xlu1 %v1504_v50, %s6625_s28  ;;  %2829 = vrot.lane.b32.xlu0 %v1376_v56, %s6624_s27  ;;  %v12220_v5 = vld [vmem:[#allocation15_spill] sm:$0xff]  ;;  %v4190_v41 = vsel %vm4158_vm7, %v4125_v45, %v9978_v3  ;;  %v5951_v45 = vld [vmem:[%s11899_s5 + $0xf40] sm:$0xff] }
 0x37b   :  { %6429 = vmatprep.mubr.msk.f32.mxu1 %vm4499_vm12, %v4449_v15  ;;  %v1890_v11 = vmul.f32 %v6014_v36, %v12220_v5  ;;  %v4255_v54 = vsel %vm4223_vm8, %v4190_v41, %v10012_v43  ;;  %v1505_v15 = vmul.f32 %v5824_v52, %v12210_v14  ;;  %v5634_v36 = vld [vmem:[%s11899_s5 + $0x558] sm:$0xff]  ;;  %v1762_v52 = vmul.f32 %v5951_v45, %v12220_v5 }
 0x37c   :  { %v10106_v42 = vmax.f32 %v5091_v24, %v5092_v62  ;;  %v10108_v1 = vpop.permute.xlu1 %3067  ;;  %v10110_v46 = vpop.permute.xlu0 %2813  ;;  %v4320_v3 = vsel %vm4288_vm9, %v4255_v54, %v3322_v6  ;;  %v1633_v62 = vmul.f32 %v5887_v7, %v12218_v23  ;;  %v1248_v24 = vmul.f32 %v5697_v26, %v12208_v20 }
 0x37d   :  { %v4385_v61 = vsel %vm4353_vm10, %v4320_v3, %v3578_v57  ;;  %v10144_v57 = vpop.f32.mrb[58].mxu0  ;;  %v1120_v60 = vmul.f32 %v5634_v36, %v12194_v28  ;;  %v787_v3 = vld [vmem:[%s11899_s5 + $0x100] sm:$0xff] }
 0x37e   :  { %12219 = vst [vmem:[#allocation73_spill] sm:$0xff] %v10106_v42  ;;  %2319 = vrot.lane.b32.xlu1 %v1119_v31, %s6622_s26  ;;  %3849 = vrot.lane.b32.xlu0 %v1890_v11, %s6628_s21  ;;  %v5888_v31 = vld [vmem:[%s11899_s5 + $0xd48] sm:$0xff]  ;;  %v10156_v11 = vpop.f32.mrb[59].mxu0  ;;  %v12227_v42 = vld [vmem:[#allocation42_spill] sm:$0xff] }
 0x37f   :  { %v1634_v54 = vmul.f32 %v5888_v31, %v12220_v5  ;;  %v788_v31 = vld [vmem:[%s11899_s5 + $0x108] sm:$0xff] }
 0x380   :  { %v10130_v50 = vpop.permute.xlu1 %2303  ;;  %v3834_v56 = vpop.permute.xlu0 %3833 }
 0x381   :  { %v4450_v43 = vsel %vm4418_vm11, %v4385_v61, %v3834_v56  ;;  %v5761_v61 = vld [vmem:[%s11899_s5 + $0x950] sm:$0xff]  ;;  %v5698_v56 = vld [vmem:[%s11899_s5 + $0x758] sm:$0xff] }
 0x382   :  { %3339 = vrot.lane.b32.xlu1 %v1633_v62, %s6626_s29  ;;  %3085 = vrot.lane.b32.xlu0 %v1505_v15, %s6625_s28  ;;  %v851_v62 = vmul.f32 %v787_v3, %v7979_v49  ;;  %v1377_v26 = vmul.f32 %v5761_v61, %v12210_v14  ;;  %v1249_v36 = vmul.f32 %v5698_v56, %v12210_v14  ;;  %v12221_v61 = vld [vmem:[#allocation52_spill] sm:$0xff] }
 0x383   :  { %6430 = vmatmul.mubr.msk.f32.gmra.mrb[30].mxu1 %vm4499_vm12, %v4450_v43 }
 0x384   :  { %v3324_v6 = vpop.permute.xlu1 %3323  ;;  %v10146_v32 = vpop.permute.xlu0 %3069  ;;  %v3996_v45 = vsel %vm3963_vm4, %v851_v62, %v8712_v34 }
 0x385   :  { %v4061_v49 = vsel %vm4028_vm5, %v3996_v45, %v9998_v0  ;;  %v5825_v0 = vld [vmem:[%s11899_s5 + $0xb50] sm:$0xff] }
 0x386   :  { %2575 = vrot.lane.b32.xlu1 %v1248_v24, %s6623_s25  ;;  %2321 = vrot.lane.b32.xlu0 %v1120_v60, %s6622_s26  ;;  %v6015_v24 = vld [vmem:[%s11899_s5 + $0x1140] sm:$0xff]  ;;  %v5952_v60 = vld [vmem:[%s11899_s5 + $0xf48] sm:$0xff] }
 0x387   :  { %v1891_v34 = vmul.f32 %v6015_v24, %v12221_v61  ;;  %v1763_v56 = vmul.f32 %v5952_v60, %v12221_v61  ;;  %v12222_v24 = vld [vmem:[#allocation76_spill] sm:$0xff] }
 0x388   :  { %v10160_v41 = vpop.permute.xlu1 %2559  ;;  %v10162_v7 = vpop.permute.xlu0 %2305  ;;  %v852_v60 = vmul.f32 %v788_v31, %v12222_v24  ;;  %v6016_v31 = vld [vmem:[%s11899_s5 + $0x1148] sm:$0xff] }
 0x38a   :  { %3595 = vrot.lane.b32.xlu1 %v1762_v52, %s6627_s16  ;;  %3341 = vrot.lane.b32.xlu0 %v1634_v54, %s6626_s29  ;;  %v4126_v52 = vsel %vm4093_vm6, %v4061_v49, %v10028_v37 }
 0x38b   :  { %v4191_v62 = vsel %vm4158_vm7, %v4126_v52, %v10065_v9 }
 0x38c   :  { %v3580_v15 = vpop.permute.xlu1 %3579  ;;  %v3326_v43 = vpop.permute.xlu0 %3325  ;;  %v4256_v37 = vsel %vm4223_vm8, %v4191_v62, %v10108_v1  ;;  %v1506_v1 = vmul.f32 %v5825_v0, %v12212_v51 }
 0x38d   :  { %v4321_v9 = vsel %vm4288_vm9, %v4256_v37, %v3324_v6  ;;  %v5635_v6 = vld [vmem:[%s11899_s5 + $0x560] sm:$0xff] }
 0x38e   :  { %2831 = vrot.lane.b32.xlu1 %v1377_v26, %s6624_s27  ;;  %2577 = vrot.lane.b32.xlu0 %v1249_v36, %s6623_s25  ;;  %v5762_v26 = vld [vmem:[%s11899_s5 + $0x958] sm:$0xff]  ;;  %v4386_v52 = vsel %vm4353_vm10, %v4321_v9, %v3580_v15  ;;  %v12223_v15 = vld [vmem:[#allocation53_spill] sm:$0xff] }
 0x38f   :  { %v1378_v62 = vmul.f32 %v5762_v26, %v12212_v51  ;;  %v3997_v37 = vsel %vm3963_vm4, %v852_v60, %v12223_v15  ;;  %v1121_v60 = vmul.f32 %v5635_v6, %v12197_v18  ;;  %v5636_v15 = vld [vmem:[%s11899_s5 + $0x568] sm:$0xff] }
 0x390   :  { %v10197_v54 = vpop.permute.xlu1 %2815  ;;  %v10199_v3 = vpop.permute.xlu0 %2561  ;;  %v4062_v0 = vsel %vm4028_vm5, %v3997_v37, %v10030_v13  ;;  %v5889_v13 = vld [vmem:[%s11899_s5 + $0xd50] sm:$0xff] }
 0x392   :  { %v6410_v36 = vpop.f32.mrb[16].mxu1  ;;  %3851 = vrot.lane.b32.xlu1 %v1891_v34, %s6628_s21  ;;  %3597 = vrot.lane.b32.xlu0 %v1763_v56, %s6627_s16 }
 0x393   :  { %v4844_v45 = vadd.f32 %v9951_v48, %v6410_v36  ;;  %v4838_v49 = vpop.f32.mrb[17].mxu1 }
 0x394   :  { %v4839_v25 = vadd.f32 %v9951_v48, %v4838_v49  ;;  %v3836_v8 = vpop.permute.xlu1 %3835  ;;  %v3582_v4 = vpop.permute.xlu0 %3581 }
 0x395   :  { %v5094_v34 = vmax.f32 %v4844_v45, 0.0  ;;  %v4451_v56 = vsel %vm4418_vm11, %v4386_v52, %v3836_v8  ;;  %v4127_v8 = vsel %vm4093_vm6, %v4062_v0, %v10067_v12  ;;  %v5826_v12 = vld [vmem:[%s11899_s5 + $0xb58] sm:$0xff]  ;;  %v1122_v0 = vmul.f32 %v5636_v15, %v12199_v39 }
 0x396   :  { %v5093_v36 = vmax.f32 %v4839_v25, 0.0  ;;  %3087 = vrot.lane.b32.xlu1 %v1506_v1, %s6625_s28  ;;  %2833 = vrot.lane.b32.xlu0 %v1378_v62, %s6624_s27  ;;  %v12224_v25 = vld [vmem:[#allocation43_spill] sm:$0xff]  ;;  %v4192_v49 = vsel %vm4158_vm7, %v4127_v8, %v10110_v46  ;;  %v1507_v6 = vmul.f32 %v5826_v12, %v12214_v22  ;;  %v5953_v8 = vld [vmem:[%s11899_s5 + $0xf50] sm:$0xff] }
 0x397   :  { %6432 = vmatprep.mubr.msk.f32.mxu1 %vm4499_vm12, %v4451_v56  ;;  %v1892_v45 = vmul.f32 %v6016_v31, %v12224_v25  ;;  %v4257_v52 = vsel %vm4223_vm8, %v4192_v49, %v10146_v32  ;;  %v1635_v56 = vmul.f32 %v5889_v13, %v12221_v61  ;;  %v5699_v32 = vld [vmem:[%s11899_s5 + $0x760] sm:$0xff]  ;;  %v1764_v12 = vmul.f32 %v5953_v8, %v12224_v25  ;;  %v5954_v8 = vld [vmem:[%s11899_s5 + $0xf58] sm:$0xff] }
 0x398   :  { %v10238_v26 = vmax.f32 %v5093_v36, %v5094_v34  ;;  %v3072_v24 = vpop.permute.xlu1 %3071  ;;  %v10240_v9 = vpop.permute.xlu0 %2817  ;;  %v4322_v1 = vsel %vm4288_vm9, %v4257_v52, %v3326_v43  ;;  %v1250_v36 = vmul.f32 %v5699_v32, %v12212_v51 }
 0x399   :  { %v4387_v62 = vsel %vm4353_vm10, %v4322_v1, %v3582_v4  ;;  %v10272_v4 = vpop.f32.mrb[60].mxu0  ;;  %v789_v1 = vld [vmem:[%s11899_s5 + $0x110] sm:$0xff] }
 0x39a   :  { %2323 = vrot.lane.b32.xlu1 %v1121_v60, %s6622_s26  ;;  %3853 = vrot.lane.b32.xlu0 %v1892_v45, %s6628_s21  ;;  %v5890_v60 = vld [vmem:[%s11899_s5 + $0xd58] sm:$0xff]  ;;  %v10284_v45 = vpop.f32.mrb[61].mxu0 }
 0x39b   :  { %v1636_v52 = vmul.f32 %v5890_v60, %v12224_v25  ;;  %v12226_v60 = vld [vmem:[#allocation22_spill] sm:$0xff] }
 0x39c   :  { %v10258_v46 = vpop.permute.xlu1 %2307  ;;  %v3838_v34 = vpop.permute.xlu0 %3837 }
 0x39d   :  { %v4452_v31 = vsel %vm4418_vm11, %v4387_v62, %v3838_v34  ;;  %v5763_v62 = vld [vmem:[%s11899_s5 + $0x960] sm:$0xff]  ;;  %v5700_v34 = vld [vmem:[%s11899_s5 + $0x768] sm:$0xff] }
 0x39e   :  { %3343 = vrot.lane.b32.xlu1 %v1635_v56, %s6626_s29  ;;  %3089 = vrot.lane.b32.xlu0 %v1507_v6, %s6625_s28  ;;  %v12225_v56 = vld [vmem:[#allocation75_spill] sm:$0xff]  ;;  %v1379_v15 = vmul.f32 %v5763_v62, %v12214_v22 }
 0x39f   :  { %6433 = vmatmul.mubr.msk.f32.gmra.mrb[32].mxu1 %vm4499_vm12, %v4452_v31  ;;  %v853_v6 = vmul.f32 %v789_v1, %v12225_v56  ;;  %v790_v1 = vld [vmem:[%s11899_s5 + $0x118] sm:$0xff] }
 0x3a0   :  { %v3328_v43 = vpop.permute.xlu1 %3327  ;;  %v10274_v37 = vpop.permute.xlu0 %3073 }
 0x3a2   :  { %2579 = vrot.lane.b32.xlu1 %v1250_v36, %s6623_s25  ;;  %2325 = vrot.lane.b32.xlu0 %v1122_v0, %s6622_s26  ;;  %v1251_v36 = vmul.f32 %v5700_v34, %v12214_v22  ;;  %v6017_v0 = vld [vmem:[%s11899_s5 + $0x1150] sm:$0xff] }
 0x3a4   :  { %v10288_v49 = vpop.permute.xlu1 %2563  ;;  %v10290_v13 = vpop.permute.xlu0 %2309 }
 0x3a6   :  { %3599 = vrot.lane.b32.xlu1 %v1764_v12, %s6627_s16  ;;  %3345 = vrot.lane.b32.xlu0 %v1636_v52, %s6626_s29  ;;  %v3998_v12 = vsel %vm3963_vm4, %v853_v6, %v12226_v60  ;;  %v1893_v6 = vmul.f32 %v6017_v0, %v12227_v42  ;;  %v5764_v60 = vld [vmem:[%s11899_s5 + $0x968] sm:$0xff] }
 0x3a7   :  { %v4063_v52 = vsel %vm4028_vm5, %v3998_v12, %v10130_v50  ;;  %v5827_v50 = vld [vmem:[%s11899_s5 + $0xb60] sm:$0xff]  ;;  %v12228_v0 = vld [vmem:[#allocation77_spill] sm:$0xff] }
 0x3a8   :  { %v3584_v31 = vpop.permute.xlu1 %3583  ;;  %v3330_v32 = vpop.permute.xlu0 %3329  ;;  %v4128_v62 = vsel %vm4093_vm6, %v4063_v52, %v10160_v41 }
 0x3aa   :  { %2835 = vrot.lane.b32.xlu1 %v1379_v15, %s6624_s27  ;;  %2581 = vrot.lane.b32.xlu0 %v1251_v36, %s6623_s25  ;;  %v1765_v15 = vmul.f32 %v5954_v8, %v12227_v42  ;;  %v4193_v36 = vsel %vm4158_vm7, %v4128_v62, %v10197_v54  ;;  %v854_v8 = vmul.f32 %v790_v1, %v12228_v0  ;;  %v6018_v1 = vld [vmem:[%s11899_s5 + $0x1158] sm:$0xff] }
 0x3ab   :  { %v4258_v41 = vsel %vm4223_vm8, %v4193_v36, %v3072_v24  ;;  %v1508_v24 = vmul.f32 %v5827_v50, %v12215_v35  ;;  %v1380_v36 = vmul.f32 %v5764_v60, %v12215_v35 }
 0x3ac   :  { %v10325_v34 = vpop.permute.xlu1 %2819  ;;  %v10327_v56 = vpop.permute.xlu0 %2565  ;;  %v4323_v52 = vsel %vm4288_vm9, %v4258_v41, %v3328_v43  ;;  %v5637_v43 = vld [vmem:[%s11899_s5 + $0x570] sm:$0xff] }
 0x3ad   :  { %v4388_v10 = vsel %vm4353_vm10, %v4323_v52, %v3584_v31  ;;  %v12229_v31 = vld [vmem:[#allocation54_spill] sm:$0xff] }
 0x3ae   :  { %v6413_v12 = vpop.f32.mrb[18].mxu1  ;;  %3855 = vrot.lane.b32.xlu1 %v1893_v6, %s6628_s21  ;;  %3601 = vrot.lane.b32.xlu0 %v1765_v15, %s6627_s16  ;;  %v3999_v41 = vsel %vm3963_vm4, %v854_v8, %v12229_v31  ;;  %v1123_v8 = vmul.f32 %v5637_v43, %v12202_v16  ;;  %v5638_v31 = vld [vmem:[%s11899_s5 + $0x578] sm:$0xff] }
 0x3af   :  { %v4854_v54 = vadd.f32 %v9951_v48, %v6413_v12  ;;  %v4848_v62 = vpop.f32.mrb[19].mxu1  ;;  %v4064_v50 = vsel %vm4028_vm5, %v3999_v41, %v10162_v7  ;;  %v5891_v7 = vld [vmem:[%s11899_s5 + $0xd60] sm:$0xff] }
 0x3b0   :  { %v4849_v40 = vadd.f32 %v9951_v48, %v4848_v62  ;;  %v3840_v47 = vpop.permute.xlu1 %3839  ;;  %v3586_v53 = vpop.permute.xlu0 %3585 }
 0x3b1   :  { %v5096_v6 = vmax.f32 %v4854_v54, 0.0  ;;  %v4453_v15 = vsel %vm4418_vm11, %v4388_v10, %v3840_v47  ;;  %v4129_v47 = vsel %vm4093_vm6, %v4064_v50, %v10199_v3  ;;  %v5828_v3 = vld [vmem:[%s11899_s5 + $0xb68] sm:$0xff]  ;;  %v1124_v50 = vmul.f32 %v5638_v31, %v12205_v44 }
 0x3b2   :  { %v5095_v12 = vmax.f32 %v4849_v40, 0.0  ;;  %3091 = vrot.lane.b32.xlu1 %v1508_v24, %s6625_s28  ;;  %2837 = vrot.lane.b32.xlu0 %v1380_v36, %s6624_s27  ;;  %v12230_v40 = vld [vmem:[#allocation47_spill] sm:$0xff]  ;;  %v4194_v54 = vsel %vm4158_vm7, %v4129_v47, %v10240_v9  ;;  %v1509_v43 = vmul.f32 %v5828_v3, %v12217_v30  ;;  %v5955_v47 = vld [vmem:[%s11899_s5 + $0xf60] sm:$0xff] }
 0x3b3   :  { %6435 = vmatprep.mubr.msk.f32.mxu1 %vm4499_vm12, %v4453_v15  ;;  %v1894_v52 = vmul.f32 %v6018_v1, %v12230_v40  ;;  %v4259_v62 = vsel %vm4223_vm8, %v4194_v54, %v10274_v37  ;;  %v1637_v15 = vmul.f32 %v5891_v7, %v12227_v42  ;;  %v5701_v37 = vld [vmem:[%s11899_s5 + $0x770] sm:$0xff]  ;;  %v1766_v3 = vmul.f32 %v5955_v47, %v12230_v40  ;;  %v12231_v47 = vld [vmem:[#allocation71_spill] sm:$0xff] }
 0x3b4   :  { %v10365_v10 = vmax.f32 %v5095_v12, %v5096_v6  ;;  %v3076_v60 = vpop.permute.xlu1 %3075  ;;  %v10367_v0 = vpop.permute.xlu0 %2821  ;;  %v4324_v24 = vsel %vm4288_vm9, %v4259_v62, %v3330_v32  ;;  %v1252_v12 = vmul.f32 %v5701_v37, %v12215_v35 }
 0x3b5   :  { %v4389_v36 = vsel %vm4353_vm10, %v4324_v24, %v3586_v53  ;;  %v10399_v53 = vpop.f32.mrb[62].mxu0  ;;  %v791_v24 = vld [vmem:[%s11899_s5 + $0x120] sm:$0xff] }
 0x3b6   :  { %2327 = vrot.lane.b32.xlu1 %v1123_v8, %s6622_s26  ;;  %3857 = vrot.lane.b32.xlu0 %v1894_v52, %s6628_s21  ;;  %v5892_v8 = vld [vmem:[%s11899_s5 + $0xd68] sm:$0xff]  ;;  %v10411_v52 = vpop.f32.mrb[63].mxu0 }
 0x3b7   :  { %v1638_v62 = vmul.f32 %v5892_v8, %v12230_v40 }
 0x3b8   :  { %v10385_v9 = vpop.permute.xlu1 %2311  ;;  %v3842_v6 = vpop.permute.xlu0 %3841 }
 0x3b9   :  { %v4454_v1 = vsel %vm4418_vm11, %v4389_v36, %v3842_v6  ;;  %v5765_v36 = vld [vmem:[%s11899_s5 + $0x970] sm:$0xff]  ;;  %v5702_v6 = vld [vmem:[%s11899_s5 + $0x778] sm:$0xff] }
 0x3ba   :  { %3347 = vrot.lane.b32.xlu1 %v1637_v15, %s6626_s29  ;;  %3093 = vrot.lane.b32.xlu0 %v1509_v43, %s6625_s28  ;;  %v855_v15 = vmul.f32 %v791_v24, %v8025_v58  ;;  %v1381_v37 = vmul.f32 %v5765_v36, %v12217_v30  ;;  %v1253_v31 = vmul.f32 %v5702_v6, %v12217_v30  ;;  %v12232_v6 = vld [vmem:[#allocation19_spill] sm:$0xff] }
 0x3bb   :  { %6436 = vmatmul.mubr.msk.f32.gmra.mrb[34].mxu1 %vm4499_vm12, %v4454_v1 }
 0x3bc   :  { %v3332_v32 = vpop.permute.xlu1 %3331  ;;  %v10401_v41 = vpop.permute.xlu0 %3077  ;;  %v4000_v8 = vsel %vm3963_vm4, %v855_v15, %v12231_v47  ;;  %v5766_v47 = vld [vmem:[%s11899_s5 + $0x978] sm:$0xff] }
 0x3bd   :  { %v4065_v58 = vsel %vm4028_vm5, %v4000_v8, %v10258_v46  ;;  %v5829_v46 = vld [vmem:[%s11899_s5 + $0xb70] sm:$0xff] }
 0x3be   :  { %2583 = vrot.lane.b32.xlu1 %v1252_v12, %s6623_s25  ;;  %2329 = vrot.lane.b32.xlu0 %v1124_v50, %s6622_s26  ;;  %v6019_v12 = vld [vmem:[%s11899_s5 + $0x1160] sm:$0xff]  ;;  %v5956_v50 = vld [vmem:[%s11899_s5 + $0xf68] sm:$0xff] }
 0x3bf   :  { %v1895_v15 = vmul.f32 %v6019_v12, %v12232_v6 }
 0x3c0   :  { %v10415_v54 = vpop.permute.xlu1 %2567  ;;  %v10417_v7 = vpop.permute.xlu0 %2313 }
 0x3c2   :  { %3603 = vrot.lane.b32.xlu1 %v1766_v3, %s6627_s16  ;;  %3349 = vrot.lane.b32.xlu0 %v1638_v62, %s6626_s29  ;;  %v792_v3 = vld [vmem:[%s11899_s5 + $0x128] sm:$0xff]  ;;  %v4130_v62 = vsel %vm4093_vm6, %v4065_v58, %v10288_v49 }
 0x3c3   :  { %v856_v12 = vmul.f32 %v792_v3, %v8054_v19  ;;  %v5639_v19 = vld [vmem:[%s11899_s5 + $0x580] sm:$0xff] }
 0x3c4   :  { %v3588_v43 = vpop.permute.xlu1 %3587  ;;  %v3334_v1 = vpop.permute.xlu0 %3333 }
 0x3c6   :  { %2839 = vrot.lane.b32.xlu1 %v1381_v37, %s6624_s27  ;;  %2585 = vrot.lane.b32.xlu0 %v1253_v31, %s6623_s25  ;;  %v1767_v37 = vmul.f32 %v5956_v50, %v12232_v6  ;;  %v4195_v31 = vsel %vm4158_vm7, %v4130_v62, %v10325_v34 }
 0x3c7   :  { %v4260_v49 = vsel %vm4223_vm8, %v4195_v31, %v3076_v60  ;;  %v1510_v60 = vmul.f32 %v5829_v46, %v12218_v23  ;;  %v1382_v31 = vmul.f32 %v5766_v47, %v12218_v23 }
 0x3c8   :  { %v10452_v24 = vpop.permute.xlu1 %2823  ;;  %v10454_v36 = vpop.permute.xlu0 %2569  ;;  %v4325_v50 = vsel %vm4288_vm9, %v4260_v49, %v3332_v32  ;;  %v6020_v32 = vld [vmem:[%s11899_s5 + $0x1168] sm:$0xff] }
 0x3c9   :  { %v4390_v62 = vsel %vm4353_vm10, %v4325_v50, %v3588_v43  ;;  %v12233_v43 = vld [vmem:[#allocation56_spill] sm:$0xff] }
 0x3ca   :  { %v6416_v8 = vpop.f32.mrb[20].mxu1  ;;  %3859 = vrot.lane.b32.xlu1 %v1895_v15, %s6628_s21  ;;  %3605 = vrot.lane.b32.xlu0 %v1767_v37, %s6627_s16  ;;  %v4001_v3 = vsel %vm3963_vm4, %v856_v12, %v12233_v43  ;;  %v1125_v12 = vmul.f32 %v5639_v19, %v12208_v20  ;;  %v5640_v43 = vld [vmem:[%s11899_s5 + $0x588] sm:$0xff] }
 0x3cb   :  { %v4864_v34 = vadd.f32 %v9951_v48, %v6416_v8  ;;  %v4858_v58 = vpop.f32.mrb[21].mxu1  ;;  %v4066_v46 = vsel %vm4028_vm5, %v4001_v3, %v10290_v13  ;;  %v5893_v13 = vld [vmem:[%s11899_s5 + $0xd70] sm:$0xff] }
 0x3cc   :  { %v4859_v21 = vadd.f32 %v9951_v48, %v4858_v58  ;;  %v3844_v44 = vpop.permute.xlu1 %3843  ;;  %v3590_v16 = vpop.permute.xlu0 %3589 }
 0x3cd   :  { %v5098_v15 = vmax.f32 %v4864_v34, 0.0  ;;  %v4455_v37 = vsel %vm4418_vm11, %v4390_v62, %v3844_v44  ;;  %v4131_v44 = vsel %vm4093_vm6, %v4066_v46, %v10327_v56  ;;  %v5830_v56 = vld [vmem:[%s11899_s5 + $0xb78] sm:$0xff]  ;;  %v5957_v46 = vld [vmem:[%s11899_s5 + $0xf70] sm:$0xff] }
 0x3ce   :  { %v5097_v49 = vmax.f32 %v4859_v21, 0.0  ;;  %3095 = vrot.lane.b32.xlu1 %v1510_v60, %s6625_s28  ;;  %2841 = vrot.lane.b32.xlu0 %v1382_v31, %s6624_s27  ;;  %v12234_v21 = vld [vmem:[#allocation46_spill] sm:$0xff]  ;;  %v4196_v58 = vsel %vm4158_vm7, %v4131_v44, %v10367_v0  ;;  %v1511_v19 = vmul.f32 %v5830_v56, %v12220_v5  ;;  %v5894_v44 = vld [vmem:[%s11899_s5 + $0xd78] sm:$0xff] }
 0x3cf   :  { %6438 = vmatprep.mubr.msk.f32.mxu1 %vm4499_vm12, %v4455_v37  ;;  %v1896_v34 = vmul.f32 %v6020_v32, %v12234_v21  ;;  %v4261_v62 = vsel %vm4223_vm8, %v4196_v58, %v10401_v41  ;;  %v1639_v37 = vmul.f32 %v5893_v13, %v12232_v6  ;;  %v5703_v41 = vld [vmem:[%s11899_s5 + $0x780] sm:$0xff]  ;;  %v1768_v58 = vmul.f32 %v5957_v46, %v12234_v21  ;;  %v793_v56 = vld [vmem:[%s11899_s5 + $0x130] sm:$0xff] }
 0x3d0   :  { %v10492_v47 = vmax.f32 %v5097_v49, %v5098_v15  ;;  %v3080_v8 = vpop.permute.xlu1 %3079  ;;  %v10494_v50 = vpop.permute.xlu0 %2825  ;;  %v4326_v60 = vsel %vm4288_vm9, %v4261_v62, %v3334_v1  ;;  %v1254_v3 = vmul.f32 %v5703_v41, %v12218_v23  ;;  %v1126_v49 = vmul.f32 %v5640_v43, %v12210_v14  ;;  %v5767_v62 = vld [vmem:[%s11899_s5 + $0x980] sm:$0xff]  ;;  %v6021_v41 = vld [vmem:[%s11899_s5 + $0x1170] sm:$0xff]  ;;  %v5958_v43 = vld [vmem:[%s11899_s5 + $0xf78] sm:$0xff] }
 0x3d1   :  { %v4391_v31 = vsel %vm4353_vm10, %v4326_v60, %v3590_v16  ;;  %v1640_v13 = vmul.f32 %v5894_v44, %v12234_v21  ;;  %v5704_v60 = vld [vmem:[%s11899_s5 + $0x788] sm:$0xff] }
 0x3d2   :  { %2331 = vrot.lane.b32.xlu1 %v1125_v12, %s6622_s26  ;;  %3861 = vrot.lane.b32.xlu0 %v1896_v34, %s6628_s21 }
 0x3d4   :  { %v10512_v0 = vpop.permute.xlu1 %2315  ;;  %v3846_v15 = vpop.permute.xlu0 %3845 }
 0x3d5   :  { %v4456_v32 = vsel %vm4418_vm11, %v4391_v31, %v3846_v15  ;;  %v857_v31 = vmul.f32 %v793_v56, %v8050_v17  ;;  %v10571_v17 = vld [vmem:[%s11896_s2] ss:$0 sm:$0xff] }
 0x3d6   :  { %3351 = vrot.lane.b32.xlu1 %v1639_v37, %s6626_s29  ;;  %3097 = vrot.lane.b32.xlu0 %v1511_v19, %s6625_s28  ;;  %v1383_v19 = vmul.f32 %v5767_v62, %v12220_v5  ;;  %v653_v46 = vadd.f32 %v10571_v17, %v10026_v59 }
 0x3d7   :  { %6439 = vmatmul.mubr.msk.f32.gmra.mrb[36].mxu1 %vm4499_vm12, %v4456_v32  ;;  %v1255_v32 = vmul.f32 %v5704_v60, %v12220_v5  ;;  %v12236_v60 = vld [vmem:[#allocation45_spill] sm:$0xff] }
 0x3d8   :  { %v3336_v16 = vpop.permute.xlu1 %3335  ;;  %v10526_v1 = vpop.permute.xlu0 %3081 }
 0x3da   :  { %2587 = vrot.lane.b32.xlu1 %v1254_v3, %s6623_s25  ;;  %2333 = vrot.lane.b32.xlu0 %v1126_v49, %s6622_s26  ;;  %v12235_v3 = vld [vmem:[#allocation17_spill] sm:$0xff] }
 0x3db   :  { %v4002_v49 = vsel %vm3963_vm4, %v857_v31, %v12235_v3  ;;  %v1897_v31 = vmul.f32 %v6021_v41, %v12236_v60 }
 0x3dc   :  { %v10538_v12 = vpop.permute.xlu1 %2571  ;;  %v10540_v34 = vpop.permute.xlu0 %2317  ;;  %v4067_v44 = vsel %vm4028_vm5, %v4002_v49, %v10385_v9  ;;  %v5831_v9 = vld [vmem:[%s11899_s5 + $0xb80] sm:$0xff]  ;;  %v10597_v49 = vmax.f32 %v653_v46, 0.0 }
 0x3de   :  { %3607 = vrot.lane.b32.xlu1 %v1768_v58, %s6627_s16  ;;  %3353 = vrot.lane.b32.xlu0 %v1640_v13, %s6626_s29  ;;  %v794_v58 = vld [vmem:[%s11899_s5 + $0x138] sm:$0xff]  ;;  %v4132_v13 = vsel %vm4093_vm6, %v4067_v44, %v10415_v54 }
 0x3df   :  { %v4197_v59 = vsel %vm4158_vm7, %v4132_v13, %v10452_v24  ;;  %v858_v41 = vmul.f32 %v794_v58, %v8078_v63  ;;  %v6022_v13 = vld [vmem:[%s11899_s5 + $0x1178] sm:$0xff]  ;;  %v5641_v58 = vld [vmem:[%s11899_s5 + $0x590] sm:$0xff] }
 0x3e0   :  { %v3592_v15 = vpop.permute.xlu1 %3591  ;;  %v3338_v37 = vpop.permute.xlu0 %3337  ;;  %v4262_v54 = vsel %vm4223_vm8, %v4197_v59, %v3080_v8 }
 0x3e1   :  { %v4327_v24 = vsel %vm4288_vm9, %v4262_v54, %v3336_v16  ;;  %v12237_v54 = vld [vmem:[#allocation64_spill] sm:$0xff] }
 0x3e2   :  { %2843 = vrot.lane.b32.xlu1 %v1383_v19, %s6624_s27  ;;  %2589 = vrot.lane.b32.xlu0 %v1255_v32, %s6623_s25  ;;  %v1769_v19 = vmul.f32 %v5958_v43, %v12236_v60  ;;  %v5768_v32 = vld [vmem:[%s11899_s5 + $0x988] sm:$0xff]  ;;  %v4392_v8 = vsel %vm4353_vm10, %v4327_v24, %v3592_v15 }
 0x3e4   :  { %v10582_v56 = vpop.permute.xlu1 %2827  ;;  %v10584_v62 = vpop.permute.xlu0 %2573 }
 0x3e6   :  { %v6419_v3 = vpop.f32.mrb[22].mxu1  ;;  %3863 = vrot.lane.b32.xlu1 %v1897_v31, %s6628_s21  ;;  %3609 = vrot.lane.b32.xlu0 %v1769_v19, %s6627_s16  ;;  %v1512_v31 = vmul.f32 %v5831_v9, %v12221_v61  ;;  %v1384_v19 = vmul.f32 %v5768_v32, %v12221_v61 }
 0x3e7   :  { %v4874_v43 = vadd.f32 %v9951_v48, %v6419_v3  ;;  %v4868_v44 = vpop.f32.mrb[23].mxu1  ;;  %v4003_v3 = vsel %vm3963_vm4, %v858_v41, %v12237_v54  ;;  %v1127_v41 = vmul.f32 %v5641_v58, %v12212_v51  ;;  %v5959_v54 = vld [vmem:[%s11899_s5 + $0xf80] sm:$0xff] }
 0x3e8   :  { %v4869_v46 = vadd.f32 %v9951_v48, %v4868_v44  ;;  %v3848_v59 = vpop.permute.xlu1 %3847  ;;  %v3594_v14 = vpop.permute.xlu0 %3593  ;;  %v1898_v48 = vmul.f32 %v6022_v13, %v10597_v49  ;;  %v4068_v15 = vsel %vm4028_vm5, %v4003_v3, %v10417_v7  ;;  %v5895_v13 = vld [vmem:[%s11899_s5 + $0xd80] sm:$0xff]  ;;  %v5832_v7 = vld [vmem:[%s11899_s5 + $0xb88] sm:$0xff] }
 0x3e9   :  { %v5100_v63 = vmax.f32 %v4874_v43, 0.0  ;;  %v4457_v16 = vsel %vm4418_vm11, %v4392_v8, %v3848_v59  ;;  %v4133_v9 = vsel %vm4093_vm6, %v4068_v15, %v10454_v36  ;;  %v1641_v59 = vmul.f32 %v5895_v13, %v12236_v60  ;;  %v5896_v3 = vld [vmem:[%s11899_s5 + $0xd88] sm:$0xff]  ;;  %v795_v13 = vld [vmem:[%s11899_s5 + $0x140] sm:$0xff] }
 0x3ea   :  { %v5099_v20 = vmax.f32 %v4869_v46, 0.0  ;;  %3099 = vrot.lane.b32.xlu1 %v1512_v31, %s6625_s28  ;;  %2845 = vrot.lane.b32.xlu0 %v1384_v19, %s6624_s27  ;;  %v4198_v44 = vsel %vm4158_vm7, %v4133_v9, %v10494_v50  ;;  %v1513_v31 = vmul.f32 %v5832_v7, %v12224_v25  ;;  %v5769_v7 = vld [vmem:[%s11899_s5 + $0x990] sm:$0xff] }
 0x3eb   :  { %6441 = vmatprep.mubr.msk.f32.mxu1 %vm4499_vm12, %v4457_v16 }
 0x3ec   :  { %v10625_v32 = vmax.f32 %v5099_v20, %v5100_v63  ;;  %v3084_v24 = vpop.permute.xlu1 %3083  ;;  %v10627_v43 = vpop.permute.xlu0 %2829  ;;  %v4263_v20 = vsel %vm4223_vm8, %v4198_v44, %v10526_v1  ;;  %v5705_v1 = vld [vmem:[%s11899_s5 + $0x790] sm:$0xff]  ;;  %v5642_v63 = vld [vmem:[%s11899_s5 + $0x598] sm:$0xff]  ;;  %v1642_v44 = vmul.f32 %v5896_v3, %v10597_v49 }
 0x3ed   :  { %v4328_v36 = vsel %vm4288_vm9, %v4263_v20, %v3338_v37  ;;  %v1256_v16 = vmul.f32 %v5705_v1, %v12221_v61  ;;  %v1128_v58 = vmul.f32 %v5642_v63, %v12214_v22  ;;  %v859_v20 = vmul.f32 %v795_v13, %v8074_v27  ;;  %v5960_v1 = vld [vmem:[%s11899_s5 + $0xf88] sm:$0xff] }
 0x3ee   :  { %2335 = vrot.lane.b32.xlu1 %v1127_v41, %s6622_s26  ;;  %3865 = vrot.lane.b32.xlu0 %v1898_v48, %s6628_s21  ;;  %v4393_v8 = vsel %vm4353_vm10, %v4328_v36, %v3594_v14  ;;  %v658_v48 = vadd.f32 %v10571_v17, %v10022_v33  ;;  %v1770_v41 = vmul.f32 %v5959_v54, %v10597_v49  ;;  %v5706_v33 = vld [vmem:[%s11899_s5 + $0x798] sm:$0xff]  ;;  %v12238_v63 = vld [vmem:[#allocation61_spill] sm:$0xff] }
 0x3ef   :  { %v663_v27 = vadd.f32 %v10571_v17, %v10156_v11  ;;  %v796_v54 = vld [vmem:[%s11899_s5 + $0x148] sm:$0xff] }
 0x3f0   :  { %v10644_v50 = vpop.permute.xlu1 %2319  ;;  %v3850_v46 = vpop.permute.xlu0 %3849  ;;  %v10690_v36 = vmax.f32 %v658_v48, 0.0 }
 0x3f1   :  { %v4458_v19 = vsel %vm4418_vm11, %v4393_v8, %v3850_v46 }
 0x3f2   :  { %3355 = vrot.lane.b32.xlu1 %v1641_v59, %s6626_s29  ;;  %3101 = vrot.lane.b32.xlu0 %v1513_v31, %s6625_s28  ;;  %v1385_v59 = vmul.f32 %v5769_v7, %v12224_v25  ;;  %v1257_v31 = vmul.f32 %v5706_v33, %v12224_v25  ;;  %v1771_v13 = vmul.f32 %v5960_v1, %v10690_v36  ;;  %v5770_v7 = vld [vmem:[%s11899_s5 + $0x998] sm:$0xff] }
 0x3f3   :  { %6442 = vmatmul.mubr.msk.f32.gmra.mrb[38].mxu1 %vm4499_vm12, %v4458_v19  ;;  %v6023_v19 = vld [vmem:[%s11899_s5 + $0x1180] sm:$0xff] }
 0x3f4   :  { %v3340_v14 = vpop.permute.xlu1 %3339  ;;  %v10658_v37 = vpop.permute.xlu0 %3085 }
 0x3f6   :  { %2591 = vrot.lane.b32.xlu1 %v1256_v16, %s6623_s25  ;;  %2337 = vrot.lane.b32.xlu0 %v1128_v58, %s6622_s26  ;;  %v4004_v16 = vsel %vm3963_vm4, %v859_v20, %v12238_v63  ;;  %v10728_v20 = vmax.f32 %v663_v27, 0.0 }
 0x3f7   :  { %v4069_v58 = vsel %vm4028_vm5, %v4004_v16, %v10512_v0  ;;  %v5833_v0 = vld [vmem:[%s11899_s5 + $0xb90] sm:$0xff] }
 0x3f8   :  { %v10672_v15 = vpop.permute.xlu1 %2575  ;;  %v10674_v9 = vpop.permute.xlu0 %2321  ;;  %v4134_v3 = vsel %vm4093_vm6, %v4069_v58, %v10538_v12  ;;  %v1386_v58 = vmul.f32 %v5770_v7, %v12227_v42 }
 0x3f9   :  { %v4199_v11 = vsel %vm4158_vm7, %v4134_v3, %v10582_v56 }
 0x3fa   :  { %3611 = vrot.lane.b32.xlu1 %v1770_v41, %s6627_s16  ;;  %3357 = vrot.lane.b32.xlu0 %v1642_v44, %s6626_s29  ;;  %v1899_v44 = vmul.f32 %v6023_v19, %v10690_v36  ;;  %v4264_v12 = vsel %vm4223_vm8, %v4199_v11, %v3084_v24  ;;  %v6024_v24 = vld [vmem:[%s11899_s5 + $0x1188] sm:$0xff] }
 0x3fb   :  { %v4329_v56 = vsel %vm4288_vm9, %v4264_v12, %v3340_v14  ;;  %v1514_v14 = vmul.f32 %v5833_v0, %v12227_v42 }
 0x3fc   :  { %v3596_v8 = vpop.permute.xlu1 %3595  ;;  %v3342_v46 = vpop.permute.xlu0 %3341 }
 0x3fd   :  { %v4394_v63 = vsel %vm4353_vm10, %v4329_v56, %v3596_v8  ;;  %v1900_v8 = vmul.f32 %v6024_v24, %v10728_v20  ;;  %v5834_v24 = vld [vmem:[%s11899_s5 + $0xb98] sm:$0xff] }
 0x3fe   :  { %2847 = vrot.lane.b32.xlu1 %v1385_v59, %s6624_s27  ;;  %2593 = vrot.lane.b32.xlu0 %v1257_v31, %s6623_s25  ;;  %v860_v59 = vmul.f32 %v796_v54, %v8106_v55  ;;  %v10737_v31 = vld [vmem:[%s11898_s4] ss:$0 sm:$0xff] }
 0x400   :  { %v10713_v48 = vpop.permute.xlu1 %2831  ;;  %v10715_v41 = vpop.permute.xlu0 %2577 }
 0x402   :  { %v6422_v33 = vpop.f32.mrb[24].mxu1  ;;  %3867 = vrot.lane.b32.xlu1 %v1899_v44, %s6628_s21  ;;  %3613 = vrot.lane.b32.xlu0 %v1771_v13, %s6627_s16  ;;  %v5643_v44 = vld [vmem:[%s11899_s5 + $0x5a0] sm:$0xff]  ;;  %v12239_v13 = vld [vmem:[#allocation26_spill] sm:$0xff] }
 0x403   :  { %v4884_v19 = vadd.f32 %v10737_v31, %v6422_v33  ;;  %v4878_v1 = vpop.f32.mrb[25].mxu1  ;;  %v4005_v11 = vsel %vm3963_vm4, %v860_v59, %v12239_v13 }
 0x404   :  { %v4879_v16 = vadd.f32 %v10737_v31, %v4878_v1  ;;  %v3852_v27 = vpop.permute.xlu1 %3851  ;;  %v3598_v55 = vpop.permute.xlu0 %3597  ;;  %v4070_v0 = vsel %vm4028_vm5, %v4005_v11, %v10540_v34  ;;  %v5897_v34 = vld [vmem:[%s11899_s5 + $0xd90] sm:$0xff] }
 0x405   :  { %v5102_v54 = vmax.f32 %v4884_v19, 0.0  ;;  %v4459_v3 = vsel %vm4418_vm11, %v4394_v63, %v3852_v27  ;;  %v4135_v7 = vsel %vm4093_vm6, %v4070_v0, %v10584_v62  ;;  %v1129_v19 = vmul.f32 %v5643_v44, %v12215_v35  ;;  %v5644_v44 = vld [vmem:[%s11899_s5 + $0x5a8] sm:$0xff] }
 0x406   :  { %v5101_v12 = vmax.f32 %v4879_v16, 0.0  ;;  %3103 = vrot.lane.b32.xlu1 %v1514_v14, %s6625_s28  ;;  %2849 = vrot.lane.b32.xlu0 %v1386_v58, %s6624_s27  ;;  %v4200_v1 = vsel %vm4158_vm7, %v4135_v7, %v10627_v43  ;;  %v1643_v58 = vmul.f32 %v5897_v34, %v10690_v36  ;;  %v1130_v11 = vmul.f32 %v5644_v44, %v12217_v30  ;;  %v5962_v44 = vld [vmem:[%s11899_s5 + $0xf98] sm:$0xff] }
 0x407   :  { %6444 = vmatprep.mubr.msk.f32.mxu1 %vm4499_vm12, %v4459_v3  ;;  %v4265_v62 = vsel %vm4223_vm8, %v4200_v1, %v10658_v37  ;;  %v5707_v3 = vld [vmem:[%s11899_s5 + $0x7a0] sm:$0xff]  ;;  %v668_v0 = vadd.f32 %v10571_v17, %v10144_v57  ;;  %v5708_v57 = vld [vmem:[%s11899_s5 + $0x7a8] sm:$0xff] }
 0x408   :  { %v10761_v33 = vmax.f32 %v5101_v12, %v5102_v54  ;;  %v10763_v56 = vpop.permute.xlu1 %3087  ;;  %v10765_v59 = vpop.permute.xlu0 %2833  ;;  %v4330_v43 = vsel %vm4288_vm9, %v4265_v62, %v3342_v46  ;;  %v1515_v54 = vmul.f32 %v5834_v24, %v12230_v40  ;;  %v1258_v13 = vmul.f32 %v5707_v3, %v12227_v42  ;;  %v5961_v12 = vld [vmem:[%s11899_s5 + $0xf90] sm:$0xff]  ;;  %v5771_v62 = vld [vmem:[%s11899_s5 + $0x9a0] sm:$0xff] }
 0x409   :  { %v4395_v16 = vsel %vm4353_vm10, %v4330_v43, %v3598_v55  ;;  %v1772_v1 = vmul.f32 %v5961_v12, %v10728_v20  ;;  %v797_v24 = vld [vmem:[%s11899_s5 + $0x150] sm:$0xff] }
 0x40a   :  { %v5177_v63 = vmax.f32 %v10238_v26, %v10761_v33  ;;  %2339 = vrot.lane.b32.xlu1 %v1129_v19, %s6622_s26  ;;  %3869 = vrot.lane.b32.xlu0 %v1900_v8, %s6628_s21  ;;  %v5898_v8 = vld [vmem:[%s11899_s5 + $0xd98] sm:$0xff]  ;;  %v861_v43 = vmul.f32 %v797_v24, %v8102_v29  ;;  %v6025_v3 = vld [vmem:[%s11899_s5 + $0x1190] sm:$0xff]  ;;  %v673_v29 = vadd.f32 %v10571_v17, %v10284_v45 }
 0x40b   :  { %v1644_v34 = vmul.f32 %v5898_v8, %v10728_v20  ;;  %v798_v8 = vld [vmem:[%s11899_s5 + $0x158] sm:$0xff] }
 0x40c   :  { %v10784_v27 = vpop.permute.xlu1 %2323  ;;  %v3854_v14 = vpop.permute.xlu0 %3853 }
 0x40d   :  { %v4460_v37 = vsel %vm4418_vm11, %v4395_v16, %v3854_v14  ;;  %v10830_v16 = vmax.f32 %v668_v0, 0.0 }
 0x40e   :  { %3359 = vrot.lane.b32.xlu1 %v1643_v58, %s6626_s29  ;;  %3105 = vrot.lane.b32.xlu0 %v1515_v54, %s6625_s28  ;;  %v1387_v54 = vmul.f32 %v5771_v62, %v12230_v40 }
 0x40f   :  { %6445 = vmatmul.mubr.msk.f32.gmra.mrb[40].mxu1 %vm4499_vm12, %v4460_v37  ;;  %v1259_v37 = vmul.f32 %v5708_v57, %v12230_v40  ;;  %v1901_v24 = vmul.f32 %v6025_v3, %v10830_v16  ;;  %v1773_v62 = vmul.f32 %v5962_v44, %v10830_v16  ;;  %v5772_v57 = vld [vmem:[%s11899_s5 + $0x9a8] sm:$0xff] }
 0x410   :  { %v3344_v46 = vpop.permute.xlu1 %3343  ;;  %v10798_v55 = vpop.permute.xlu0 %3089 }
 0x412   :  { %2595 = vrot.lane.b32.xlu1 %v1258_v13, %s6623_s25  ;;  %2341 = vrot.lane.b32.xlu0 %v1130_v11, %s6622_s26  ;;  %v12240_v13 = vld [vmem:[#allocation57_spill] sm:$0xff] }
 0x413   :  { %v4006_v11 = vsel %vm3963_vm4, %v861_v43, %v12240_v13  ;;  %v6026_v13 = vld [vmem:[%s11899_s5 + $0x1198] sm:$0xff] }
 0x414   :  { %v10812_v7 = vpop.permute.xlu1 %2579  ;;  %v10814_v19 = vpop.permute.xlu0 %2325  ;;  %v4071_v12 = vsel %vm4028_vm5, %v4006_v11, %v10644_v50  ;;  %v5835_v50 = vld [vmem:[%s11899_s5 + $0xba0] sm:$0xff] }
 0x415   :  { %v4136_v0 = vsel %vm4093_vm6, %v4071_v12, %v10672_v15 }
 0x416   :  { %3615 = vrot.lane.b32.xlu1 %v1772_v1, %s6627_s16  ;;  %3361 = vrot.lane.b32.xlu0 %v1644_v34, %s6626_s29  ;;  %v4201_v45 = vsel %vm4158_vm7, %v4136_v0, %v10713_v48  ;;  %v862_v48 = vmul.f32 %v798_v8, %v8137_v2  ;;  %v1516_v0 = vmul.f32 %v5835_v50, %v12232_v6  ;;  %v5645_v8 = vld [vmem:[%s11899_s5 + $0x5b0] sm:$0xff] }
 0x417   :  { %v4266_v15 = vsel %vm4223_vm8, %v4201_v45, %v10763_v56 }
 0x418   :  { %v3600_v14 = vpop.permute.xlu1 %3599  ;;  %v3346_v58 = vpop.permute.xlu0 %3345 }
 0x41a   :  { %2851 = vrot.lane.b32.xlu1 %v1387_v54, %s6624_s27  ;;  %2597 = vrot.lane.b32.xlu0 %v1259_v37, %s6623_s25  ;;  %v10869_v54 = vmax.f32 %v673_v29, 0.0  ;;  %v4331_v37 = vsel %vm4288_vm9, %v4266_v15, %v3344_v46 }
 0x41b   :  { %v4396_v56 = vsel %vm4353_vm10, %v4331_v37, %v3600_v14 }
 0x41c   :  { %v10853_v1 = vpop.permute.xlu1 %2835  ;;  %v10855_v34 = vpop.permute.xlu0 %2581  ;;  %v1902_v14 = vmul.f32 %v6026_v13, %v10869_v54  ;;  %v5836_v13 = vld [vmem:[%s11899_s5 + $0xba8] sm:$0xff] }
 0x41e   :  { %v6425_v43 = vpop.f32.mrb[26].mxu1  ;;  %3871 = vrot.lane.b32.xlu1 %v1901_v24, %s6628_s21  ;;  %3617 = vrot.lane.b32.xlu0 %v1773_v62, %s6627_s16  ;;  %v1388_v24 = vmul.f32 %v5772_v57, %v12232_v6  ;;  %v12241_v62 = vld [vmem:[#allocation13_spill] sm:$0xff] }
 0x41f   :  { %v4894_v3 = vadd.f32 %v10737_v31, %v6425_v43  ;;  %v4888_v44 = vpop.f32.mrb[27].mxu1  ;;  %v4007_v45 = vsel %vm3963_vm4, %v862_v48, %v12241_v62 }
 0x420   :  { %v4889_v11 = vadd.f32 %v10737_v31, %v4888_v44  ;;  %v3856_v29 = vpop.permute.xlu1 %3855  ;;  %v3602_v12 = vpop.permute.xlu0 %3601  ;;  %v4072_v50 = vsel %vm4028_vm5, %v4007_v45, %v10674_v9  ;;  %v5899_v9 = vld [vmem:[%s11899_s5 + $0xda0] sm:$0xff] }
 0x421   :  { %v5104_v2 = vmax.f32 %v4894_v3, 0.0  ;;  %v4461_v46 = vsel %vm4418_vm11, %v4396_v56, %v3856_v29  ;;  %v4137_v57 = vsel %vm4093_vm6, %v4072_v50, %v10715_v41  ;;  %v1131_v3 = vmul.f32 %v5645_v8, %v12218_v23  ;;  %v5646_v8 = vld [vmem:[%s11899_s5 + $0x5b8] sm:$0xff] }
 0x422   :  { %v5103_v15 = vmax.f32 %v4889_v11, 0.0  ;;  %3107 = vrot.lane.b32.xlu1 %v1516_v0, %s6625_s28  ;;  %2853 = vrot.lane.b32.xlu0 %v1388_v24, %s6624_s27  ;;  %v4202_v44 = vsel %vm4158_vm7, %v4137_v57, %v10765_v59  ;;  %v1645_v24 = vmul.f32 %v5899_v9, %v10830_v16  ;;  %v1132_v45 = vmul.f32 %v5646_v8, %v12220_v5  ;;  %v5964_v8 = vld [vmem:[%s11899_s5 + $0xfa8] sm:$0xff] }
 0x423   :  { %6447 = vmatprep.mubr.msk.f32.mxu1 %vm4499_vm12, %v4461_v46  ;;  %v4267_v41 = vsel %vm4223_vm8, %v4202_v44, %v10798_v55  ;;  %v5709_v46 = vld [vmem:[%s11899_s5 + $0x7b0] sm:$0xff]  ;;  %v678_v50 = vadd.f32 %v10571_v17, %v10272_v4  ;;  %v5710_v4 = vld [vmem:[%s11899_s5 + $0x7b8] sm:$0xff] }
 0x424   :  { %v10897_v43 = vmax.f32 %v5103_v15, %v5104_v2  ;;  %v10899_v37 = vpop.permute.xlu1 %3091  ;;  %v10901_v48 = vpop.permute.xlu0 %2837  ;;  %v4332_v59 = vsel %vm4288_vm9, %v4267_v41, %v3346_v58  ;;  %v1517_v2 = vmul.f32 %v5836_v13, %v12234_v21  ;;  %v1260_v62 = vmul.f32 %v5709_v46, %v12232_v6  ;;  %v5963_v15 = vld [vmem:[%s11899_s5 + $0xfa0] sm:$0xff]  ;;  %v5773_v41 = vld [vmem:[%s11899_s5 + $0x9b0] sm:$0xff] }
 0x425   :  { %v4397_v11 = vsel %vm4353_vm10, %v4332_v59, %v3602_v12  ;;  %v1774_v44 = vmul.f32 %v5963_v15, %v10869_v54  ;;  %v799_v13 = vld [vmem:[%s11899_s5 + $0x160] sm:$0xff] }
 0x426   :  { %v5178_v56 = vmax.f32 %v10365_v10, %v10897_v43  ;;  %2343 = vrot.lane.b32.xlu1 %v1131_v3, %s6622_s26  ;;  %3873 = vrot.lane.b32.xlu0 %v1902_v14, %s6628_s21  ;;  %v5900_v14 = vld [vmem:[%s11899_s5 + $0xda8] sm:$0xff]  ;;  %v863_v59 = vmul.f32 %v799_v13, %v8131_v38  ;;  %v6027_v46 = vld [vmem:[%s11899_s5 + $0x11a0] sm:$0xff]  ;;  %v683_v38 = vadd.f32 %v10571_v17, %v10411_v52 }
 0x427   :  { %v1646_v9 = vmul.f32 %v5900_v14, %v10869_v54  ;;  %v800_v14 = vld [vmem:[%s11899_s5 + $0x168] sm:$0xff] }
 0x428   :  { %v10920_v29 = vpop.permute.xlu1 %2327  ;;  %v3858_v0 = vpop.permute.xlu0 %3857 }
 0x429   :  { %v4462_v55 = vsel %vm4418_vm11, %v4397_v11, %v3858_v0  ;;  %v10966_v11 = vmax.f32 %v678_v50, 0.0 }
 0x42a   :  { %3363 = vrot.lane.b32.xlu1 %v1645_v24, %s6626_s29  ;;  %3109 = vrot.lane.b32.xlu0 %v1517_v2, %s6625_s28  ;;  %v1389_v2 = vmul.f32 %v5773_v41, %v12234_v21 }
 0x42b   :  { %6448 = vmatmul.mubr.msk.f32.gmra.mrb[42].mxu1 %vm4499_vm12, %v4462_v55  ;;  %v1261_v55 = vmul.f32 %v5710_v4, %v12234_v21  ;;  %v1903_v13 = vmul.f32 %v6027_v46, %v10966_v11  ;;  %v1775_v41 = vmul.f32 %v5964_v8, %v10966_v11  ;;  %v5774_v4 = vld [vmem:[%s11899_s5 + $0x9b8] sm:$0xff] }
 0x42c   :  { %v3348_v58 = vpop.permute.xlu1 %3347  ;;  %v10934_v12 = vpop.permute.xlu0 %3093 }
 0x42e   :  { %2599 = vrot.lane.b32.xlu1 %v1260_v62, %s6623_s25  ;;  %2345 = vrot.lane.b32.xlu0 %v1132_v45, %s6622_s26  ;;  %v12242_v62 = vld [vmem:[#allocation27_spill] sm:$0xff] }
 0x42f   :  { %v4008_v45 = vsel %vm3963_vm4, %v863_v59, %v12242_v62  ;;  %v6028_v62 = vld [vmem:[%s11899_s5 + $0x11a8] sm:$0xff] }
 0x430   :  { %v10948_v57 = vpop.permute.xlu1 %2583  ;;  %v10950_v3 = vpop.permute.xlu0 %2329  ;;  %v4073_v15 = vsel %vm4028_vm5, %v4008_v45, %v10784_v27  ;;  %v5837_v27 = vld [vmem:[%s11899_s5 + $0xbb0] sm:$0xff] }
 0x431   :  { %v4138_v50 = vsel %vm4093_vm6, %v4073_v15, %v10812_v7 }
 0x432   :  { %3619 = vrot.lane.b32.xlu1 %v1774_v44, %s6627_s16  ;;  %3365 = vrot.lane.b32.xlu0 %v1646_v9, %s6626_s29  ;;  %v4203_v52 = vsel %vm4158_vm7, %v4138_v50, %v10853_v1  ;;  %v864_v1 = vmul.f32 %v800_v14, %v12194_v28  ;;  %v1518_v50 = vmul.f32 %v5837_v27, %v12236_v60  ;;  %v5647_v14 = vld [vmem:[%s11899_s5 + $0x5c0] sm:$0xff] }
 0x433   :  { %v4268_v7 = vsel %vm4223_vm8, %v4203_v52, %v10899_v37 }
 0x434   :  { %v3604_v0 = vpop.permute.xlu1 %3603  ;;  %v3350_v24 = vpop.permute.xlu0 %3349 }
 0x436   :  { %2855 = vrot.lane.b32.xlu1 %v1389_v2, %s6624_s27  ;;  %2601 = vrot.lane.b32.xlu0 %v1261_v55, %s6623_s25  ;;  %v11005_v2 = vmax.f32 %v683_v38, 0.0  ;;  %v4333_v55 = vsel %vm4288_vm9, %v4268_v7, %v3348_v58 }
 0x437   :  { %v4398_v37 = vsel %vm4353_vm10, %v4333_v55, %v3604_v0 }
 0x438   :  { %v10989_v44 = vpop.permute.xlu1 %2839  ;;  %v10991_v9 = vpop.permute.xlu0 %2585  ;;  %v1904_v0 = vmul.f32 %v6028_v62, %v11005_v2  ;;  %v5901_v62 = vld [vmem:[%s11899_s5 + $0xdb0] sm:$0xff] }
 0x43a   :  { %v6428_v59 = vpop.f32.mrb[28].mxu1  ;;  %3875 = vrot.lane.b32.xlu1 %v1903_v13, %s6628_s21  ;;  %3621 = vrot.lane.b32.xlu0 %v1775_v41, %s6627_s16  ;;  %v1390_v13 = vmul.f32 %v5774_v4, %v12236_v60  ;;  %v12243_v41 = vld [vmem:[#allocation66_spill] sm:$0xff] }
 0x43b   :  { %v4904_v46 = vadd.f32 %v10737_v31, %v6428_v59  ;;  %v4898_v8 = vpop.f32.mrb[29].mxu1  ;;  %v4009_v52 = vsel %vm3963_vm4, %v864_v1, %v12243_v41  ;;  %v1133_v1 = vmul.f32 %v5647_v14, %v12221_v61  ;;  %v5648_v14 = vld [vmem:[%s11899_s5 + $0x5c8] sm:$0xff] }
 0x43c   :  { %v4899_v45 = vadd.f32 %v10737_v31, %v4898_v8  ;;  %v3860_v38 = vpop.permute.xlu1 %3859  ;;  %v3606_v15 = vpop.permute.xlu0 %3605  ;;  %v4074_v27 = vsel %vm4028_vm5, %v4009_v52, %v10814_v19  ;;  %v5838_v19 = vld [vmem:[%s11899_s5 + $0xbb8] sm:$0xff]  ;;  %v1134_v52 = vmul.f32 %v5648_v14, %v12224_v25 }
 0x43d   :  { %v5106_v28 = vmax.f32 %v4904_v46, 0.0  ;;  %v4463_v58 = vsel %vm4418_vm11, %v4398_v37, %v3860_v38  ;;  %v4139_v4 = vsel %vm4093_vm6, %v4074_v27, %v10855_v34  ;;  %v688_v27 = vadd.f32 %v10571_v17, %v10399_v53  ;;  %v5712_v53 = vld [vmem:[%s11899_s5 + $0x7c8] sm:$0xff]  ;;  %v12244_v14 = vld [vmem:[#allocation23_spill] sm:$0xff] }
 0x43e   :  { %v5105_v7 = vmax.f32 %v4899_v45, 0.0  ;;  %3111 = vrot.lane.b32.xlu1 %v1518_v50, %s6625_s28  ;;  %2857 = vrot.lane.b32.xlu0 %v1390_v13, %s6624_s27  ;;  %v4204_v8 = vsel %vm4158_vm7, %v4139_v4, %v10901_v48  ;;  %v1647_v13 = vmul.f32 %v5901_v62, %v10966_v11 }
 0x43f   :  { %6450 = vmatprep.mubr.msk.f32.mxu1 %vm4499_vm12, %v4463_v58  ;;  %v4269_v34 = vsel %vm4223_vm8, %v4204_v8, %v10934_v12  ;;  %v5711_v58 = vld [vmem:[%s11899_s5 + $0x7c0] sm:$0xff] }
 0x440   :  { %v11033_v59 = vmax.f32 %v5105_v7, %v5106_v28  ;;  %v3096_v55 = vpop.permute.xlu1 %3095  ;;  %v11035_v46 = vpop.permute.xlu0 %2841  ;;  %v4334_v48 = vsel %vm4288_vm9, %v4269_v34, %v3350_v24  ;;  %v1519_v28 = vmul.f32 %v5838_v19, %v10597_v49  ;;  %v1262_v41 = vmul.f32 %v5711_v58, %v12236_v60  ;;  %v5965_v7 = vld [vmem:[%s11899_s5 + $0xfb0] sm:$0xff]  ;;  %v5775_v34 = vld [vmem:[%s11899_s5 + $0x9c0] sm:$0xff]  ;;  %v5966_v58 = vld [vmem:[%s11899_s5 + $0xfb8] sm:$0xff] }
 0x441   :  { %v4399_v45 = vsel %vm4353_vm10, %v4334_v48, %v3606_v15  ;;  %v1776_v8 = vmul.f32 %v5965_v7, %v11005_v2  ;;  %v801_v19 = vld [vmem:[%s11899_s5 + $0x170] sm:$0xff]  ;;  %v11100_v48 = vmax.f32 %v688_v27, 0.0 }
 0x442   :  { %v5179_v37 = vmax.f32 %v10492_v47, %v11033_v59  ;;  %2347 = vrot.lane.b32.xlu1 %v1133_v1, %s6622_s26  ;;  %3877 = vrot.lane.b32.xlu0 %v1904_v0, %s6628_s21  ;;  %v5902_v0 = vld [vmem:[%s11899_s5 + $0xdb8] sm:$0xff]  ;;  %v865_v17 = vmul.f32 %v801_v19, %v12197_v18 }
 0x443   :  { %v1648_v62 = vmul.f32 %v5902_v0, %v11005_v2 }
 0x444   :  { %v11054_v38 = vpop.permute.xlu1 %2331  ;;  %v3862_v50 = vpop.permute.xlu0 %3861 }
 0x445   :  { %v4464_v12 = vsel %vm4418_vm11, %v4399_v45, %v3862_v50 }
 0x446   :  { %3367 = vrot.lane.b32.xlu1 %v1647_v13, %s6626_s29  ;;  %3113 = vrot.lane.b32.xlu0 %v1519_v28, %s6625_s28  ;;  %v1391_v13 = vmul.f32 %v5775_v34, %v10597_v49  ;;  %v1263_v28 = vmul.f32 %v5712_v53, %v10597_v49  ;;  %v5776_v34 = vld [vmem:[%s11899_s5 + $0x9c8] sm:$0xff] }
 0x447   :  { %6451 = vmatmul.mubr.msk.f32.gmra.mrb[44].mxu1 %vm4499_vm12, %v4464_v12  ;;  %v6029_v12 = vld [vmem:[%s11899_s5 + $0x11b0] sm:$0xff] }
 0x448   :  { %v3352_v24 = vpop.permute.xlu1 %3351  ;;  %v11068_v15 = vpop.permute.xlu0 %3097 }
 0x44a   :  { %2603 = vrot.lane.b32.xlu1 %v1262_v41, %s6623_s25  ;;  %2349 = vrot.lane.b32.xlu0 %v1134_v52, %s6622_s26  ;;  %v4010_v41 = vsel %vm3963_vm4, %v865_v17, %v12244_v14  ;;  %v802_v52 = vld [vmem:[%s11899_s5 + $0x178] sm:$0xff] }
 0x44b   :  { %v4075_v18 = vsel %vm4028_vm5, %v4010_v41, %v10920_v29  ;;  %v5839_v29 = vld [vmem:[%s11899_s5 + $0xbc0] sm:$0xff]  ;;  %v866_v17 = vmul.f32 %v802_v52, %v12199_v39  ;;  %v5649_v52 = vld [vmem:[%s11899_s5 + $0x5d0] sm:$0xff] }
 0x44c   :  { %v11082_v4 = vpop.permute.xlu1 %2587  ;;  %v11084_v1 = vpop.permute.xlu0 %2333  ;;  %v4140_v7 = vsel %vm4093_vm6, %v4075_v18, %v10948_v57  ;;  %v1520_v18 = vmul.f32 %v5839_v29, %v10690_v36 }
 0x44d   :  { %v4205_v19 = vsel %vm4158_vm7, %v4140_v7, %v10989_v44  ;;  %v1392_v7 = vmul.f32 %v5776_v34, %v10690_v36 }
 0x44e   :  { %3623 = vrot.lane.b32.xlu1 %v1776_v8, %s6627_s16  ;;  %3369 = vrot.lane.b32.xlu0 %v1648_v62, %s6626_s29  ;;  %v1905_v8 = vmul.f32 %v6029_v12, %v11100_v48  ;;  %v1777_v62 = vmul.f32 %v5966_v58, %v11100_v48  ;;  %v4270_v57 = vsel %vm4223_vm8, %v4205_v19, %v3096_v55  ;;  %v6030_v12 = vld [vmem:[%s11899_s5 + $0x11b8] sm:$0xff] }
 0x450   :  { %v3608_v45 = vpop.permute.xlu1 %3607  ;;  %v3354_v50 = vpop.permute.xlu0 %3353 }
 0x452   :  { %2859 = vrot.lane.b32.xlu1 %v1391_v13, %s6624_s27  ;;  %2605 = vrot.lane.b32.xlu0 %v1263_v28, %s6623_s25  ;;  %v4335_v13 = vsel %vm4288_vm9, %v4270_v57, %v3352_v24 }
 0x453   :  { %v4400_v58 = vsel %vm4353_vm10, %v4335_v13, %v3608_v45  ;;  %v1906_v45 = vmul.f32 0.0, %v6030_v12 }
 0x454   :  { %v11121_v0 = vpop.permute.xlu1 %2843  ;;  %v11123_v27 = vpop.permute.xlu0 %2589 }
 0x456   :  { %v6431_v53 = vpop.f32.mrb[30].mxu1  ;;  %3879 = vrot.lane.b32.xlu1 %v1905_v8, %s6628_s21  ;;  %3625 = vrot.lane.b32.xlu0 %v1777_v62, %s6627_s16  ;;  %v12245_v8 = vld [vmem:[#allocation39_spill] sm:$0xff] }
 0x457   :  { %v4914_v44 = vadd.f32 %v10737_v31, %v6431_v53  ;;  %v4908_v28 = vpop.f32.mrb[31].mxu1  ;;  %v4011_v62 = vsel %vm3963_vm4, %v866_v17, %v12245_v8  ;;  %v1135_v17 = vmul.f32 %v5649_v52, %v12227_v42 }
 0x458   :  { %v4909_v55 = vadd.f32 %v10737_v31, %v4908_v28  ;;  %v3864_v14 = vpop.permute.xlu1 %3863  ;;  %v3610_v41 = vpop.permute.xlu0 %3609  ;;  %v4076_v29 = vsel %vm4028_vm5, %v4011_v62, %v10950_v3  ;;  %v5903_v28 = vld [vmem:[%s11899_s5 + $0xdc0] sm:$0xff]  ;;  %v5840_v3 = vld [vmem:[%s11899_s5 + $0xbc8] sm:$0xff] }
 0x459   :  { %v5108_v39 = vmax.f32 %v4914_v44, 0.0  ;;  %v4465_v24 = vsel %vm4418_vm11, %v4400_v58, %v3864_v14  ;;  %v4141_v34 = vsel %vm4093_vm6, %v4076_v29, %v10991_v9 }
 0x45a   :  { %v5107_v19 = vmax.f32 %v4909_v55, 0.0  ;;  %3115 = vrot.lane.b32.xlu1 %v1520_v18, %s6625_s28  ;;  %2861 = vrot.lane.b32.xlu0 %v1392_v7, %s6624_s27  ;;  %v4206_v44 = vsel %vm4158_vm7, %v4141_v34, %v11035_v46  ;;  %v1649_v18 = vmul.f32 %v5903_v28, %v11100_v48  ;;  %v1521_v7 = vmul.f32 %v5840_v3, %v10728_v20  ;;  %v5714_v28 = vld [vmem:[%s11899_s5 + $0x7d8] sm:$0xff]  ;;  %v6031_v3 = vld [vmem:[%s11899_s5 + $0x11c0] sm:$0xff] }
 0x45b   :  { %6453 = vmatprep.mubr.msk.f32.mxu1 %vm4499_vm12, %v4465_v24  ;;  %v4271_v9 = vsel %vm4223_vm8, %v4206_v44, %v11068_v15  ;;  %v5650_v24 = vld [vmem:[%s11899_s5 + $0x5d8] sm:$0xff]  ;;  %v803_v44 = vld [vmem:[%s11899_s5 + $0x180] sm:$0xff] }
 0x45c   :  { %v11161_v57 = vmax.f32 %v5107_v19, %v5108_v39  ;;  %v3100_v53 = vpop.permute.xlu1 %3099  ;;  %v11163_v13 = vpop.permute.xlu0 %2845  ;;  %v4336_v46 = vsel %vm4288_vm9, %v4271_v9, %v3354_v50  ;;  %v5713_v39 = vld [vmem:[%s11899_s5 + $0x7d0] sm:$0xff]  ;;  %v5967_v50 = vld [vmem:[%s11899_s5 + $0xfc0] sm:$0xff]  ;;  %v1136_v19 = vmul.f32 %v5650_v24, %v12230_v40  ;;  %v5968_v9 = vld [vmem:[%s11899_s5 + $0xfc8] sm:$0xff] }
 0x45d   :  { %v4401_v58 = vsel %vm4353_vm10, %v4336_v46, %v3610_v41  ;;  %v5904_v41 = vld [vmem:[%s11899_s5 + $0xdc8] sm:$0xff]  ;;  %v1264_v62 = vmul.f32 %v5713_v39, %v10690_v36  ;;  %v5777_v36 = vld [vmem:[%s11899_s5 + $0x9d0] sm:$0xff] }
 0x45e   :  { %v5180_v12 = vmax.f32 %v10625_v32, %v11161_v57  ;;  %2351 = vrot.lane.b32.xlu1 %v1135_v17, %s6622_s26  ;;  %3881 = vrot.lane.b32.xlu0 %v1906_v45, %s6628_s21  ;;  %v1778_v45 = vmul.f32 0.0, %v5967_v50  ;;  %v1650_v29 = vmul.f32 0.0, %v5904_v41  ;;  %v12246_v46 = vld [vmem:[#allocation81_spill] sm:$0xff]  ;;  %v12247_v39 = vld [vmem:[#allocation6_spill] sm:$0xff]  ;;  %v1907_v50 = vmul.f32 0.0, %v6031_v3 }
 0x45f   :  { %v1779_v41 = vmul.f32 0.0, %v5968_v9 }
 0x460   :  { %v11182_v55 = vpop.permute.xlu1 %2335  ;;  %v3866_v14 = vpop.permute.xlu0 %3865 }
 0x461   :  { %v4466_v15 = vsel %vm4418_vm11, %v4401_v58, %v3866_v14  ;;  %v867_v58 = vmul.f32 %v803_v44, %v12246_v46 }
 0x462   :  { %3371 = vrot.lane.b32.xlu1 %v1649_v18, %s6626_s29  ;;  %3117 = vrot.lane.b32.xlu0 %v1521_v7, %s6625_s28  ;;  %v1393_v7 = vmul.f32 %v5777_v36, %v10728_v20  ;;  %v5841_v36 = vld [vmem:[%s11899_s5 + $0xbd0] sm:$0xff] }
 0x463   :  { %6454 = vmatmul.mubr.msk.f32.gmra.mrb[46].mxu1 %vm4499_vm12, %v4466_v15  ;;  %v1265_v15 = vmul.f32 %v5714_v28, %v10728_v20  ;;  %v4012_v24 = vsel %vm3963_vm4, %v867_v58, %v12247_v39 }
 0x464   :  { %v3356_v52 = vpop.permute.xlu1 %3355  ;;  %v11202_v8 = vpop.permute.xlu0 %3101 }
 0x466   :  { %2607 = vrot.lane.b32.xlu1 %v1264_v62, %s6623_s25  ;;  %2353 = vrot.lane.b32.xlu0 %v1136_v19, %s6622_s26  ;;  %v4077_v62 = vsel %vm4028_vm5, %v4012_v24, %v11054_v38  ;;  %v804_v19 = vld [vmem:[%s11899_s5 + $0x188] sm:$0xff]  ;;  %v5778_v38 = vld [vmem:[%s11899_s5 + $0x9d8] sm:$0xff] }
 0x468   :  { %v11208_v34 = vpop.permute.xlu1 %2591  ;;  %v11210_v17 = vpop.permute.xlu0 %2337 }
 0x46a   :  { %3627 = vrot.lane.b32.xlu1 %v1778_v45, %s6627_s16  ;;  %3373 = vrot.lane.b32.xlu0 %v1650_v29, %s6626_s29  ;;  %v4142_v45 = vsel %vm4093_vm6, %v4077_v62, %v11082_v4  ;;  %v12248_v4 = vld [vmem:[#allocation84_spill] sm:$0xff] }
 0x46b   :  { %v4207_v44 = vsel %vm4158_vm7, %v4142_v45, %v11121_v0  ;;  %v868_v9 = vmul.f32 %v804_v19, %v12248_v4  ;;  %v5651_v19 = vld [vmem:[%s11899_s5 + $0x5e0] sm:$0xff]  ;;  %v12249_v45 = vld [vmem:[#allocation65_spill] sm:$0xff] }
 0x46c   :  { %v3612_v14 = vpop.permute.xlu1 %3611  ;;  %v3358_v18 = vpop.permute.xlu0 %3357  ;;  %v4272_v28 = vsel %vm4223_vm8, %v4207_v44, %v3100_v53 }
 0x46d   :  { %v4337_v46 = vsel %vm4288_vm9, %v4272_v28, %v3356_v52  ;;  %v4013_v44 = vsel %vm3963_vm4, %v868_v9, %v12249_v45 }
 0x46e   :  { %2863 = vrot.lane.b32.xlu1 %v1393_v7, %s6624_s27  ;;  %2609 = vrot.lane.b32.xlu0 %v1265_v15, %s6623_s25  ;;  %v6032_v7 = vld [vmem:[%s11899_s5 + $0x11c8] sm:$0xff]  ;;  %v4402_v15 = vsel %vm4353_vm10, %v4337_v46, %v3612_v14 }
 0x46f   :  { %v1908_v14 = vmul.f32 0.0, %v6032_v7 }
 0x470   :  { %v11243_v20 = vpop.permute.xlu1 %2847  ;;  %v11245_v29 = vpop.permute.xlu0 %2593 }
 0x472   :  { %v6434_v3 = vpop.f32.mrb[32].mxu1  ;;  %3883 = vrot.lane.b32.xlu1 %v1907_v50, %s6628_s21  ;;  %3629 = vrot.lane.b32.xlu0 %v1779_v41, %s6627_s16  ;;  %v1522_v50 = vmul.f32 %v5841_v36, %v10830_v16  ;;  %v1394_v41 = vmul.f32 %v5778_v38, %v10830_v16  ;;  %v4078_v36 = vsel %vm4028_vm5, %v4013_v44, %v11084_v1  ;;  %v5905_v38 = vld [vmem:[%s11899_s5 + $0xdd0] sm:$0xff]  ;;  %v5842_v1 = vld [vmem:[%s11899_s5 + $0xbd8] sm:$0xff] }
 0x473   :  { %v4924_v0 = vadd.f32 %v10737_v31, %v6434_v3  ;;  %v4918_v58 = vpop.f32.mrb[33].mxu1  ;;  %v4143_v3 = vsel %vm4093_vm6, %v4078_v36, %v11123_v27  ;;  %v1651_v27 = vmul.f32 0.0, %v5905_v38 }
 0x474   :  { %v4919_v53 = vadd.f32 %v10737_v31, %v4918_v58  ;;  %v3868_v39 = vpop.permute.xlu1 %3867  ;;  %v3614_v24 = vpop.permute.xlu0 %3613  ;;  %v4208_v58 = vsel %vm4158_vm7, %v4143_v3, %v11163_v13  ;;  %v1523_v13 = vmul.f32 %v5842_v1, %v10869_v54  ;;  %v805_v3 = vld [vmem:[%s11899_s5 + $0x190] sm:$0xff]  ;;  %v5970_v1 = vld [vmem:[%s11899_s5 + $0xfd8] sm:$0xff] }
 0x475   :  { %v5110_v62 = vmax.f32 %v4924_v0, 0.0  ;;  %v4467_v52 = vsel %vm4418_vm11, %v4402_v15, %v3868_v39  ;;  %v1137_v0 = vmul.f32 %v5651_v19, %v12232_v6  ;;  %v4273_v7 = vsel %vm4223_vm8, %v4208_v58, %v11202_v8  ;;  %v5715_v8 = vld [vmem:[%s11899_s5 + $0x7e0] sm:$0xff]  ;;  %v6033_v58 = vld [vmem:[%s11899_s5 + $0x11d0] sm:$0xff] }
 0x476   :  { %v5109_v28 = vmax.f32 %v4919_v53, 0.0  ;;  %3119 = vrot.lane.b32.xlu1 %v1522_v50, %s6625_s28  ;;  %2865 = vrot.lane.b32.xlu0 %v1394_v41, %s6624_s27  ;;  %v4338_v15 = vsel %vm4288_vm9, %v4273_v7, %v3358_v18  ;;  %v5969_v18 = vld [vmem:[%s11899_s5 + $0xfd0] sm:$0xff]  ;;  %v1266_v45 = vmul.f32 %v5715_v8, %v10830_v16  ;;  %v5779_v16 = vld [vmem:[%s11899_s5 + $0x9e0] sm:$0xff]  ;;  %v12250_v7 = vld [vmem:[#allocation83_spill] sm:$0xff] }
 0x477   :  { %6456 = vmatprep.mubr.msk.f32.mxu1 %vm4499_vm12, %v4467_v52  ;;  %v4403_v53 = vsel %vm4353_vm10, %v4338_v15, %v3614_v24  ;;  %v5906_v24 = vld [vmem:[%s11899_s5 + $0xdd8] sm:$0xff] }
 0x478   :  { %v11284_v4 = vmax.f32 %v5109_v28, %v5110_v62  ;;  %v3104_v9 = vpop.permute.xlu1 %3103  ;;  %v11286_v46 = vpop.permute.xlu0 %2849  ;;  %v5652_v62 = vld [vmem:[%s11899_s5 + $0x5e8] sm:$0xff]  ;;  %v1780_v28 = vmul.f32 0.0, %v5969_v18  ;;  %v1781_v18 = vmul.f32 0.0, %v5970_v1 }
 0x479   :  { %v1138_v44 = vmul.f32 %v5652_v62, %v12234_v21  ;;  %v1909_v62 = vmul.f32 0.0, %v6033_v58 }
 0x47a   :  { %2355 = vrot.lane.b32.xlu1 %v1137_v0, %s6622_s26  ;;  %3885 = vrot.lane.b32.xlu0 %v1908_v14, %s6628_s21  ;;  %v1652_v14 = vmul.f32 0.0, %v5906_v24  ;;  %v5716_v0 = vld [vmem:[%s11899_s5 + $0x7e8] sm:$0xff] }
 0x47c   :  { %v11300_v39 = vpop.permute.xlu1 %2339  ;;  %v3870_v50 = vpop.permute.xlu0 %3869 }
 0x47d   :  { %v4468_v41 = vsel %vm4418_vm11, %v4403_v53, %v3870_v50  ;;  %v1395_v50 = vmul.f32 %v5779_v16, %v10869_v54 }
 0x47e   :  { %3375 = vrot.lane.b32.xlu1 %v1651_v27, %s6626_s29  ;;  %3121 = vrot.lane.b32.xlu0 %v1523_v13, %s6625_s28  ;;  %v869_v27 = vmul.f32 %v805_v3, %v12250_v7  ;;  %v1267_v13 = vmul.f32 %v5716_v0, %v10869_v54  ;;  %v5843_v3 = vld [vmem:[%s11899_s5 + $0xbe0] sm:$0xff] }
 0x47f   :  { %6457 = vmatmul.mubr.msk.f32.gmra.mrb[48].mxu1 %vm4499_vm12, %v4468_v41  ;;  %v12251_v41 = vld [vmem:[#allocation31_spill] sm:$0xff] }
 0x480   :  { %v3360_v52 = vpop.permute.xlu1 %3359  ;;  %v11319_v19 = vpop.permute.xlu0 %3105  ;;  %v4014_v8 = vsel %vm3963_vm4, %v869_v27, %v12251_v41  ;;  %v6034_v27 = vld [vmem:[%s11899_s5 + $0x11d8] sm:$0xff] }
 0x481   :  { %v4079_v24 = vsel %vm4028_vm5, %v4014_v8, %v11182_v55  ;;  %v5780_v55 = vld [vmem:[%s11899_s5 + $0x9e8] sm:$0xff]  ;;  %v1524_v8 = vmul.f32 %v5843_v3, %v10966_v11  ;;  %v5907_v3 = vld [vmem:[%s11899_s5 + $0xde0] sm:$0xff] }
 0x482   :  { %2611 = vrot.lane.b32.xlu1 %v1266_v45, %s6623_s25  ;;  %2357 = vrot.lane.b32.xlu0 %v1138_v44, %s6622_s26  ;;  %v806_v45 = vld [vmem:[%s11899_s5 + $0x198] sm:$0xff]  ;;  %v4144_v44 = vsel %vm4093_vm6, %v4079_v24, %v11208_v34  ;;  %v12252_v34 = vld [vmem:[#allocation20_spill] sm:$0xff]  ;;  %v5653_v24 = vld [vmem:[%s11899_s5 + $0x5f0] sm:$0xff] }
 0x483   :  { %v870_v58 = vmul.f32 %v806_v45, %v12252_v34  ;;  %v12253_v45 = vld [vmem:[#allocation24_spill] sm:$0xff] }
 0x484   :  { %v11325_v36 = vpop.permute.xlu1 %2595  ;;  %v11327_v38 = vpop.permute.xlu0 %2341 }
 0x486   :  { %3631 = vrot.lane.b32.xlu1 %v1780_v28, %s6627_s16  ;;  %3377 = vrot.lane.b32.xlu0 %v1652_v14, %s6626_s29  ;;  %v4209_v14 = vsel %vm4158_vm7, %v4144_v44, %v11243_v20  ;;  %v4015_v44 = vsel %vm3963_vm4, %v870_v58, %v12253_v45  ;;  %v1139_v58 = vmul.f32 %v5653_v24, %v12236_v60 }
 0x487   :  { %v4274_v16 = vsel %vm4223_vm8, %v4209_v14, %v3104_v9 }
 0x488   :  { %v3616_v15 = vpop.permute.xlu1 %3615  ;;  %v3362_v53 = vpop.permute.xlu0 %3361  ;;  %v4339_v1 = vsel %vm4288_vm9, %v4274_v16, %v3360_v52 }
 0x48a   :  { %2867 = vrot.lane.b32.xlu1 %v1395_v50, %s6624_s27  ;;  %2613 = vrot.lane.b32.xlu0 %v1267_v13, %s6623_s25  ;;  %v4404_v50 = vsel %vm4353_vm10, %v4339_v1, %v3616_v15  ;;  %v4080_v15 = vsel %vm4028_vm5, %v4015_v44, %v11210_v17  ;;  %v5844_v17 = vld [vmem:[%s11899_s5 + $0xbe8] sm:$0xff] }
 0x48c   :  { %v11360_v54 = vpop.permute.xlu1 %2851  ;;  %v11362_v28 = vpop.permute.xlu0 %2597 }
 0x48e   :  { %v6437_v0 = vpop.f32.mrb[34].mxu1  ;;  %3887 = vrot.lane.b32.xlu1 %v1909_v62, %s6628_s21  ;;  %3633 = vrot.lane.b32.xlu0 %v1781_v18, %s6627_s16  ;;  %v1396_v62 = vmul.f32 %v5780_v55, %v10966_v11  ;;  %v4145_v55 = vsel %vm4093_vm6, %v4080_v15, %v11245_v29  ;;  %v1653_v29 = vmul.f32 0.0, %v5907_v3  ;;  %v6035_v15 = vld [vmem:[%s11899_s5 + $0x11e0] sm:$0xff]  ;;  %v5972_v3 = vld [vmem:[%s11899_s5 + $0xfe8] sm:$0xff] }
 0x48f   :  { %v4934_v20 = vadd.f32 %v10737_v31, %v6437_v0  ;;  %v4928_v7 = vpop.f32.mrb[35].mxu1  ;;  %v4210_v1 = vsel %vm4158_vm7, %v4145_v55, %v11286_v46  ;;  %v1525_v46 = vmul.f32 %v5844_v17, %v11005_v2 }
 0x490   :  { %v4929_v9 = vadd.f32 %v10737_v31, %v4928_v7  ;;  %v3872_v13 = vpop.permute.xlu1 %3871  ;;  %v3618_v41 = vpop.permute.xlu0 %3617  ;;  %v1910_v31 = vmul.f32 0.0, %v6034_v27 }
 0x491   :  { %v5112_v18 = vmax.f32 %v4934_v20, 0.0  ;;  %v4469_v52 = vsel %vm4418_vm11, %v4404_v50, %v3872_v13  ;;  %v4275_v20 = vsel %vm4223_vm8, %v4210_v1, %v11319_v19  ;;  %v5717_v19 = vld [vmem:[%s11899_s5 + $0x7f0] sm:$0xff]  ;;  %v5654_v13 = vld [vmem:[%s11899_s5 + $0x5f8] sm:$0xff] }
 0x492   :  { %v5111_v14 = vmax.f32 %v4929_v9, 0.0  ;;  %3123 = vrot.lane.b32.xlu1 %v1524_v8, %s6625_s28  ;;  %2869 = vrot.lane.b32.xlu0 %v1396_v62, %s6624_s27  ;;  %v4340_v7 = vsel %vm4288_vm9, %v4275_v20, %v3362_v53  ;;  %v5971_v53 = vld [vmem:[%s11899_s5 + $0xfe0] sm:$0xff] }
 0x493   :  { %6459 = vmatprep.mubr.msk.f32.mxu1 %vm4499_vm12, %v4469_v52  ;;  %v4405_v27 = vsel %vm4353_vm10, %v4340_v7, %v3618_v41  ;;  %v5908_v41 = vld [vmem:[%s11899_s5 + $0xde8] sm:$0xff]  ;;  %v1140_v52 = vmul.f32 %v5654_v13, %v10597_v49  ;;  %v1782_v24 = vmul.f32 0.0, %v5971_v53  ;;  %v5718_v49 = vld [vmem:[%s11899_s5 + $0x7f8] sm:$0xff]  ;;  %v5845_v53 = vld [vmem:[%s11899_s5 + $0xbf0] sm:$0xff] }
 0x494   :  { %v11401_v16 = vmax.f32 %v5111_v14, %v5112_v18  ;;  %v3108_v0 = vpop.permute.xlu1 %3107  ;;  %v11403_v34 = vpop.permute.xlu0 %2853  ;;  %v1268_v18 = vmul.f32 %v5717_v19, %v10966_v11  ;;  %v1654_v45 = vmul.f32 0.0, %v5908_v41  ;;  %v5781_v11 = vld [vmem:[%s11899_s5 + $0x9f0] sm:$0xff]  ;;  %v1269_v20 = vmul.f32 %v5718_v49, %v11005_v2 }
 0x495   :  { %v1397_v17 = vmul.f32 %v5781_v11, %v11005_v2 }
 0x496   :  { %2359 = vrot.lane.b32.xlu1 %v1139_v58, %s6622_s26  ;;  %3889 = vrot.lane.b32.xlu0 %v1910_v31, %s6628_s21  ;;  %v807_v31 = vld [vmem:[%s11899_s5 + $0x1a0] sm:$0xff] }
 0x497   :  { %v871_v55 = vmul.f32 %v807_v31, %v12212_v51  ;;  %v808_v51 = vld [vmem:[%s11899_s5 + $0x1a8] sm:$0xff] }
 0x498   :  { %v11417_v60 = vpop.permute.xlu1 %2343  ;;  %v3874_v50 = vpop.permute.xlu0 %3873  ;;  %v6036_v31 = vld [vmem:[%s11899_s5 + $0x11e8] sm:$0xff] }
 0x499   :  { %v4470_v9 = vsel %vm4418_vm11, %v4405_v27, %v3874_v50  ;;  %v1911_v27 = vmul.f32 0.0, %v6035_v15  ;;  %v1783_v50 = vmul.f32 0.0, %v5972_v3  ;;  %v1526_v15 = vmul.f32 %v5845_v53, %v11100_v48 }
 0x49a   :  { %3379 = vrot.lane.b32.xlu1 %v1653_v29, %s6626_s29  ;;  %3125 = vrot.lane.b32.xlu0 %v1525_v46, %s6625_s28  ;;  %v12254_v29 = vld [vmem:[#allocation5_spill] sm:$0xff] }
 0x49b   :  { %6460 = vmatmul.mubr.msk.f32.gmra.mrb[50].mxu1 %vm4499_vm12, %v4470_v9  ;;  %v4016_v7 = vsel %vm3963_vm4, %v871_v55, %v12254_v29 }
 0x49c   :  { %v3364_v8 = vpop.permute.xlu1 %3363  ;;  %v11436_v62 = vpop.permute.xlu0 %3109  ;;  %v4081_v46 = vsel %vm4028_vm5, %v4016_v7, %v11300_v39  ;;  %v5782_v39 = vld [vmem:[%s11899_s5 + $0x9f8] sm:$0xff] }
 0x49d   :  { %v4146_v9 = vsel %vm4093_vm6, %v4081_v46, %v11325_v36  ;;  %v872_v36 = vmul.f32 %v808_v51, %v12214_v22  ;;  %v1398_v3 = vmul.f32 %v5782_v39, %v11100_v48  ;;  %v5910_v48 = vld [vmem:[%s11899_s5 + $0xdf8] sm:$0xff]  ;;  %v5909_v46 = vld [vmem:[%s11899_s5 + $0xdf0] sm:$0xff] }
 0x49e   :  { %2615 = vrot.lane.b32.xlu1 %v1268_v18, %s6623_s25  ;;  %2361 = vrot.lane.b32.xlu0 %v1140_v52, %s6622_s26  ;;  %v4211_v13 = vsel %vm4158_vm7, %v4146_v9, %v11360_v54  ;;  %v11497_v54 = vld [vmem:[%s11898_s4] ss:$0 sm:$0xff] }
 0x49f   :  { %v4276_v41 = vsel %vm4223_vm8, %v4211_v13, %v3108_v0  ;;  %v5846_v0 = vld [vmem:[%s11899_s5 + $0xbf8] sm:$0xff] }
 0x4a0   :  { %v11442_v44 = vpop.permute.xlu1 %2599  ;;  %v11444_v14 = vpop.permute.xlu0 %2345  ;;  %v4341_v52 = vsel %vm4288_vm9, %v4276_v41, %v3364_v8  ;;  %v1656_v41 = vmul.f32 0.0, %v5910_v48  ;;  %v12258_v48 = vld [vmem:[#allocation36_spill] sm:$0xff] }
 0x4a2   :  { %3635 = vrot.lane.b32.xlu1 %v1782_v24, %s6627_s16  ;;  %3381 = vrot.lane.b32.xlu0 %v1654_v45, %s6626_s29 }
 0x4a4   :  { %v3620_v58 = vpop.permute.xlu1 %3619  ;;  %v3366_v1 = vpop.permute.xlu0 %3365 }
 0x4a5   :  { %v4406_v22 = vsel %vm4353_vm10, %v4341_v52, %v3620_v58  ;;  %v1527_v58 = vmul.f32 0.0, %v5846_v0  ;;  %v5973_v52 = vld [vmem:[%s11899_s5 + $0xff0] sm:$0xff] }
 0x4a6   :  { %2871 = vrot.lane.b32.xlu1 %v1397_v17, %s6624_s27  ;;  %2617 = vrot.lane.b32.xlu0 %v1269_v20, %s6623_s25  ;;  %v12255_v20 = vld [vmem:[#allocation72_spill] sm:$0xff]  ;;  %v1784_v0 = vmul.f32 0.0, %v5973_v52 }
 0x4a7   :  { %v4017_v29 = vsel %vm3963_vm4, %v872_v36, %v12255_v20 }
 0x4a8   :  { %v11477_v2 = vpop.permute.xlu1 %2855  ;;  %v11479_v19 = vpop.permute.xlu0 %2601 }
 0x4aa   :  { %v6440_v18 = vpop.f32.mrb[36].mxu1  ;;  %3891 = vrot.lane.b32.xlu1 %v1911_v27, %s6628_s21  ;;  %3637 = vrot.lane.b32.xlu0 %v1783_v50, %s6627_s16  ;;  %v1912_v27 = vmul.f32 0.0, %v6036_v31  ;;  %v4082_v50 = vsel %vm4028_vm5, %v4017_v29, %v11327_v38  ;;  %v6038_v31 = vld [vmem:[%s11899_s5 + $0x11f8] sm:$0xff] }
 0x4ab   :  { %v4944_v24 = vadd.f32 %v11497_v54, %v6440_v18  ;;  %v4938_v45 = vpop.f32.mrb[37].mxu1  ;;  %v4147_v51 = vsel %vm4093_vm6, %v4082_v50, %v11362_v28  ;;  %v1655_v18 = vmul.f32 0.0, %v5909_v46  ;;  %v5974_v28 = vld [vmem:[%s11899_s5 + $0xff8] sm:$0xff]  ;;  %v12257_v50 = vld [vmem:[#allocation70_spill] sm:$0xff] }
 0x4ac   :  { %v4939_v8 = vadd.f32 %v11497_v54, %v4938_v45  ;;  %v3876_v11 = vpop.permute.xlu1 %3875  ;;  %v3622_v49 = vpop.permute.xlu0 %3621  ;;  %v4212_v38 = vsel %vm4158_vm7, %v4147_v51, %v11403_v34  ;;  %v12259_v46 = vmax.f32 %v12257_v50, %v12258_v48  ;;  %v12260_v51 = vld [vmem:[#allocation48_spill] sm:$0xff] }
 0x4ad   :  { %v5114_v55 = vmax.f32 %v4944_v24, 0.0  ;;  %v4471_v17 = vsel %vm4418_vm11, %v4406_v22, %v3876_v11  ;;  %v4277_v39 = vsel %vm4223_vm8, %v4212_v38, %v11436_v62  ;;  %v6037_v22 = vld [vmem:[%s11899_s5 + $0x11f0] sm:$0xff] }
 0x4ae   :  { %v5113_v7 = vmax.f32 %v4939_v8, 0.0  ;;  %3127 = vrot.lane.b32.xlu1 %v1526_v15, %s6625_s28  ;;  %2873 = vrot.lane.b32.xlu0 %v1398_v3, %s6624_s27  ;;  %v4342_v36 = vsel %vm4288_vm9, %v4277_v39, %v3366_v1  ;;  %v1785_v1 = vmul.f32 0.0, %v5974_v28  ;;  %v1913_v15 = vmul.f32 0.0, %v6037_v22  ;;  %v12261_v38 = vld [vmem:[#allocation10_spill] sm:$0xff]  ;;  %v810_v28 = vld [vmem:[%s11899_s5 + $0x1b8] sm:$0xff] }
 0x4af   :  { %6462 = vmatprep.mubr.msk.f32.mxu1 %vm4499_vm12, %v4471_v17  ;;  %v4407_v34 = vsel %vm4353_vm10, %v4342_v36, %v3622_v49  ;;  %v1914_v49 = vmul.f32 0.0, %v6038_v31  ;;  %v809_v17 = vld [vmem:[%s11899_s5 + $0x1b0] sm:$0xff]  ;;  %v12262_v39 = vmax.f32 %v12260_v51, %v12261_v38 }
 0x4b0   :  { %v11526_v9 = vmax.f32 %v5113_v7, %v5114_v55  ;;  %v3112_v13 = vpop.permute.xlu1 %3111  ;;  %v11528_v53 = vpop.permute.xlu0 %2857  ;;  %v873_v20 = vmul.f32 %v809_v17, %v12215_v35 }
 0x4b2   :  { %3129 = vrot.lane.b32.xlu1 %v1527_v58, %s6625_s28  ;;  %3893 = vrot.lane.b32.xlu0 %v1912_v27, %s6628_s21  ;;  %v12256_v58 = vld [vmem:[#allocation68_spill] sm:$0xff] }
 0x4b3   :  { %v4018_v27 = vsel %vm3963_vm4, %v873_v20, %v12256_v58 }
 0x4b4   :  { %v11544_v24 = vpop.permute.xlu1 %2347  ;;  %v3878_v62 = vpop.permute.xlu0 %3877 }
 0x4b5   :  { %v4472_v45 = vsel %vm4418_vm11, %v4407_v34, %v3878_v62 }
 0x4b6   :  { %3385 = vrot.lane.b32.xlu1 %v1656_v41, %s6626_s29  ;;  %3383 = vrot.lane.b32.xlu0 %v1655_v18, %s6626_s29  ;;  %v4083_v41 = vsel %vm4028_vm5, %v4018_v27, %v11417_v60  ;;  %v12263_v60 = vld [vmem:[#allocation25_spill] sm:$0xff] }
 0x4b7   :  { %6463 = vmatmul.mubr.msk.f32.gmra.mrb[52].mxu1 %vm4499_vm12, %v4472_v45  ;;  %v4148_v35 = vsel %vm4093_vm6, %v4083_v41, %v11442_v44  ;;  %v12264_v44 = vld [vmem:[#allocation73_spill] sm:$0xff] }
 0x4b8   :  { %v3368_v8 = vpop.permute.xlu1 %3367  ;;  %v3114_v11 = vpop.permute.xlu0 %3113  ;;  %v4213_v52 = vsel %vm4158_vm7, %v4148_v35, %v11477_v2  ;;  %v12265_v45 = vmax.f32 %v12263_v60, %v12264_v44  ;;  %v874_v2 = vmul.f32 %v810_v28, %v12217_v30  ;;  %v812_v35 = vld [vmem:[%s11899_s5 + $0x1c8] sm:$0xff] }
 0x4b9   :  { %v4278_v34 = vsel %vm4223_vm8, %v4213_v52, %v3112_v13 }
 0x4ba   :  { %3641 = vrot.lane.b32.xlu1 %v1785_v1, %s6627_s16  ;;  %3639 = vrot.lane.b32.xlu0 %v1784_v0, %s6627_s16  ;;  %v4343_v1 = vsel %vm4288_vm9, %v4278_v34, %v3368_v8 }
 0x4bc   :  { %v2604_v3 = vpop.permute.xlu1 %2603  ;;  %v11558_v55 = vpop.permute.xlu0 %2349 }
 0x4be   :  { %3897 = vrot.lane.b32.xlu1 %v1914_v49, %s6628_s21  ;;  %3895 = vrot.lane.b32.xlu0 %v1913_v15, %s6628_s21 }
 0x4c0   :  { %v3624_v29 = vpop.permute.xlu1 %3623  ;;  %v3370_v7 = vpop.permute.xlu0 %3369 }
 0x4c1   :  { %v4408_v13 = vsel %vm4353_vm10, %v4343_v1, %v3624_v29 }
 0x4c2   :  { %5194 = vrot.lane.b32.xlu1 %v12259_v46, %s6622_s26  ;;  %5190 = vrot.lane.b32.xlu0 %v12262_v39, %s6621_s14  ;;  %s6634_s14 = smov 104   ;;  %s6638_s26 = smov 120  }
 0x4c4   :  { %v2860_v18 = vpop.permute.xlu1 %2859  ;;  %v11580_v36 = vpop.permute.xlu0 %2605 }
 0x4c6   :  { %v6443_v62 = vpop.f32.mrb[38].mxu1  ;;  %5202 = vrot.lane.b32.xlu1 %v5177_v63, %s6624_s27  ;;  %5198 = vrot.lane.b32.xlu0 %v12265_v45, %s6623_s25  ;;  %v12266_v63 = vld [vmem:[#allocation37_spill] sm:$0xff] }
 0x4c7   :  { %v4954_v0 = vadd.f32 %v11497_v54, %v6443_v62  ;;  %v4948_v31 = vpop.f32.mrb[39].mxu1  ;;  %v4019_v17 = vsel %vm3963_vm4, %v874_v2, %v12266_v63 }
 0x4c8   :  { %v4949_v22 = vadd.f32 %v11497_v54, %v4948_v31  ;;  %v3880_v49 = vpop.permute.xlu1 %3879  ;;  %v3626_v15 = vpop.permute.xlu0 %3625  ;;  %v4084_v30 = vsel %vm4028_vm5, %v4019_v17, %v11444_v14 }
 0x4c9   :  { %v5116_v26 = vmax.f32 %v4954_v0, 0.0  ;;  %v4473_v33 = vsel %vm4418_vm11, %v4408_v13, %v3880_v49  ;;  %v4149_v8 = vsel %vm4093_vm6, %v4084_v30, %v11479_v19 }
 0x4ca   :  { %v5115_v20 = vmax.f32 %v4949_v22, 0.0  ;;  %6465 = vmatprep.mubr.msk.f32.mxu1 %vm4499_vm12, %v4473_v33  ;;  %5210 = vrot.lane.b32.xlu1 %v5179_v37, %s6626_s29  ;;  %v4214_v50 = vsel %vm4158_vm7, %v4149_v8, %v11528_v53 }
 0x4cb   :  { %5206 = vrot.lane.b32.xlu0 %v5178_v56, %s6625_s28  ;;  %v4279_v47 = vsel %vm4223_vm8, %v4214_v50, %v3114_v11  ;;  %v811_v11 = vld [vmem:[%s11899_s5 + $0x1c0] sm:$0xff] }
 0x4cc   :  { %v11617_v29 = vmax.f32 %v5115_v20, %v5116_v26  ;;  %v3116_v58 = vpop.permute.xlu1 %3115  ;;  %v2862_v27 = vpop.permute.xlu0 %2861  ;;  %v4344_v59 = vsel %vm4288_vm9, %v4279_v47, %v3370_v7  ;;  %v875_v32 = vmul.f32 %v811_v11, %v12218_v23  ;;  %v12267_v7 = vld [vmem:[#allocation29_spill] sm:$0xff] }
 0x4cd   :  { %v4409_v10 = vsel %vm4353_vm10, %v4344_v59, %v3626_v15 }
 0x4ce   :  { %v4020_v46 = vsel %vm3963_vm4, %v875_v32, %v12267_v7 }
 0x4cf   :  { %5214 = vrot.lane.b32.xlu0 %v5180_v12, %s6627_s16  ;;  %v4085_v51 = vsel %vm4028_vm5, %v4020_v46, %v11544_v24  ;;  %v876_v24 = vmul.f32 %v812_v35, %v12220_v5 }
 0x4d0   :  { %v2352_v43 = vpop.permute.xlu1 %2351  ;;  %v3882_v56 = vpop.permute.xlu0 %3881  ;;  %v4150_v38 = vsel %vm4093_vm6, %v4085_v51, %v2604_v3 }
 0x4d1   :  { %v4474_v37 = vsel %vm4418_vm11, %v4409_v10, %v3882_v56  ;;  %v4215_v28 = vsel %vm4158_vm7, %v4150_v38, %v2860_v18  ;;  %v12268_v18 = vld [vmem:[#allocation60_spill] sm:$0xff] }
 0x4d2   :  { %6466 = vmatmul.mubr.msk.f32.gmra.mrb[54].mxu1 %vm4499_vm12, %v4474_v37  ;;  %v4280_v23 = vsel %vm4223_vm8, %v4215_v28, %v3116_v58  ;;  %v4021_v2 = vsel %vm3963_vm4, %v876_v24, %v12268_v18  ;;  %v12269_v37 = vld [vmem:[#allocation16_spill] sm:$0xff] }
 0x4d3   :  { %v4086_v22 = vsel %vm4028_vm5, %v4021_v2, %v11558_v55 }
 0x4d4   :  { %v3372_v14 = vpop.permute.xlu1 %3371  ;;  %v3118_v19 = vpop.permute.xlu0 %3117  ;;  %v4151_v5 = vsel %vm4093_vm6, %v4086_v22, %v11580_v36 }
 0x4d5   :  { %v4345_v34 = vsel %vm4288_vm9, %v4280_v23, %v3372_v14  ;;  %v4216_v33 = vsel %vm4158_vm7, %v4151_v5, %v2862_v27 }
 0x4d6   :  { %v4281_v63 = vsel %vm4223_vm8, %v4216_v33, %v3118_v19 }
 0x4d8   :  { %v2608_v53 = vpop.permute.xlu1 %2607  ;;  %v11630_v48 = vpop.permute.xlu0 %2353 }
 0x4dc   :  { %v3628_v57 = vpop.permute.xlu1 %3627  ;;  %v3374_v12 = vpop.permute.xlu0 %3373 }
 0x4dd   :  { %v4410_v3 = vsel %vm4353_vm10, %v4345_v34, %v3628_v57  ;;  %v4346_v20 = vsel %vm4288_vm9, %v4281_v63, %v3374_v12  ;;  %v814_v12 = vld [vmem:[%s11899_s5 + $0x1d8] sm:$0xff] }
 0x4e0   :  { %v2864_v39 = vpop.permute.xlu1 %2863  ;;  %v11641_v41 = vpop.permute.xlu0 %2609 }
 0x4e2   :  { %v6446_v52 = vpop.f32.mrb[40].mxu1 }
 0x4e3   :  { %v4964_v62 = vadd.f32 %v11497_v54, %v6446_v52  ;;  %v4958_v60 = vpop.f32.mrb[41].mxu1 }
 0x4e4   :  { %v4959_v44 = vadd.f32 %v11497_v54, %v4958_v60  ;;  %v3884_v45 = vpop.permute.xlu1 %3883  ;;  %v3630_v1 = vpop.permute.xlu0 %3629 }
 0x4e5   :  { %v5118_v0 = vmax.f32 %v4964_v62, 0.0  ;;  %v4475_v31 = vsel %vm4418_vm11, %v4410_v3, %v3884_v45  ;;  %v4411_v30 = vsel %vm4353_vm10, %v4346_v20, %v3630_v1  ;;  %v12271_v20 = vld [vmem:[#allocation44_spill] sm:$0xff] }
 0x4e6   :  { %v5117_v13 = vmax.f32 %v4959_v44, 0.0  ;;  %6468 = vmatprep.mubr.msk.f32.mxu1 %vm4499_vm12, %v4475_v31 }
 0x4e8   :  { %v5161_v49 = vmax.f32 %v5117_v13, %v5118_v0  ;;  %v3120_v15 = vpop.permute.xlu1 %3119  ;;  %v2866_v26 = vpop.permute.xlu0 %2865 }
 0x4ea   :  { %v5181_v17 = vmax.f32 %v11284_v4, %v5161_v49  ;;  %v813_v4 = vld [vmem:[%s11899_s5 + $0x1d0] sm:$0xff] }
 0x4eb   :  { %v877_v59 = vmul.f32 %v813_v4, %v12221_v61  ;;  %v816_v4 = vld [vmem:[%s11899_s5 + $0x1e8] sm:$0xff] }
 0x4ec   :  { %5218 = vrot.lane.b32.xlu1 %v5181_v17, %s6628_s21  ;;  %v2356_v8 = vpop.permute.xlu1 %2355  ;;  %v3886_v55 = vpop.permute.xlu0 %3885 }
 0x4ed   :  { %v4476_v58 = vsel %vm4418_vm11, %v4411_v30, %v3886_v55  ;;  %v4022_v14 = vsel %vm3963_vm4, %v877_v59, %v12269_v37 }
 0x4ee   :  { %6469 = vmatmul.mubr.msk.f32.gmra.mrb[56].mxu1 %vm4499_vm12, %v4476_v58  ;;  %v4087_v19 = vsel %vm4028_vm5, %v4022_v14, %v2352_v43  ;;  %v878_v43 = vmul.f32 %v814_v12, %v12224_v25 }
 0x4ef   :  { %v4152_v11 = vsel %vm4093_vm6, %v4087_v19, %v2608_v53 }
 0x4f0   :  { %v3376_v36 = vpop.permute.xlu1 %3375  ;;  %v3122_v50 = vpop.permute.xlu0 %3121  ;;  %v4217_v7 = vsel %vm4158_vm7, %v4152_v11, %v2864_v39  ;;  %v12270_v39 = vld [vmem:[#allocation8_spill] sm:$0xff] }
 0x4f1   :  { %v4282_v61 = vsel %vm4223_vm8, %v4217_v7, %v3120_v15  ;;  %v4023_v60 = vsel %vm3963_vm4, %v878_v43, %v12270_v39 }
 0x4f2   :  { %v4347_v51 = vsel %vm4288_vm9, %v4282_v61, %v3376_v36  ;;  %v4088_v3 = vsel %vm4028_vm5, %v4023_v60, %v11630_v48  ;;  %v817_v60 = vld [vmem:[%s11899_s5 + $0x1f0] sm:$0xff] }
 0x4f3   :  { %v4153_v25 = vsel %vm4093_vm6, %v4088_v3, %v11641_v41  ;;  %v881_v3 = vmul.f32 %v817_v60, %v12232_v6  ;;  %v5274_v60 = vld [vmem:[%s11900_s6 + $0x20] sm:$0xff] }
 0x4f4   :  { %v2612_v47 = vpop.permute.xlu1 %2611  ;;  %v11669_v27 = vpop.permute.xlu0 %2357  ;;  %v4218_v0 = vsel %vm4158_vm7, %v4153_v25, %v2866_v26 }
 0x4f5   :  { %v4283_v31 = vsel %vm4223_vm8, %v4218_v0, %v3122_v50  ;;  %v12274_v0 = vld [vmem:[#allocation58_spill] sm:$0xff] }
 0x4f8   :  { %v3632_v10 = vpop.permute.xlu1 %3631  ;;  %v3378_v56 = vpop.permute.xlu0 %3377 }
 0x4f9   :  { %v4412_v53 = vsel %vm4353_vm10, %v4347_v51, %v3632_v10  ;;  %v4348_v2 = vsel %vm4288_vm9, %v4283_v31, %v3378_v56  ;;  %v4026_v31 = vsel %vm3963_vm4, %v881_v3, %v12274_v0 }
 0x4fc   :  { %v2868_v32 = vpop.permute.xlu1 %2867  ;;  %v11679_v57 = vpop.permute.xlu0 %2613 }
 0x4fe   :  { %v6449_v46 = vpop.f32.mrb[42].mxu1 }
 0x4ff   :  { %v4974_v38 = vadd.f32 %v11497_v54, %v6449_v46  ;;  %v4968_v35 = vpop.f32.mrb[43].mxu1 }
 0x500   :  { %v4969_v28 = vadd.f32 %v11497_v54, %v4968_v35  ;;  %v3888_v23 = vpop.permute.xlu1 %3887  ;;  %v3634_v52 = vpop.permute.xlu0 %3633 }
 0x501   :  { %v5120_v34 = vmax.f32 %v4974_v38, 0.0  ;;  %v4477_v62 = vsel %vm4418_vm11, %v4412_v53, %v3888_v23  ;;  %v4413_v13 = vsel %vm4353_vm10, %v4348_v2, %v3634_v52 }
 0x502   :  { %v5119_v24 = vmax.f32 %v4969_v28, 0.0  ;;  %6471 = vmatprep.mubr.msk.f32.mxu1 %vm4499_vm12, %v4477_v62 }
 0x504   :  { %v5162_v44 = vmax.f32 %v5119_v24, %v5120_v34  ;;  %v3124_v45 = vpop.permute.xlu1 %3123  ;;  %v2870_v1 = vpop.permute.xlu0 %2869 }
 0x506   :  { %v5182_v18 = vmax.f32 %v11401_v16, %v5162_v44  ;;  %v815_v16 = vld [vmem:[%s11899_s5 + $0x1e0] sm:$0xff] }
 0x507   :  { %v879_v33 = vmul.f32 %v815_v16, %v12227_v42 }
 0x508   :  { %5222 = vrot.lane.b32.xlu0 %v5182_v18, %s6629_s11  ;;  %v2360_v22 = vpop.permute.xlu1 %2359  ;;  %v3890_v48 = vpop.permute.xlu0 %3889 }
 0x509   :  { %v4478_v5 = vsel %vm4418_vm11, %v4413_v13, %v3890_v48  ;;  %v4024_v30 = vsel %vm3963_vm4, %v879_v33, %v12271_v20  ;;  %v4091_v18 = vsel %vm4028_vm5, %v4026_v31, %v2360_v22 }
 0x50a   :  { %6472 = vmatmul.mubr.msk.f32.gmra.mrb[58].mxu1 %vm4499_vm12, %v4478_v5  ;;  %v4089_v55 = vsel %vm4028_vm5, %v4024_v30, %v2356_v8  ;;  %v880_v8 = vmul.f32 %v816_v4, %v12230_v40 }
 0x50b   :  { %v4154_v58 = vsel %vm4093_vm6, %v4089_v55, %v2612_v47 }
 0x50c   :  { %v3380_v41 = vpop.permute.xlu1 %3379  ;;  %v3126_v49 = vpop.permute.xlu0 %3125  ;;  %v4219_v59 = vsel %vm4158_vm7, %v4154_v58, %v2868_v32  ;;  %v12272_v32 = vld [vmem:[#allocation28_spill] sm:$0xff] }
 0x50d   :  { %v4284_v10 = vsel %vm4223_vm8, %v4219_v59, %v3124_v45  ;;  %v4025_v46 = vsel %vm3963_vm4, %v880_v8, %v12272_v32  ;;  %v12273_v45 = vld [vmem:[#allocation7_spill] sm:$0xff] }
 0x50e   :  { %v4349_v56 = vsel %vm4288_vm9, %v4284_v10, %v3380_v41  ;;  %v4090_v38 = vsel %vm4028_vm5, %v4025_v46, %v11669_v27 }
 0x50f   :  { %v4155_v40 = vsel %vm4093_vm6, %v4090_v38, %v11679_v57  ;;  %v818_v57 = vld [vmem:[%s11899_s5 + $0x1f8] sm:$0xff]  ;;  %s6631_s5 = smov 88   ;;  %v6632_v38 = vmov 0.0|0.0  }
 0x510   :  { %v2616_v15 = vpop.permute.xlu1 %2615  ;;  %v2362_v26 = vpop.permute.xlu0 %2361  ;;  %v4220_v28 = vsel %vm4158_vm7, %v4155_v40, %v2870_v1  ;;  %6544 = vmatprep.subr.bf16.mxu0 %v6632_v38  ;;  %v5270_v40 = vld [vmem:[%s11900_s6] sm:$0xff] }
 0x511   :  { %v4285_v23 = vsel %vm4223_vm8, %v4220_v28, %v3126_v49  ;;  %v4156_v13 = vsel %vm4093_vm6, %v4091_v18, %v2616_v15 }
 0x514   :  { %v3636_v63 = vpop.permute.xlu1 %3635  ;;  %v3382_v17 = vpop.permute.xlu0 %3381 }
 0x515   :  { %v4414_v47 = vsel %vm4353_vm10, %v4349_v56, %v3636_v63  ;;  %v4350_v34 = vsel %vm4288_vm9, %v4285_v23, %v3382_v17 }
 0x518   :  { %v2872_v36 = vpop.permute.xlu1 %2871  ;;  %v2618_v50 = vpop.permute.xlu0 %2617 }
 0x519   :  { %v4221_v6 = vsel %vm4158_vm7, %v4156_v13, %v2872_v36 }
 0x51a   :  { %v6452_v42 = vpop.f32.mrb[44].mxu1 }
 0x51b   :  { %v4984_v37 = vadd.f32 %v11497_v54, %v6452_v42  ;;  %v4978_v14 = vpop.f32.mrb[45].mxu1 }
 0x51c   :  { %v4979_v19 = vadd.f32 %v11497_v54, %v4978_v14  ;;  %v3892_v11 = vpop.permute.xlu1 %3891  ;;  %v3638_v12 = vpop.permute.xlu0 %3637 }
 0x51d   :  { %v5122_v7 = vmax.f32 %v4984_v37, 0.0  ;;  %v4479_v61 = vsel %vm4418_vm11, %v4414_v47, %v3892_v11  ;;  %v4415_v62 = vsel %vm4353_vm10, %v4350_v34, %v3638_v12 }
 0x51e   :  { %v5121_v51 = vmax.f32 %v4979_v19, 0.0  ;;  %6474 = vmatprep.mubr.msk.f32.mxu1 %vm4499_vm12, %v4479_v61 }
 0x520   :  { %v5163_v35 = vmax.f32 %v5121_v51, %v5122_v7  ;;  %v3128_v43 = vpop.permute.xlu1 %3127  ;;  %v2874_v53 = vpop.permute.xlu0 %2873 }
 0x521   :  { %v4286_v49 = vsel %vm4223_vm8, %v4221_v6, %v3128_v43  ;;  %v5280_v6 = vld [vmem:[%s11900_s6 + $0x50] sm:$0xff] }
 0x522   :  { %v5183_v52 = vmax.f32 %v11526_v9, %v5163_v35  ;;  %v882_v9 = vmul.f32 %v818_v57, %v12234_v21  ;;  %v5271_v35 = vld [vmem:[%s11900_s6 + $0x8] sm:$0xff]  ;;  %v5273_v57 = vld [vmem:[%s11900_s6 + $0x18] sm:$0xff] }
 0x523   :  { %v6545_v43 = vpack.c.bf16 %v5271_v35, %v5270_v40 }
 0x524   :  { %5226 = vrot.lane.b32.xlu1 %v5183_v52, %s6630_s17  ;;  %v3130_v39 = vpop.permute.xlu1 %3129  ;;  %v3894_v27 = vpop.permute.xlu0 %3893  ;;  %v4027_v1 = vsel %vm3963_vm4, %v882_v9, %v12273_v45  ;;  %v5275_v9 = vld [vmem:[%s11900_s6 + $0x28] sm:$0xff] }
 0x525   :  { %v4480_v24 = vsel %vm4418_vm11, %v4415_v62, %v3894_v27  ;;  %v4092_v2 = vsel %vm4028_vm5, %v4027_v1, %v2362_v26  ;;  %6546 = vmatpush3.bf16.msra.mxu0 %v6545_v43  ;;  %v5272_v27 = vld [vmem:[%s11900_s6 + $0x10] sm:$0xff]  ;;  %v6551_v3 = vpack.c.bf16 %v5275_v9, %v5274_v60  ;;  %v12276_v9 = vld [vmem:[#allocation55_spill] sm:$0xff] }
 0x526   :  { %6475 = vmatmul.mubr.msk.f32.gmra.mrb[60].mxu1 %vm4499_vm12, %v4480_v24  ;;  %v4157_v48 = vsel %vm4093_vm6, %v4092_v2, %v2618_v50  ;;  %6547 = vmatprep.subr.bf16.mxu0 %v6632_v38  ;;  %v6548_v24 = vpack.c.bf16 %v5273_v57, %v5272_v27 }
 0x527   :  { %v4222_v41 = vsel %vm4158_vm7, %v4157_v48, %v2874_v53 }
 0x528   :  { %v3386_v25 = vpop.permute.xlu1 %3385  ;;  %v3384_v44 = vpop.permute.xlu0 %3383  ;;  %v4287_v16 = vsel %vm4223_vm8, %v4222_v41, %v3130_v39 }
 0x529   :  { %v4352_v33 = vsel %vm4288_vm9, %v4287_v16, %v3386_v25  ;;  %v4351_v22 = vsel %vm4288_vm9, %v4286_v49, %v3384_v44  ;;  %6549 = vmatpush3.bf16.msra.mxu0 %v6548_v24  ;;  %v5276_v25 = vld [vmem:[%s11900_s6 + $0x30] sm:$0xff]  ;;  %v5277_v44 = vld [vmem:[%s11900_s6 + $0x38] sm:$0xff] }
 0x52a   :  { %6550 = vmatprep.subr.bf16.mxu0 %v6632_v38  ;;  %v6554_v45 = vpack.c.bf16 %v5277_v44, %v5276_v25  ;;  %v5281_v49 = vld [vmem:[%s11900_s6 + $0x58] sm:$0xff]  ;;  %v12275_v24 = vld [vmem:[#allocation30_spill] sm:$0xff] }
 0x52c   :  { %v3642_v5 = vpop.permute.xlu1 %3641  ;;  %v3640_v21 = vpop.permute.xlu0 %3639 }
 0x52d   :  { %v4417_v26 = vsel %vm4353_vm10, %v4352_v33, %v3642_v5  ;;  %v4416_v15 = vsel %vm4353_vm10, %v4351_v22, %v3640_v21  ;;  %6552 = vmatpush3.bf16.msra.mxu0 %v6551_v3  ;;  %v5278_v5 = vld [vmem:[%s11900_s6 + $0x40] sm:$0xff]  ;;  %v5279_v21 = vld [vmem:[%s11900_s6 + $0x48] sm:$0xff]  ;;  %v6560_v33 = vpack.c.bf16 %v5281_v49, %v5280_v6  ;;  %v12277_v3 = vmax.f32 %v12275_v24, %v12276_v9 }
 0x52e   :  { %6553 = vmatprep.subr.bf16.mxu0 %v6632_v38  ;;  %v6557_v41 = vpack.c.bf16 %v5279_v21, %v5278_v5 }
 0x530   :  { %v3898_v63 = vpop.permute.xlu1 %3897  ;;  %v3896_v17 = vpop.permute.xlu0 %3895 }
 0x531   :  { %v4482_v20 = vsel %vm4418_vm11, %v4417_v26, %v3898_v63  ;;  %v4481_v30 = vsel %vm4418_vm11, %v4416_v15, %v3896_v17  ;;  %6555 = vmatpush3.bf16.msra.mxu0 %v6554_v45 }
 0x532   :  { %6477 = vmatprep.mubr.msk.f32.mxu1 %vm4499_vm12, %v4481_v30  ;;  %6556 = vmatprep.subr.bf16.mxu0 %v6632_v38 }
 0x533   :  { %6478 = vmatmul.mubr.msk.f32.gmra.mrb[62].mxu1 %vm4499_vm12, %v4482_v20 }
 0x535   :  { %6558 = vmatpush3.bf16.msra.mxu0 %v6557_v41 }
 0x536   :  { %v6455_v55 = vpop.f32.mrb[46].mxu1  ;;  %6559 = vmatprep.subr.bf16.mxu0 %v6632_v38 }
 0x537   :  { %v4994_v58 = vadd.f32 %v11497_v54, %v6455_v55  ;;  %v4988_v36 = vpop.f32.mrb[47].mxu1  ;;  %v5282_v55 = vld [vmem:[%s11900_s6 + $0x60] sm:$0xff] }
 0x538   :  { %v4989_v50 = vadd.f32 %v11497_v54, %v4988_v36  ;;  %v5284_v36 = vld [vmem:[%s11900_s6 + $0x70] sm:$0xff] }
 0x539   :  { %v5124_v4 = vmax.f32 %v4994_v58, 0.0  ;;  %6561 = vmatpush3.bf16.msra.mxu0 %v6560_v33  ;;  %v5283_v58 = vld [vmem:[%s11900_s6 + $0x68] sm:$0xff] }
 0x53a   :  { %v5123_v59 = vmax.f32 %v4989_v50, 0.0  ;;  %6562 = vmatprep.subr.bf16.mxu0 %v6632_v38  ;;  %v6563_v50 = vpack.c.bf16 %v5283_v58, %v5282_v55  ;;  %v5364_v55 = vld [vmem:[%s11902_s8] sm:$0xff]  ;;  %v5365_v58 = vld [vmem:[%s11902_s8 + $0x8] sm:$0xff]  ;;  %s6596_s8 = scalar_lea.vmem %s5454_s13, 128 }
 0x53b   :  { %p6597_p0 = scmp.ne.s32.totalorder %s5454_s13, %s6596_s8  ;;  %p6602_p2 = scmp.lt.s32.totalorder %s6596_s8, %s6596_s8 }
 0x53c   :  { %v5164_v10 = vmax.f32 %v5123_v59, %v5124_v4  ;;  %v5285_v4 = vld [vmem:[%s11900_s6 + $0x78] sm:$0xff]  ;;  %s6635_s6 = smov 112  }
 0x53d   :  { %6564 = vmatpush3.bf16.msra.mxu0 %v6563_v50  ;;  %v6104_v50 = vld [vmem:[%s11901_s7] ss:$0 sm:$0xff]  ;;  %p6603_p3 = por %p6602_p2, %p6601_p1 }
 0x53e   :  { %v5184_v42 = vmax.f32 %v11617_v29, %v5164_v10  ;;  %v6566_v10 = vpack.c.bf16 %v5285_v4, %v5284_v36  ;;  %6565 = vmatprep.subr.bf16.mxu0 %v6632_v38  ;;  %v6569_v36 = vpack.c.bf16 %v5365_v58, %v5364_v55 }
 0x53f   :  { %p6604_p4 = pnand %p6603_p3, %p6597_p0 }
 0x540   :  { %5230 = vrot.lane.b32.xlu0 %v5184_v42, %s6631_s5 }
 0x541   :  { %6567 = vmatpush3.bf16.msra.mxu0 %v6566_v10 }
 0x542   :  { %6568 = vmatprep.subr.bf16.mxu0 %v6632_v38  ;;  %v6637_v38 = vmov 0.0  }
 0x543   :  { %6512 = vmatprep.mubr.msk.f32.mxu0 %vm6636_vm13, %v6637_v38 }
 0x552   :  { %v6458_v56 = vpop.f32.mrb[48].mxu1 }
 0x553   :  { %v5004_v37 = vadd.f32 %v11497_v54, %v6458_v56  ;;  %v4998_v14 = vpop.f32.mrb[49].mxu1 }
 0x554   :  { %v4999_v8 = vadd.f32 %v11497_v54, %v4998_v14 }
 0x555   :  { %v5126_v47 = vmax.f32 %v5004_v37, 0.0 }
 0x556   :  { %v5125_v19 = vmax.f32 %v4999_v8, 0.0 }
 0x558   :  { %v11772_v11 = vmax.f32 %v5125_v19, %v5126_v47 }
 0x56e   :  { %v6461_v12 = vpop.f32.mrb[50].mxu1 }
 0x56f   :  { %v5014_v7 = vadd.f32 %v11497_v54, %v6461_v12  ;;  %v5008_v61 = vpop.f32.mrb[51].mxu1 }
 0x570   :  { %v5009_v32 = vadd.f32 %v11497_v54, %v5008_v61 }
 0x571   :  { %v5128_v46 = vmax.f32 %v5014_v7, 0.0 }
 0x572   :  { %v5127_v29 = vmax.f32 %v5009_v32, 0.0 }
 0x574   :  { %v11776_v51 = vmax.f32 %v5127_v29, %v5128_v46 }
 0x58a   :  { %v6464_v53 = vpop.f32.mrb[52].mxu1 }
 0x58b   :  { %v5024_v28 = vadd.f32 %v11497_v54, %v6464_v53  ;;  %v5018_v23 = vpop.f32.mrb[53].mxu1 }
 0x58c   :  { %v5019_v52 = vadd.f32 %v11497_v54, %v5018_v23 }
 0x58d   :  { %v5130_v34 = vmax.f32 %v5024_v28, 0.0 }
 0x58e   :  { %v5129_v62 = vmax.f32 %v5019_v52, 0.0 }
 0x590   :  { %v11788_v39 = vmax.f32 %v5129_v62, %v5130_v34  ;;  %v5191_v62 = vpop.permute.xlu0 %5190 }
 0x591   :  { %v5249_v25 = vsel %vm3963_vm4, %v12277_v3, %v5191_v62 }
 0x594   :  { %v5199_v27 = vpop.permute.xlu0 %5198 }
 0x598   :  { %v5207_v60 = vpop.permute.xlu0 %5206 }
 0x59c   :  { %v5215_v45 = vpop.permute.xlu0 %5214 }
 0x5a5   :  { %v6467_v1 = vpop.f32.mrb[54].mxu1 }
 0x5a6   :  { %v5034_v0 = vadd.f32 %v11497_v54, %v6467_v1  ;;  %v5028_v31 = vpop.f32.mrb[55].mxu1 }
 0x5a7   :  { %v5029_v18 = vadd.f32 %v11497_v54, %v5028_v31 }
 0x5a8   :  { %v5132_v2 = vmax.f32 %v5034_v0, 0.0 }
 0x5a9   :  { %v5131_v13 = vmax.f32 %v5029_v18, 0.0  ;;  %v5223_v18 = vpop.permute.xlu0 %5222 }
 0x5ab   :  { %v11813_v48 = vmax.f32 %v5131_v13, %v5132_v2 }
 0x5b2   :  { %v5231_v5 = vpop.permute.xlu0 %5230 }
 0x5c1   :  { %v6470_v16 = vpop.f32.mrb[56].mxu1 }
 0x5c2   :  { %v5044_v22 = vadd.f32 %v11497_v54, %v6470_v16  ;;  %v5038_v26 = vpop.f32.mrb[57].mxu1 }
 0x5c3   :  { %v5039_v15 = vadd.f32 %v11497_v54, %v5038_v26 }
 0x5c4   :  { %v5134_v63 = vmax.f32 %v5044_v22, 0.0 }
 0x5c5   :  { %v5133_v17 = vmax.f32 %v5039_v15, 0.0 }
 0x5c7   :  { %v5169_v20 = vmax.f32 %v5133_v17, %v5134_v63 }
 0x5c9   :  { %v5185_v30 = vmax.f32 %v11772_v11, %v5169_v20 }
 0x5cb   :  { %5234 = vrot.lane.b32.xlu1 %v5185_v30, %s6633_s20 }
 0x5dd   :  { %v6473_v59 = vpop.f32.mrb[58].mxu1 }
 0x5de   :  { %v5054_v42 = vadd.f32 %v11497_v54, %v6473_v59  ;;  %v5048_v56 = vpop.f32.mrb[59].mxu1 }
 0x5df   :  { %v5049_v37 = vadd.f32 %v11497_v54, %v5048_v56  ;;  %v6105_v56 = vld [vmem:[%s11903_s9] ss:$0 sm:$0xff] }
 0x5e0   :  { %v5136_v14 = vmax.f32 %v5054_v42, 0.0 }
 0x5e1   :  { %v5135_v8 = vmax.f32 %v5049_v37, 0.0 }
 0x5e3   :  { %v5170_v47 = vmax.f32 %v5135_v8, %v5136_v14 }
 0x5e5   :  { %v5186_v19 = vmax.f32 %v11776_v51, %v5170_v47 }
 0x5e7   :  { %5238 = vrot.lane.b32.xlu0 %v5186_v19, %s6634_s14 }
 0x5f9   :  { %v6476_v11 = vpop.f32.mrb[60].mxu1 }
 0x5fa   :  { %v5064_v12 = vadd.f32 %v11497_v54, %v6476_v11  ;;  %v5058_v7 = vpop.f32.mrb[61].mxu1 }
 0x5fb   :  { %v5059_v61 = vadd.f32 %v11497_v54, %v5058_v7 }
 0x5fc   :  { %v5138_v32 = vmax.f32 %v5064_v12, 0.0 }
 0x5fd   :  { %v5137_v46 = vmax.f32 %v5059_v61, 0.0 }
 0x5ff   :  { %v5171_v29 = vmax.f32 %v5137_v46, %v5138_v32 }
 0x601   :  { %v5187_v40 = vmax.f32 %v11788_v39, %v5171_v29  ;;  %v5195_v39 = vpop.permute.xlu1 %5194 }
 0x603   :  { %5242 = vrot.lane.b32.xlu1 %v5187_v40, %s6635_s6 }
 0x605   :  { %v5203_v57 = vpop.permute.xlu1 %5202 }
 0x606   :  { %v6479_v51 = vpop.f32.mrb[62].mxu1 }
 0x607   :  { %v5074_v35 = vadd.f32 %v11497_v54, %v6479_v51  ;;  %v5068_v43 = vpop.f32.mrb[63].mxu1 }
 0x608   :  { %v5069_v53 = vadd.f32 %v11497_v54, %v5068_v43  ;;  %v5250_v54 = vsel %vm4028_vm5, %v5249_v25, %v5195_v39 }
 0x609   :  { %v5140_v28 = vmax.f32 %v5074_v35, 0.0  ;;  %v5211_v44 = vpop.permute.xlu1 %5210  ;;  %v5251_v1 = vsel %vm4093_vm6, %v5250_v54, %v5199_v27 }
 0x60a   :  { %v5139_v23 = vmax.f32 %v5069_v53, 0.0  ;;  %v5252_v31 = vsel %vm4158_vm7, %v5251_v1, %v5203_v57 }
 0x60b   :  { %v5253_v2 = vsel %vm4223_vm8, %v5252_v31, %v5207_v60 }
 0x60c   :  { %v5172_v52 = vmax.f32 %v5139_v23, %v5140_v28 }
 0x60d   :  { %v5219_v0 = vpop.permute.xlu1 %5218 }
 0x60e   :  { %v5188_v34 = vmax.f32 %v11813_v48, %v5172_v52  ;;  %v5254_v48 = vsel %vm4288_vm9, %v5253_v2, %v5211_v44 }
 0x60f   :  { %v5255_v21 = vsel %vm4353_vm10, %v5254_v48, %v5215_v45 }
 0x610   :  { %5246 = vrot.lane.b32.xlu0 %v5188_v34, %s6638_s26  ;;  %v5256_v41 = vsel %vm4418_vm11, %v5255_v21, %v5219_v0 }
 0x611   :  { %v5227_v13 = vpop.permute.xlu1 %5226  ;;  %v5257_v49 = vsel %vm4499_vm12, %v5256_v41, %v5223_v18 }
 0x612   :  { %v5259_v16 = vsel %vm5258_vm14, %v5257_v49, %v5227_v13 }
 0x613   :  { %v5261_v22 = vsel %vm5260_vm15, %v5259_v16, %v5231_v5 }
 0x63d   :  { %v5235_v6 = vpop.permute.xlu1 %5234 }
 0x63e   :  { %v5263_v15 = vsel %vm5262_vm0, %v5261_v22, %v5235_v6 }
 0x659   :  { %v5239_v33 = vpop.permute.xlu0 %5238 }
 0x65a   :  { %v5265_v63 = vsel %vm5264_vm1, %v5263_v15, %v5239_v33 }
 0x675   :  { %v5243_v26 = vpop.permute.xlu1 %5242 }
 0x676   :  { %v5267_v17 = vsel %vm5266_vm2, %v5265_v63, %v5243_v26 }
 0x682   :  { %v5247_v20 = vpop.permute.xlu0 %5246 }
 0x683   :  { %v5269_v30 = vsel %vm5268_vm3, %v5267_v17, %v5247_v20 }
 0x684   :  { %6513 = vmatmul.mubr.f32.vlgmr.msra.gmra.mrb[64].mxu0 %v5269_v30 }
 0x685   :  { %6519 = vmatprep.mubr.msk.f32.mxu0 %vm6636_vm13, %v6637_v38  ;;  %6570 = vmatpush3.bf16.msra.mxu0 %v6569_v36 }
 0x757   :  { %v5359_v4 = vpop.f32.mrb[64].mxu0 }
 0x758   :  { %v5360_v59 = vadd.f32 %v6104_v50, %v5359_v4  ;;  %v6514_v10 = vpop.f32.mrb[65].mxu0 }
 0x75a   :  { %v5363_v42 = vmax.f32 %v5360_v59, 0.0 }
 0x75c   :  { %6520 = vmatmul.mubr.msk.f32.vlgmr.msra.gmra.mrb[66].mxu0 %vm4028_vm5, %v5363_v42 }
 0x82f   :  { %v5442_v37 = vpop.f32.mrb[66].mxu0 }
 0x830   :  { %v5443_v14 = vadd.f32 %v6105_v56, %v5442_v37  ;;  %v6521_v8 = vpop.f32.mrb[67].mxu0 }
 0x832   :  { %5446 = vst [vmem:[#allocation2] sm:$0xff] %v5443_v14 }
 0x833   :  { %6607 = shalt.err (!%p6604_p4)
}
 0x834   :  { %s6608_s17 = scalar_lea.hbm %s11904_s10, 128 }
 0x835   :  { %p6609_p5 = scmp.ne.s32.totalorder %s11904_s10, %s6608_s17  ;;  %p6612_p6 = scmp.lt.u32.totalorder %s6608_s17, %s11904_s10 }
 0x837   :  { %p6614_p7 = pnand %p6612_p6, %p6609_p5 }
 0x839   :  { %6617 = shalt.err (!%p6614_p7)
}
 0x83a   :  { %5456 = dma.vmem_to_hbm [thread:$0]  %s5454_s13, 128, %s11904_s10, [#allocation3]  }
 0x83b   :  { %6618 = dma.done.wait [#allocation3], 128  }
 0x83c   :  { %6619 = vsyncadd [#allocation3], 4294967168 }
 0x83d   :  { %5460 = vsyncpa [#allocation3], 1 }

</bundles_post_ra>
